<compile_context>
chip_gen: v7x
topology: tpu7x:2x2x1
jax: 0.10.0
libtpu: 0.0.40
codegen_flags: <defaults>
</compile_context>

<pallas_src>
import jax
import jax.numpy as jnp
from jax.experimental import pallas as pl
from jax.experimental.pallas import tpu as pltpu


# ----------------------------------------------------------------------------
# Small helpers
# ----------------------------------------------------------------------------
def _round_up(x, m):
    return ((x + m - 1) // m) * m


def _pick_tile(dim, pref):
    """Largest multiple of 128 <= pref that divides dim (dims are lane-padded
    to 128 by param prep); falls back to the full dim."""
    if dim <= pref or dim % 128 != 0:
        return dim
    t = (pref // 128) * 128
    while t >= 128:
        if dim % t == 0:
            return t
        t -= 128
    return dim


def _pick_tile_m(m, pref):
    """Row tile: multiple of 8 dividing m if possible, else the full dim."""
    if m <= pref:
        return m
    t = (pref // 8) * 8
    while t >= 8:
        if m % t == 0:
            return t
        t -= 8
    return m


def _pick_batch_block(n, h, w, max_rows=4096):
    """Images per conv grid step: fold b*h*w rows into the matmul M dim.
    Keep >=2 grid steps when possible (v7x megacore) and keep the output
    row-block a multiple of 8 (sublane-dense stores)."""
    rows = h * w
    divs = [b for b in range(1, n + 1)
            if n % b == 0 and b * rows <= max_rows
            and (b == n or (b * rows) % 8 == 0)]
    if not divs:
        return n
    multi = [b for b in divs if (n // b) >= 2 and b * rows >= 256]
    return max(multi) if multi else max(divs)


# ----------------------------------------------------------------------------
# Conv 3x3 (pad=1) + bias + ReLU kernel.
# Grid: one program per batch block.  The input block is DENSE NHWC (no halo
# in HBM); the 1-px zero halo is built in a VMEM scratch, then 9 tap matmuls
# (K = Cin each) are accumulated in f32 (no materialized im2col patches).
# Output is a dense 2D (B*H*W, Cout) block (lane/sublane-dense stores).
# ----------------------------------------------------------------------------
def _conv3x3_relu_kernel(x_ref, w_ref, b_ref, o_ref, xp_ref):
    # x_ref : (B, H, W, Cin)      dense NHWC block, bf16
    # w_ref : (9, Cin, Cout)      per-tap weights [kh*3+kw], bf16
    # b_ref : (1, Cout)           f32
    # o_ref : (B*H*W, Cout)       dense output rows
    # xp_ref: (B, H+2, W+2, Cin)  VMEM scratch: zero-halo padded input
    B, H, W, Cin = x_ref.shape
    Cout = w_ref.shape[2]

    # Build the 1-pixel zero halo entirely in VMEM (no extra HBM pass).
    xp_ref[...] = jnp.zeros_like(xp_ref)
    xp_ref[:, 1:H + 1, 1:W + 1, :] = x_ref[...]

    # 9 tap matmuls accumulated in f32.
    acc = None
    for kh in range(3):
        for kw in range(3):
            tap = xp_ref[:, kh:kh + H, kw:kw + W, :].reshape(B * H * W, Cin)
            d = jnp.dot(tap, w_ref[kh * 3 + kw],
                        preferred_element_type=jnp.float32)
            acc = d if acc is None else acc + d

    acc = jnp.maximum(acc + b_ref[...], 0.0)          # bias + ReLU in f32
    o_ref[...] = acc.astype(o_ref.dtype)


def conv3x3_relu(x_nhwc, w3, b2, *, b_blk):
    """x_nhwc: (N,H,W,Cin) bf16 dense (Cin lane-padded), w3: (9,Cin,Cout) bf16,
    b2: (1,Cout) f32.  Returns (N*H*W, Cout) bf16 (dense row layout)."""
    N, H, W, Cin = x_nhwc.shape
    Cout = w3.shape[2]

    in_blk = b_blk * H * W * Cin * 2
    out_blk = b_blk * H * W * Cout * 2
    est = (5 * in_blk                      # 2x dbl-buffered input + halo scratch + tap temps
           + 2 * out_blk                   # dbl-buffered output
           + b_blk * H * W * Cout * 4      # f32 accumulator
           + 2 * 9 * Cin * Cout * 2        # dbl-buffered weights
           + Cout * 8)
    vmem_limit = int(max(32 * 1024 * 1024, est * 5 // 4))

    return pl.pallas_call(
        _conv3x3_relu_kernel,
        out_shape=jax.ShapeDtypeStruct((N * H * W, Cout), jnp.bfloat16),
        grid_spec=pltpu.PrefetchScalarGridSpec(
            num_scalar_prefetch=0,
            grid=(N // b_blk,),
            in_specs=[
                pl.BlockSpec((b_blk, H, W, Cin), lambda n: (n, 0, 0, 0)),
                pl.BlockSpec((9, Cin, Cout), lambda n: (0, 0, 0)),
                pl.BlockSpec((1, Cout), lambda n: (0, 0)),
            ],
            out_specs=pl.BlockSpec((b_blk * H * W, Cout), lambda n: (n, 0)),
            scratch_shapes=[pltpu.VMEM((b_blk, H + 2, W + 2, Cin),
                                       jnp.bfloat16)],
        ),
        compiler_params=pltpu.CompilerParams(
            dimension_semantics=("parallel",),
            vmem_limit_bytes=vmem_limit),
    )(x_nhwc, w3, b2)


# ----------------------------------------------------------------------------
# Tiled Linear + ReLU: y = relu(x @ W + b), W pre-transposed to (D, F).
# Grid (M/tm, F/tn, D/tk) with f32 VMEM accumulator; bf16 operands.
# ----------------------------------------------------------------------------
def _linear_relu_kernel(x_ref, w_ref, b_ref, o_ref, acc_ref):
    k = pl.program_id(2)

    @pl.when(k == 0)
    def _():
        acc_ref[...] = jnp.zeros_like(acc_ref)

    acc_ref[...] += jnp.dot(x_ref[...], w_ref[...],
                            preferred_element_type=jnp.float32)

    @pl.when(k == pl.num_programs(2) - 1)
    def _():
        o_ref[...] = jnp.maximum(acc_ref[...] + b_ref[...],
                                 0.0).astype(o_ref.dtype)


def linear_relu(x, wt, b2, out_dtype, *, tm_pref=512, tn_pref=1024,
                tk_pref=2048):
    """x: (M, D) bf16, wt: (D, F) bf16 (pre-transposed), b2: (1, F) f32."""
    M, D = x.shape
    F = wt.shape[1]
    tm = _pick_tile_m(M, tm_pref)     # >=2 M-tiles at real M (v7x megacore)
    tn = _pick_tile(F, tn_pref)       # full F when it fits
    tk = _pick_tile(D, tk_pref)       # e.g. 1792 at D=12544 -> few K-steps

    out_bytes = jnp.dtype(out_dtype).itemsize
    est = (2 * (tm * tk + tk * tn) * 2 + 2 * tm * tn * out_bytes
           + tm * tn * 4 + 2 * tn * 4)
    vmem_limit = int(max(32 * 1024 * 1024, est * 5 // 4))

    return pl.pallas_call(
        _linear_relu_kernel,
        out_shape=jax.ShapeDtypeStruct((M, F), out_dtype),
        grid_spec=pltpu.PrefetchScalarGridSpec(
            num_scalar_prefetch=0,
            grid=(M // tm, F // tn, D // tk),
            in_specs=[
                pl.BlockSpec((tm, tk), lambda i, j, k: (i, k)),
                pl.BlockSpec((tk, tn), lambda i, j, k: (k, j)),
                pl.BlockSpec((1, tn), lambda i, j, k: (0, j)),
            ],
            out_specs=pl.BlockSpec((tm, tn), lambda i, j, k: (i, j)),
            scratch_shapes=[pltpu.VMEM((tm, tn), jnp.float32)],
        ),
        compiler_params=pltpu.CompilerParams(
            dimension_semantics=("parallel", "parallel", "arbitrary"),
            vmem_limit_bytes=vmem_limit),
    )(x, wt, b2)


# ----------------------------------------------------------------------------
# One-time parameter preparation (trace-time, done once):
#   * zero-pad channel / feature dims to multiples of 128 (lane density)
#   * conv weights -> (9, Cin, Cout) per-tap slabs, bf16
#   * FC weights  -> pre-transposed (D, F) bf16; the FIRST FC weight's columns
#     are permuted from C-major (PyTorch NCHW flatten) to HWC-major so the
#     kernel can flatten NHWC directly (no exit transpose).
# ----------------------------------------------------------------------------
def prepare_params(conv_params_raw, fc_params_raw, input_shape):
    C, H, W = input_shape
    c_p = _round_up(C, 128)

    conv_prepped = []
    cin, cin_p = C, c_p
    for w_hwio, b in conv_params_raw:
        cout = w_hwio.shape[-1]
        cout_p = _round_up(cout, 128)
        wp = jnp.pad(w_hwio, ((0, 0), (0, 0), (0, cin_p - cin),
                              (0, cout_p - cout)))
        w3 = wp.reshape(9, cin_p, cout_p).astype(jnp.bfloat16)
        b2 = jnp.pad(b, (0, cout_p - cout)).astype(jnp.float32).reshape(1, cout_p)
        conv_prepped.append((w3, b2))
        cin, cin_p = cout, cout_p

    fc_prepped = []
    fc_out_dims = []
    if fc_params_raw:
        # First FC: fold the NCHW-flatten permutation into the weight columns.
        w0, b0 = fc_params_raw[0]
        f0 = w0.shape[0]
        f0_p = _round_up(f0, 128)
        w4 = w0.reshape(f0, cin, H, W).transpose(0, 2, 3, 1)       # (F, H, W, C)
        w4 = jnp.pad(w4, ((0, f0_p - f0), (0, 0), (0, 0), (0, cin_p - cin)))
        wt = jnp.transpose(w4.reshape(f0_p, H * W * cin_p)).astype(jnp.bfloat16)
        b2 = jnp.pad(b0, (0, f0_p - f0)).astype(jnp.float32).reshape(1, f0_p)
        fc_prepped.append((wt, b2))
        fc_out_dims.append(f0)
        fin, fin_p = f0, f0_p
        for w, b in fc_params_raw[1:]:
            f = w.shape[0]
            f_p = _round_up(f, 128)
            wp = jnp.pad(w, ((0, f_p - f), (0, fin_p - fin)))
            wt = wp.T.astype(jnp.bfloat16)
            b2 = jnp.pad(b, (0, f_p - f)).astype(jnp.float32).reshape(1, f_p)
            fc_prepped.append((wt, b2))
            fc_out_dims.append(f)
            fin, fin_p = f, f_p

    meta = {"last_conv_c": cin, "fc_out_dims": fc_out_dims}
    return conv_prepped, fc_prepped, meta


# ----------------------------------------------------------------------------
# Full head forward.
# ----------------------------------------------------------------------------
def fast_rcnn_conv_fc_head_forward(x_nchw, conv_params, fc_params, meta):
    """x_nchw: (N, C, H, W) f32. conv_params / fc_params from prepare_params."""
    N, C, H, W = x_nchw.shape
    c_p = _round_up(C, 128)

    # Single entry transform: NCHW -> NHWC + lane-pad channels + bf16.
    x = jnp.transpose(x_nchw, (0, 2, 3, 1))
    x = jnp.pad(x, ((0, 0), (0, 0), (0, 0), (0, c_p - C))).astype(jnp.bfloat16)

    if conv_params:
        b_blk = _pick_batch_block(N, H, W)
        for w3, b2 in conv_params:
            y2d = conv3x3_relu(x, w3, b2, b_blk=b_blk)   # (N*H*W, Cout_p)
            x = y2d.reshape(N, H, W, y2d.shape[1])       # free reshape

    if not fc_params:
        # Module output would be the last conv feature map, NCHW f32.
        c_real = meta["last_conv_c"]
        return jnp.transpose(x[..., :c_real].astype(jnp.float32), (0, 3, 1, 2))

    # Flatten in [h, w, c_padded] order (permutation already baked into fc1).
    x = x.reshape(N, -1)
    m_p = _round_up(N, 8)                                # sublane-dense rows
    if m_p != N:
        x = jnp.pad(x, ((0, m_p - N), (0, 0)))

    n_fc = len(fc_params)
    for i, (wt, b2) in enumerate(fc_params):
        out_dtype = jnp.float32 if i == n_fc - 1 else jnp.bfloat16
        x = linear_relu(x, wt, b2, out_dtype)
    return x[:N, : meta["fc_out_dims"][-1]]


# ----------------------------------------------------------------------------
# Pure-JAX reference (mirrors the kernel's bf16 rounding points) for checking.
# ----------------------------------------------------------------------------
def reference_forward(x_nchw, conv_params_raw, fc_params_raw):
    bf = jnp.bfloat16
    x = jnp.transpose(x_nchw, (0, 2, 3, 1)).astype(bf)
    for w_hwio, b in conv_params_raw:
        y = jax.lax.conv_general_dilated(
            x, w_hwio.astype(bf), window_strides=(1, 1), padding="SAME",
            dimension_numbers=("NHWC", "HWIO", "NHWC"),
            preferred_element_type=jnp.float32)
        x = jnp.maximum(y + b, 0.0).astype(bf)
    # PyTorch nn.Flatten on NCHW: C-major ordering.
    x = jnp.transpose(x.astype(jnp.float32), (0, 3, 1, 2)).reshape(x.shape[0], -1)
    for i, (w, b) in enumerate(fc_params_raw):
        y = jnp.dot(x.astype(bf), w.T.astype(bf),
                    preferred_element_type=jnp.float32) + b
        x = jnp.maximum(y, 0.0)
        if i != len(fc_params_raw) - 1:
            x = x.astype(bf).astype(jnp.float32)
    return x


if __name__ == "__main__":
    # Small config consistent with the module: 2 convs, 2 fcs.
    N, C, H, W = 2, 4, 16, 16
    conv_dims = [8, 8]
    fc_dims = [32, 32]

    key = jax.random.PRNGKey(0)

    # Deterministic synthetic parameters (conv weights generated directly in
    # HWIO; c2_msra_fill / c2_xavier_fill approximated with scaled normals).
    conv_raw = []
    cin = C
    for cout in conv_dims:
        key, kw_, kb_ = jax.random.split(key, 3)
        fan_in = cin * 9
        w = jax.random.normal(kw_, (3, 3, cin, cout), jnp.float32) * (2.0 / fan_in) ** 0.5
        b = jax.random.normal(kb_, (cout,), jnp.float32) * 0.01
        conv_raw.append((w, b))
        cin = cout

    fc_raw = []
    din = cin * H * W
    for fdim in fc_dims:
        key, kw_, kb_ = jax.random.split(key, 3)
        w = jax.random.normal(kw_, (fdim, din), jnp.float32) * (1.0 / din) ** 0.5
        b = jax.random.normal(kb_, (fdim,), jnp.float32) * 0.01
        fc_raw.append((w, b))
        din = fdim

    key, kx = jax.random.split(key)
    x = jax.random.normal(kx, (N, C, H, W), jnp.float32)

    conv_p, fc_p, meta = prepare_params(conv_raw, fc_raw, (C, H, W))

    fwd = jax.jit(lambda xx: fast_rcnn_conv_fc_head_forward(xx, conv_p, fc_p, meta))
    out = jax.block_until_ready(fwd(x))

    ref = reference_forward(x, conv_raw, fc_raw)
    assert out.shape == (N, fc_dims[-1]), out.shape
    assert jnp.allclose(out, ref, rtol=1e-2, atol=1e-2), (
        "mismatch vs reference, max abs err = %g"
        % float(jnp.max(jnp.abs(out - jnp.asarray(ref)))))

    print("KERNEL_OK")
</pallas_src>

<mosaic_0001>
module attributes {stable_mosaic.version = 11 : i64} {
  func.func @_conv3x3_relu_kernel(%arg0: i32, %arg1: memref<1x16x16x128xbf16, #tpu.memory_space<vmem>>, %arg2: memref<9x128x128xbf16, #tpu.memory_space<vmem>>, %arg3: memref<1x128xf32, #tpu.memory_space<vmem>>, %arg4: memref<256x128xbf16, #tpu.memory_space<vmem>>, %arg5: memref<1x18x18x128xbf16, #tpu.memory_space<vmem>>) attributes {dimension_semantics = [#tpu.dimension_semantics<parallel>], iteration_bounds = array<i64: 2>, scalar_prefetch = 0 : i64, scratch_operands = 1 : i64, tpu.core_type = #tpu.core_type<tc>, window_params = [{transform_indices = @transform_0, window_bounds = array<i64: 1, 16, 16, 128>}, {pipeline_mode = #tpu.pipeline_mode<synchronous>, transform_indices = @transform_1, window_bounds = array<i64: 9, 128, 128>}, {pipeline_mode = #tpu.pipeline_mode<synchronous>, transform_indices = @transform_2, window_bounds = array<i64: 1, 128>}, {transform_indices = @transform_3, window_bounds = array<i64: 256, 128>}]} {
    %cst = arith.constant 0.000000e+00 : bf16
    %0 = vector.broadcast %cst : bf16 to vector<1x18x18x128xbf16>
    %c0 = arith.constant 0 : index
    %c0_0 = arith.constant 0 : index
    %c0_1 = arith.constant 0 : index
    %c0_2 = arith.constant 0 : index
    %1 = vector.load %arg5[%c0, %c0_0, %c0_1, %c0_2] : memref<1x18x18x128xbf16, #tpu.memory_space<vmem>>, vector<1x18x18x128xbf16>
    tpu.vector_store %arg5[%c0, %c0_0, %c0_1, %c0_2], %0 {strides = array<i32>} : memref<1x18x18x128xbf16, #tpu.memory_space<vmem>>, vector<1x18x18x128xbf16>,
    %c0_3 = arith.constant 0 : index
    %c0_4 = arith.constant 0 : index
    %c0_5 = arith.constant 0 : index
    %c0_6 = arith.constant 0 : index
    %2 = vector.load %arg1[%c0_3, %c0_4, %c0_5, %c0_6] : memref<1x16x16x128xbf16, #tpu.memory_space<vmem>>, vector<1x16x16x128xbf16>
    %c0_7 = arith.constant 0 : index
    %c1 = arith.constant 1 : index
    %c1_8 = arith.constant 1 : index
    %c0_9 = arith.constant 0 : index
    %3 = vector.load %arg5[%c0_7, %c1, %c1_8, %c0_9] : memref<1x18x18x128xbf16, #tpu.memory_space<vmem>>, vector<1x16x16x128xbf16>
    tpu.vector_store %arg5[%c0_7, %c1, %c1_8, %c0_9], %2 {strides = array<i32>} : memref<1x18x18x128xbf16, #tpu.memory_space<vmem>>, vector<1x16x16x128xbf16>,
    %c0_10 = arith.constant 0 : index
    %c0_11 = arith.constant 0 : index
    %c0_12 = arith.constant 0 : index
    %c0_13 = arith.constant 0 : index
    %4 = vector.load %arg5[%c0_10, %c0_11, %c0_12, %c0_13] : memref<1x18x18x128xbf16, #tpu.memory_space<vmem>>, vector<1x16x16x128xbf16>
    %5 = vector.shape_cast %4 : vector<1x16x16x128xbf16> to vector<256x128xbf16>
    %c0_14 = arith.constant 0 : index
    %c0_15 = arith.constant 0 : index
    %c0_16 = arith.constant 0 : index
    %6 = vector.load %arg2[%c0_14, %c0_15, %c0_16] : memref<9x128x128xbf16, #tpu.memory_space<vmem>>, vector<1x128x128xbf16>
    %7 = vector.shape_cast %6 : vector<1x128x128xbf16> to vector<128x128xbf16>
    %cst_17 = arith.constant dense<0.000000e+00> : vector<256x128xf32>
    %8 = tpu.matmul %5, %7, %cst_17 {dimension_numbers = #tpu.dot_dimension_numbers<[1], [0], [0], [1], [0, 0, 1, 1], [], []>} : vector<256x128xbf16>, vector<128x128xbf16>, vector<256x128xf32> -> vector<256x128xf32>
    %c0_18 = arith.constant 0 : index
    %c0_19 = arith.constant 0 : index
    %c1_20 = arith.constant 1 : index
    %c0_21 = arith.constant 0 : index
    %9 = vector.load %arg5[%c0_18, %c0_19, %c1_20, %c0_21] : memref<1x18x18x128xbf16, #tpu.memory_space<vmem>>, vector<1x16x16x128xbf16>
    %10 = vector.shape_cast %9 : vector<1x16x16x128xbf16> to vector<256x128xbf16>
    %c1_22 = arith.constant 1 : index
    %c0_23 = arith.constant 0 : index
    %c0_24 = arith.constant 0 : index
    %11 = vector.load %arg2[%c1_22, %c0_23, %c0_24] : memref<9x128x128xbf16, #tpu.memory_space<vmem>>, vector<1x128x128xbf16>
    %12 = vector.shape_cast %11 : vector<1x128x128xbf16> to vector<128x128xbf16>
    %cst_25 = arith.constant dense<0.000000e+00> : vector<256x128xf32>
    %13 = tpu.matmul %10, %12, %cst_25 {dimension_numbers = #tpu.dot_dimension_numbers<[1], [0], [0], [1], [0, 0, 1, 1], [], []>} : vector<256x128xbf16>, vector<128x128xbf16>, vector<256x128xf32> -> vector<256x128xf32>
    %14 = arith.addf %8, %13 : vector<256x128xf32>
    %c0_26 = arith.constant 0 : index
    %c0_27 = arith.constant 0 : index
    %c2 = arith.constant 2 : index
    %c0_28 = arith.constant 0 : index
    %15 = vector.load %arg5[%c0_26, %c0_27, %c2, %c0_28] : memref<1x18x18x128xbf16, #tpu.memory_space<vmem>>, vector<1x16x16x128xbf16>
    %16 = vector.shape_cast %15 : vector<1x16x16x128xbf16> to vector<256x128xbf16>
    %c2_29 = arith.constant 2 : index
    %c0_30 = arith.constant 0 : index
    %c0_31 = arith.constant 0 : index
    %17 = vector.load %arg2[%c2_29, %c0_30, %c0_31] : memref<9x128x128xbf16, #tpu.memory_space<vmem>>, vector<1x128x128xbf16>
    %18 = vector.shape_cast %17 : vector<1x128x128xbf16> to vector<128x128xbf16>
    %cst_32 = arith.constant dense<0.000000e+00> : vector<256x128xf32>
    %19 = tpu.matmul %16, %18, %cst_32 {dimension_numbers = #tpu.dot_dimension_numbers<[1], [0], [0], [1], [0, 0, 1, 1], [], []>} : vector<256x128xbf16>, vector<128x128xbf16>, vector<256x128xf32> -> vector<256x128xf32>
    %20 = arith.addf %14, %19 : vector<256x128xf32>
    %c0_33 = arith.constant 0 : index
    %c1_34 = arith.constant 1 : index
    %c0_35 = arith.constant 0 : index
    %c0_36 = arith.constant 0 : index
    %21 = vector.load %arg5[%c0_33, %c1_34, %c0_35, %c0_36] : memref<1x18x18x128xbf16, #tpu.memory_space<vmem>>, vector<1x16x16x128xbf16>
    %22 = vector.shape_cast %21 : vector<1x16x16x128xbf16> to vector<256x128xbf16>
    %c3 = arith.constant 3 : index
    %c0_37 = arith.constant 0 : index
    %c0_38 = arith.constant 0 : index
    %23 = vector.load %arg2[%c3, %c0_37, %c0_38] : memref<9x128x128xbf16, #tpu.memory_space<vmem>>, vector<1x128x128xbf16>
    %24 = vector.shape_cast %23 : vector<1x128x128xbf16> to vector<128x128xbf16>
    %cst_39 = arith.constant dense<0.000000e+00> : vector<256x128xf32>
    %25 = tpu.matmul %22, %24, %cst_39 {dimension_numbers = #tpu.dot_dimension_numbers<[1], [0], [0], [1], [0, 0, 1, 1], [], []>} : vector<256x128xbf16>, vector<128x128xbf16>, vector<256x128xf32> -> vector<256x128xf32>
    %26 = arith.addf %20, %25 : vector<256x128xf32>
    %c0_40 = arith.constant 0 : index
    %c1_41 = arith.constant 1 : index
    %c1_42 = arith.constant 1 : index
    %c0_43 = arith.constant 0 : index
    %27 = vector.load %arg5[%c0_40, %c1_41, %c1_42, %c0_43] : memref<1x18x18x128xbf16, #tpu.memory_space<vmem>>, vector<1x16x16x128xbf16>
    %28 = vector.shape_cast %27 : vector<1x16x16x128xbf16> to vector<256x128xbf16>
    %c4 = arith.constant 4 : index
    %c0_44 = arith.constant 0 : index
    %c0_45 = arith.constant 0 : index
    %29 = vector.load %arg2[%c4, %c0_44, %c0_45] : memref<9x128x128xbf16, #tpu.memory_space<vmem>>, vector<1x128x128xbf16>
    %30 = vector.shape_cast %29 : vector<1x128x128xbf16> to vector<128x128xbf16>
    %cst_46 = arith.constant dense<0.000000e+00> : vector<256x128xf32>
    %31 = tpu.matmul %28, %30, %cst_46 {dimension_numbers = #tpu.dot_dimension_numbers<[1], [0], [0], [1], [0, 0, 1, 1], [], []>} : vector<256x128xbf16>, vector<128x128xbf16>, vector<256x128xf32> -> vector<256x128xf32>
    %32 = arith.addf %26, %31 : vector<256x128xf32>
    %c0_47 = arith.constant 0 : index
    %c1_48 = arith.constant 1 : index
    %c2_49 = arith.constant 2 : index
    %c0_50 = arith.constant 0 : index
    %33 = vector.load %arg5[%c0_47, %c1_48, %c2_49, %c0_50] : memref<1x18x18x128xbf16, #tpu.memory_space<vmem>>, vector<1x16x16x128xbf16>
    %34 = vector.shape_cast %33 : vector<1x16x16x128xbf16> to vector<256x128xbf16>
    %c5 = arith.constant 5 : index
    %c0_51 = arith.constant 0 : index
    %c0_52 = arith.constant 0 : index
    %35 = vector.load %arg2[%c5, %c0_51, %c0_52] : memref<9x128x128xbf16, #tpu.memory_space<vmem>>, vector<1x128x128xbf16>
    %36 = vector.shape_cast %35 : vector<1x128x128xbf16> to vector<128x128xbf16>
    %cst_53 = arith.constant dense<0.000000e+00> : vector<256x128xf32>
    %37 = tpu.matmul %34, %36, %cst_53 {dimension_numbers = #tpu.dot_dimension_numbers<[1], [0], [0], [1], [0, 0, 1, 1], [], []>} : vector<256x128xbf16>, vector<128x128xbf16>, vector<256x128xf32> -> vector<256x128xf32>
    %38 = arith.addf %32, %37 : vector<256x128xf32>
    %c0_54 = arith.constant 0 : index
    %c2_55 = arith.constant 2 : index
    %c0_56 = arith.constant 0 : index
    %c0_57 = arith.constant 0 : index
    %39 = vector.load %arg5[%c0_54, %c2_55, %c0_56, %c0_57] : memref<1x18x18x128xbf16, #tpu.memory_space<vmem>>, vector<1x16x16x128xbf16>
    %40 = vector.shape_cast %39 : vector<1x16x16x128xbf16> to vector<256x128xbf16>
    %c6 = arith.constant 6 : index
    %c0_58 = arith.constant 0 : index
    %c0_59 = arith.constant 0 : index
    %41 = vector.load %arg2[%c6, %c0_58, %c0_59] : memref<9x128x128xbf16, #tpu.memory_space<vmem>>, vector<1x128x128xbf16>
    %42 = vector.shape_cast %41 : vector<1x128x128xbf16> to vector<128x128xbf16>
    %cst_60 = arith.constant dense<0.000000e+00> : vector<256x128xf32>
    %43 = tpu.matmul %40, %42, %cst_60 {dimension_numbers = #tpu.dot_dimension_numbers<[1], [0], [0], [1], [0, 0, 1, 1], [], []>} : vector<256x128xbf16>, vector<128x128xbf16>, vector<256x128xf32> -> vector<256x128xf32>
    %44 = arith.addf %38, %43 : vector<256x128xf32>
    %c0_61 = arith.constant 0 : index
    %c2_62 = arith.constant 2 : index
    %c1_63 = arith.constant 1 : index
    %c0_64 = arith.constant 0 : index
    %45 = vector.load %arg5[%c0_61, %c2_62, %c1_63, %c0_64] : memref<1x18x18x128xbf16, #tpu.memory_space<vmem>>, vector<1x16x16x128xbf16>
    %46 = vector.shape_cast %45 : vector<1x16x16x128xbf16> to vector<256x128xbf16>
    %c7 = arith.constant 7 : index
    %c0_65 = arith.constant 0 : index
    %c0_66 = arith.constant 0 : index
    %47 = vector.load %arg2[%c7, %c0_65, %c0_66] : memref<9x128x128xbf16, #tpu.memory_space<vmem>>, vector<1x128x128xbf16>
    %48 = vector.shape_cast %47 : vector<1x128x128xbf16> to vector<128x128xbf16>
    %cst_67 = arith.constant dense<0.000000e+00> : vector<256x128xf32>
    %49 = tpu.matmul %46, %48, %cst_67 {dimension_numbers = #tpu.dot_dimension_numbers<[1], [0], [0], [1], [0, 0, 1, 1], [], []>} : vector<256x128xbf16>, vector<128x128xbf16>, vector<256x128xf32> -> vector<256x128xf32>
    %50 = arith.addf %44, %49 : vector<256x128xf32>
    %c0_68 = arith.constant 0 : index
    %c2_69 = arith.constant 2 : index
    %c2_70 = arith.constant 2 : index
    %c0_71 = arith.constant 0 : index
    %51 = vector.load %arg5[%c0_68, %c2_69, %c2_70, %c0_71] : memref<1x18x18x128xbf16, #tpu.memory_space<vmem>>, vector<1x16x16x128xbf16>
    %52 = vector.shape_cast %51 : vector<1x16x16x128xbf16> to vector<256x128xbf16>
    %c8 = arith.constant 8 : index
    %c0_72 = arith.constant 0 : index
    %c0_73 = arith.constant 0 : index
    %53 = vector.load %arg2[%c8, %c0_72, %c0_73] : memref<9x128x128xbf16, #tpu.memory_space<vmem>>, vector<1x128x128xbf16>
    %54 = vector.shape_cast %53 : vector<1x128x128xbf16> to vector<128x128xbf16>
    %cst_74 = arith.constant dense<0.000000e+00> : vector<256x128xf32>
    %55 = tpu.matmul %52, %54, %cst_74 {dimension_numbers = #tpu.dot_dimension_numbers<[1], [0], [0], [1], [0, 0, 1, 1], [], []>} : vector<256x128xbf16>, vector<128x128xbf16>, vector<256x128xf32> -> vector<256x128xf32>
    %56 = arith.addf %50, %55 : vector<256x128xf32>
    %c0_75 = arith.constant 0 : index
    %c0_76 = arith.constant 0 : index
    %57 = vector.load %arg3[%c0_75, %c0_76] : memref<1x128xf32, #tpu.memory_space<vmem>>, vector<1x128xf32>
    %58 = vector.broadcast %57 : vector<1x128xf32> to vector<256x128xf32>
    %59 = arith.addf %56, %58 : vector<256x128xf32>
    %cst_77 = arith.constant 0.000000e+00 : f32
    %60 = vector.broadcast %cst_77 : f32 to vector<256x128xf32>
    %61 = arith.maximumf %59, %60 : vector<256x128xf32>
    %62 = arith.truncf %61 : vector<256x128xf32> to vector<256x128xbf16>
    %c0_78 = arith.constant 0 : index
    %c0_79 = arith.constant 0 : index
    %63 = vector.load %arg4[%c0_78, %c0_79] : memref<256x128xbf16, #tpu.memory_space<vmem>>, vector<256x128xbf16>
    tpu.vector_store %arg4[%c0_78, %c0_79], %62 {strides = array<i32>} : memref<256x128xbf16, #tpu.memory_space<vmem>>, vector<256x128xbf16>,
    return
  }
  func.func @transform_0(%arg0: i32) -> (i32, i32, i32, i32) {
    %c0_i32 = arith.constant 0 : i32
    %c0_i32_0 = arith.constant 0 : i32
    %c0_i32_1 = arith.constant 0 : i32
    %c0_i32_2 = arith.constant 0 : i32
    return %arg0, %c0_i32, %c0_i32_0, %c0_i32_1 : i32, i32, i32, i32
  }
  func.func @transform_1(%arg0: i32) -> (i32, i32, i32) {
    %c0_i32 = arith.constant 0 : i32
    %c0_i32_0 = arith.constant 0 : i32
    %c0_i32_1 = arith.constant 0 : i32
    %c0_i32_2 = arith.constant 0 : i32
    return %c0_i32, %c0_i32_0, %c0_i32_1 : i32, i32, i32
  }
  func.func @transform_2(%arg0: i32) -> (i32, i32) {
    %c0_i32 = arith.constant 0 : i32
    %c0_i32_0 = arith.constant 0 : i32
    %c0_i32_1 = arith.constant 0 : i32
    return %c0_i32, %c0_i32_0 : i32, i32
  }
  func.func @transform_3(%arg0: i32) -> (i32, i32) {
    %c0_i32 = arith.constant 0 : i32
    %c0_i32_0 = arith.constant 0 : i32
    return %arg0, %c0_i32 : i32, i32
  }
}

module attributes {stable_mosaic.version = 11 : i64} {
  func.func @_linear_relu_kernel(%arg0: i32, %arg1: i32, %arg2: i32, %arg3: memref<8x2048xbf16, #tpu.memory_space<vmem>>, %arg4: memref<2048x128xbf16, #tpu.memory_space<vmem>>, %arg5: memref<1x128xf32, #tpu.memory_space<vmem>>, %arg6: memref<8x128xbf16, #tpu.memory_space<vmem>>, %arg7: memref<8x128xf32, #tpu.memory_space<vmem>>) attributes {dimension_semantics = [#tpu.dimension_semantics<parallel>, #tpu.dimension_semantics<parallel>, #tpu.dimension_semantics<arbitrary>], iteration_bounds = array<i64: 1, 1, 16>, scalar_prefetch = 0 : i64, scratch_operands = 1 : i64, tpu.core_type = #tpu.core_type<tc>, window_params = [{transform_indices = @transform_0, window_bounds = array<i64: 8, 2048>}, {transform_indices = @transform_1, window_bounds = array<i64: 2048, 128>}, {transform_indices = @transform_2, window_bounds = array<i64: 1, 128>}, {transform_indices = @transform_3, window_bounds = array<i64: 8, 128>}]} {
    %c0_i32 = arith.constant 0 : i32
    %0 = arith.cmpi eq, %arg2, %c0_i32 : i32
    %1 = arith.extui %0 : i1 to i32
    %c0_i32_0 = arith.constant 0 : i32
    %2 = arith.cmpi ne, %1, %c0_i32_0 : i32
    scf.if %2 {
      %cst_9 = arith.constant 0.000000e+00 : f32
      %12 = vector.broadcast %cst_9 : f32 to vector<8x128xf32>
      %c0_10 = arith.constant 0 : index
      %c0_11 = arith.constant 0 : index
      %13 = vector.load %arg7[%c0_10, %c0_11] : memref<8x128xf32, #tpu.memory_space<vmem>>, vector<8x128xf32>
      tpu.vector_store %arg7[%c0_10, %c0_11], %12 {strides = array<i32>} : memref<8x128xf32, #tpu.memory_space<vmem>>, vector<8x128xf32>,
    } else {
    }
    %c0 = arith.constant 0 : index
    %c0_1 = arith.constant 0 : index
    %3 = vector.load %arg7[%c0, %c0_1] : memref<8x128xf32, #tpu.memory_space<vmem>>, vector<8x128xf32>
    %c0_2 = arith.constant 0 : index
    %c0_3 = arith.constant 0 : index
    %4 = vector.load %arg3[%c0_2, %c0_3] : memref<8x2048xbf16, #tpu.memory_space<vmem>>, vector<8x2048xbf16>
    %c0_4 = arith.constant 0 : index
    %c0_5 = arith.constant 0 : index
    %5 = vector.load %arg4[%c0_4, %c0_5] : memref<2048x128xbf16, #tpu.memory_space<vmem>>, vector<2048x128xbf16>
    %cst = arith.constant dense<0.000000e+00> : vector<8x128xf32>
    %6 = tpu.matmul %4, %5, %cst {dimension_numbers = #tpu.dot_dimension_numbers<[1], [0], [0], [1], [0, 0, 1, 1], [], []>} : vector<8x2048xbf16>, vector<2048x128xbf16>, vector<8x128xf32> -> vector<8x128xf32>
    %7 = arith.addf %3, %6 : vector<8x128xf32>
    %c0_6 = arith.constant 0 : index
    %c0_7 = arith.constant 0 : index
    %8 = vector.load %arg7[%c0_6, %c0_7] : memref<8x128xf32, #tpu.memory_space<vmem>>, vector<8x128xf32>
    tpu.vector_store %arg7[%c0_6, %c0_7], %7 {strides = array<i32>} : memref<8x128xf32, #tpu.memory_space<vmem>>, vector<8x128xf32>,
    %c15_i32 = arith.constant 15 : i32
    %9 = arith.cmpi eq, %arg2, %c15_i32 : i32
    %10 = arith.extui %9 : i1 to i32
    %c0_i32_8 = arith.constant 0 : i32
    %11 = arith.cmpi ne, %10, %c0_i32_8 : i32
    scf.if %11 {
      %c0_9 = arith.constant 0 : index
      %c0_10 = arith.constant 0 : index
      %12 = vector.load %arg7[%c0_9, %c0_10] : memref<8x128xf32, #tpu.memory_space<vmem>>, vector<8x128xf32>
      %c0_11 = arith.constant 0 : index
      %c0_12 = arith.constant 0 : index
      %13 = vector.load %arg5[%c0_11, %c0_12] : memref<1x128xf32, #tpu.memory_space<vmem>>, vector<1x128xf32>
      %14 = vector.broadcast %13 : vector<1x128xf32> to vector<8x128xf32>
      %15 = arith.addf %12, %14 : vector<8x128xf32>
      %cst_13 = arith.constant 0.000000e+00 : f32
      %16 = vector.broadcast %cst_13 : f32 to vector<8x128xf32>
      %17 = arith.maximumf %15, %16 : vector<8x128xf32>
      %18 = arith.truncf %17 : vector<8x128xf32> to vector<8x128xbf16>
      %c0_14 = arith.constant 0 : index
      %c0_15 = arith.constant 0 : index
      %19 = vector.load %arg6[%c0_14, %c0_15] : memref<8x128xbf16, #tpu.memory_space<vmem>>, vector<8x128xbf16>
      tpu.vector_store %arg6[%c0_14, %c0_15], %18 {strides = array<i32>} : memref<8x128xbf16, #tpu.memory_space<vmem>>, vector<8x128xbf16>,
    } else {
    }
    return
  }
  func.func @transform_0(%arg0: i32, %arg1: i32, %arg2: i32) -> (i32, i32) {
    %c0_i32 = arith.constant 0 : i32
    return %arg0, %arg2 : i32, i32
  }
  func.func @transform_1(%arg0: i32, %arg1: i32, %arg2: i32) -> (i32, i32) {
    %c0_i32 = arith.constant 0 : i32
    return %arg2, %arg1 : i32, i32
  }
  func.func @transform_2(%arg0: i32, %arg1: i32, %arg2: i32) -> (i32, i32) {
    %c0_i32 = arith.constant 0 : i32
    %c0_i32_0 = arith.constant 0 : i32
    return %c0_i32, %arg1 : i32, i32
  }
  func.func @transform_3(%arg0: i32, %arg1: i32, %arg2: i32) -> (i32, i32) {
    %c0_i32 = arith.constant 0 : i32
    return %arg0, %arg1 : i32, i32
  }
}

module attributes {stable_mosaic.version = 11 : i64} {
  func.func @_linear_relu_kernel(%arg0: i32, %arg1: i32, %arg2: i32, %arg3: memref<8x128xbf16, #tpu.memory_space<vmem>>, %arg4: memref<128x128xbf16, #tpu.memory_space<vmem>>, %arg5: memref<1x128xf32, #tpu.memory_space<vmem>>, %arg6: memref<8x128xf32, #tpu.memory_space<vmem>>, %arg7: memref<8x128xf32, #tpu.memory_space<vmem>>) attributes {dimension_semantics = [#tpu.dimension_semantics<parallel>, #tpu.dimension_semantics<parallel>, #tpu.dimension_semantics<arbitrary>], iteration_bounds = array<i64: 1, 1, 1>, scalar_prefetch = 0 : i64, scratch_operands = 1 : i64, tpu.core_type = #tpu.core_type<tc>, window_params = [{transform_indices = @transform_0, window_bounds = array<i64: 8, 128>}, {transform_indices = @transform_1, window_bounds = array<i64: 128, 128>}, {transform_indices = @transform_2, window_bounds = array<i64: 1, 128>}, {transform_indices = @transform_3, window_bounds = array<i64: 8, 128>}]} {
    %c0_i32 = arith.constant 0 : i32
    %0 = arith.cmpi eq, %arg2, %c0_i32 : i32
    %1 = arith.extui %0 : i1 to i32
    %c0_i32_0 = arith.constant 0 : i32
    %2 = arith.cmpi ne, %1, %c0_i32_0 : i32
    scf.if %2 {
      %cst_10 = arith.constant 0.000000e+00 : f32
      %12 = vector.broadcast %cst_10 : f32 to vector<8x128xf32>
      %c0_11 = arith.constant 0 : index
      %c0_12 = arith.constant 0 : index
      %13 = vector.load %arg7[%c0_11, %c0_12] : memref<8x128xf32, #tpu.memory_space<vmem>>, vector<8x128xf32>
      tpu.vector_store %arg7[%c0_11, %c0_12], %12 {strides = array<i32>} : memref<8x128xf32, #tpu.memory_space<vmem>>, vector<8x128xf32>,
    } else {
    }
    %c0 = arith.constant 0 : index
    %c0_1 = arith.constant 0 : index
    %3 = vector.load %arg7[%c0, %c0_1] : memref<8x128xf32, #tpu.memory_space<vmem>>, vector<8x128xf32>
    %c0_2 = arith.constant 0 : index
    %c0_3 = arith.constant 0 : index
    %4 = vector.load %arg3[%c0_2, %c0_3] : memref<8x128xbf16, #tpu.memory_space<vmem>>, vector<8x128xbf16>
    %c0_4 = arith.constant 0 : index
    %c0_5 = arith.constant 0 : index
    %5 = vector.load %arg4[%c0_4, %c0_5] : memref<128x128xbf16, #tpu.memory_space<vmem>>, vector<128x128xbf16>
    %cst = arith.constant dense<0.000000e+00> : vector<8x128xf32>
    %6 = tpu.matmul %4, %5, %cst {dimension_numbers = #tpu.dot_dimension_numbers<[1], [0], [0], [1], [0, 0, 1, 1], [], []>} : vector<8x128xbf16>, vector<128x128xbf16>, vector<8x128xf32> -> vector<8x128xf32>
    %7 = arith.addf %3, %6 : vector<8x128xf32>
    %c0_6 = arith.constant 0 : index
    %c0_7 = arith.constant 0 : index
    %8 = vector.load %arg7[%c0_6, %c0_7] : memref<8x128xf32, #tpu.memory_space<vmem>>, vector<8x128xf32>
    tpu.vector_store %arg7[%c0_6, %c0_7], %7 {strides = array<i32>} : memref<8x128xf32, #tpu.memory_space<vmem>>, vector<8x128xf32>,
    %c0_i32_8 = arith.constant 0 : i32
    %9 = arith.cmpi eq, %arg2, %c0_i32_8 : i32
    %10 = arith.extui %9 : i1 to i32
    %c0_i32_9 = arith.constant 0 : i32
    %11 = arith.cmpi ne, %10, %c0_i32_9 : i32
    scf.if %11 {
      %c0_10 = arith.constant 0 : index
      %c0_11 = arith.constant 0 : index
      %12 = vector.load %arg7[%c0_10, %c0_11] : memref<8x128xf32, #tpu.memory_space<vmem>>, vector<8x128xf32>
      %c0_12 = arith.constant 0 : index
      %c0_13 = arith.constant 0 : index
      %13 = vector.load %arg5[%c0_12, %c0_13] : memref<1x128xf32, #tpu.memory_space<vmem>>, vector<1x128xf32>
      %14 = vector.broadcast %13 : vector<1x128xf32> to vector<8x128xf32>
      %15 = arith.addf %12, %14 : vector<8x128xf32>
      %cst_14 = arith.constant 0.000000e+00 : f32
      %16 = vector.broadcast %cst_14 : f32 to vector<8x128xf32>
      %17 = arith.maximumf %15, %16 : vector<8x128xf32>
      %c0_15 = arith.constant 0 : index
      %c0_16 = arith.constant 0 : index
      %18 = vector.load %arg6[%c0_15, %c0_16] : memref<8x128xf32, #tpu.memory_space<vmem>>, vector<8x128xf32>
      tpu.vector_store %arg6[%c0_15, %c0_16], %17 {strides = array<i32>} : memref<8x128xf32, #tpu.memory_space<vmem>>, vector<8x128xf32>,
    } else {
    }
    return
  }
  func.func @transform_0(%arg0: i32, %arg1: i32, %arg2: i32) -> (i32, i32) {
    %c0_i32 = arith.constant 0 : i32
    return %arg0, %arg2 : i32, i32
  }
  func.func @transform_1(%arg0: i32, %arg1: i32, %arg2: i32) -> (i32, i32) {
    %c0_i32 = arith.constant 0 : i32
    return %arg2, %arg1 : i32, i32
  }
  func.func @transform_2(%arg0: i32, %arg1: i32, %arg2: i32) -> (i32, i32) {
    %c0_i32 = arith.constant 0 : i32
    %c0_i32_0 = arith.constant 0 : i32
    return %c0_i32, %arg1 : i32, i32
  }
  func.func @transform_3(%arg0: i32, %arg1: i32, %arg2: i32) -> (i32, i32) {
    %c0_i32 = arith.constant 0 : i32
    return %arg0, %arg1 : i32, i32
  }
}

</mosaic_0001>

<bundles_post_ra>
// kernel: _lambda_.7
= control target key start
LH: loop header
LB: loop body
LE: loop exit
PB: predicated region body
PF: predicated region fallthrough
CT: control target
= control target key end

     0   :  { %v194_v0 = vmov 0.0   ;;  %vm195_vm0 = vmmov 0   ;;  %s249_s1 = inlined_call_operand.vmem [shape: bf16[128,128], index: 1, kind: input, shape index: {}]   ;;  %s250_s0 = inlined_call_operand.vmem [shape: bf16[8,128], index: 0, kind: input, shape index: {}]   ;;  %s251_s2 = inlined_call_operand.vmem [shape: f32[1,128], index: 2, kind: input, shape index: {}]   ;;  %s252_s3 = inlined_call_operand.vmem [shape: f32[8,128], index: 3, kind: output, shape index: {}]  }
   0x1   :  { %164 = vmatprep.subr.bf16.mxu0 %v194_v0  ;;  %v186_v1 = vld [vmem:[%s249_s1] sm:$0xff]   ;;  %180 = vmatprep.mubr.msk.bf16.mxu0 %vm195_vm0, %v194_v0  ;;  %v187_v2 = vld [vmem:[%s249_s1 + $0x8] sm:$0xff]   ;;  %v188_v3 = vld [vmem:[%s249_s1 + $0x10] sm:$0xff]  }
   0x2   :  { %165 = vmatpush3.bf16.msra.mxu0 %v186_v1  ;;  %v189_v4 = vld [vmem:[%s249_s1 + $0x18] sm:$0xff]   ;;  %v190_v5 = vld [vmem:[%s249_s1 + $0x20] sm:$0xff]   ;;  %v191_v6 = vld [vmem:[%s249_s1 + $0x28] sm:$0xff]  }
   0x3   :  { %166 = vmatprep.subr.bf16.mxu0 %v194_v0  ;;  %v192_v7 = vld [vmem:[%s249_s1 + $0x30] sm:$0xff]   ;;  %v193_v8 = vld [vmem:[%s249_s1 + $0x38] sm:$0xff]   ;;  %v21_v9 = vld [vmem:[%s250_s0] sm:$0xf] }
   0x4   :  { %v154_v10 = vld [vmem:[%s251_s2] ss:$0 sm:$0xff] }
   0x6   :  { %167 = vmatpush3.bf16.msra.mxu0 %v187_v2 }
   0x7   :  { %168 = vmatprep.subr.bf16.mxu0 %v194_v0 }
   0xa   :  { %169 = vmatpush3.bf16.msra.mxu0 %v188_v3 }
   0xb   :  { %170 = vmatprep.subr.bf16.mxu0 %v194_v0 }
   0xe   :  { %171 = vmatpush3.bf16.msra.mxu0 %v189_v4 }
   0xf   :  { %172 = vmatprep.subr.bf16.mxu0 %v194_v0 }
  0x12   :  { %173 = vmatpush3.bf16.msra.mxu0 %v190_v5 }
  0x13   :  { %174 = vmatprep.subr.bf16.mxu0 %v194_v0 }
  0x16   :  { %175 = vmatpush3.bf16.msra.mxu0 %v191_v6 }
  0x17   :  { %176 = vmatprep.subr.bf16.mxu0 %v194_v0 }
  0x1a   :  { %177 = vmatpush3.bf16.msra.mxu0 %v192_v7 }
  0x1b   :  { %178 = vmatprep.subr.bf16.mxu0 %v194_v0 }
  0x1e   :  { %179 = vmatpush3.bf16.msra.mxu0 %v193_v8 }
  0x21   :  { %181 = vmatmul.mubr.bf16.vlgmr.msra.gmra.mrb[0].mxu0 %v21_v9 }
  0xf4   :  { %v120_v11 = vpop.f32.mrb[0].mxu0 }
  0xf5   :  { %v139_v12 = vadd.f32 %v154_v10, %v120_v11  ;;  %v182_v13 = vpop.f32.mrb[1].mxu0 }
  0xf6   :  { %v123_v14 = vpop.f32.mrb[2].mxu0 }
  0xf7   :  { %v140_v15 = vmax.f32 %v139_v12, 0.0  ;;  %v183_v16 = vpop.f32.mrb[3].mxu0 }
  0xf9   :  { %141 = vst [vmem:[%s252_s3] sm:$0xff] %v140_v15 }

// kernel: _lambda_.6
= control target key start
LH: loop header
LB: loop body
LE: loop exit
PB: predicated region body
PF: predicated region fallthrough
CT: control target
= control target key end

     0   :  { %8 = vsyncpa [#allocation4], 0  ;;  %s2829_s0 = inlined_call_operand.vmem [shape: bf16[8,32768], index: 0, kind: input, shape index: {}]   ;;  %s2830_s1 = inlined_call_operand.hbm [shape: bf16[32768,128], index: 1, kind: input, shape index: {}]   ;;  %s2831_s2 = inlined_call_operand.hbm [shape: f32[1,128], index: 2, kind: input, shape index: {}]   ;;  %s2832_s3 = inlined_call_operand.vmem [shape: bf16[8,128], index: 3, kind: output, shape index: {}]  }
   0x1   :  { %10 = vsyncpa [#allocation4 + $0x1], 0 }
   0x2   :  { %11 = vsyncpa [#allocation6], 0  ;;  %s2515_s12 = smov 0   ;;  %s2517_s13 = smov 0  }
   0x3   :  { %s2519_s14 = smov 0   ;;  %s2521_s15 = smov 0  }
   0x4   :  { %s2523_s16 = smov 0   ;;  %s2525_s17 = smov 0  }
   0x5 LB: > { %s1824_s18 = sadd.s32 4294967295, %s2488_s17   ;;  %s73_s19 = sadd.s32 1, %s2476_s14  ;;  %s2488_s17 = sphi %s2525_s17, %s17_s17   ;;  %s2484_s16 = sphi %s2523_s16, %s2853_s16   ;;  %s2480_s15 = sphi %s2521_s15, %s2852_s15   ;;  %s2476_s14 = sphi %s2519_s14, %s2851_s14   ;;  %s2472_s13 = sphi %s2517_s13, %s2850_s13   ;;  %s2468_s12 = sphi %s2515_s12, %s2849_s12  }
   0x6   : > { %p80_p0 = scmp.ne.s32.totalorder %s2476_s14, %s2472_s13  ;;  %p81_p1 = scmp.eq.s32.totalorder %s2488_s17, 0 }
   0x7   : > { %p86_p2 = scmp.ne.s32.totalorder %s2472_s13, %s2468_s12  ;;  %p2549_p3 = scmp.eq.s32.totalorder %s1824_s18, 0 }
   0x8   : > { %p82_p4 = por %p81_p1, %p80_p0  ;;  %p1825_p5 = scmp.ge.s32.totalorder %s2488_s17, 1 }
   0x9   : > { %s2838_s20 = scalar_select %p2549_p3, 1, 0 }
   0xa   : > { %p2556_p6 = por %p2549_p3, %p86_p2  ;;  %p151_p7 = scmp.lt.s32.totalorder %s2488_s17, 17 }
   0xb   : > { %s2490_s23 = smov [#allocation5]   ;;  %p2178_p10 = scmp.lt.s32.totalorder %s2488_s17, 16 }
   0xc   : > { %s2839_s21 = scalar_select %p2556_p6, 1, 0 }
   0xd   : > { %p2561_p8 = pnand %p1825_p5, %p151_p7  ;;  %s166_s24 = sshll.u32 %s2490_s23, 4  ;;  %s167_s24 = int_to_ptr.vmem [resolvable:$true] %s166_s24 }
   0xe   : > { %s190_s25 = sand.u32 1, %s2476_s14   ;;  %p2575_p12 = pnand %p2178_p10, %p82_p4 }
   0xf   : > { %s2840_s22 = scalar_select %p2561_p8, 1, 0 }
  0x10   : > { %p2169_p9 = pneg %p2561_p8  ;;  %s2376_s30 = scalar_lea.hbm %s2831_s2, 16 }
  0x11   : > { %s2842_s27 = scalar_select %p2575_p12, 1, 0 }
  0x12   : > { %p2571_p11 = pnand %p2169_p9, %p2549_p3  ;;  %p2377_p13 = scmp.ne.s32.totalorder %s2831_s2, %s2376_s30 }
  0x13   : > { %p2383_p5 = scmp.lt.u32.totalorder %s2376_s30, %s2831_s2 }
  0x14   : > { %p2378_p0 = pneg %p2571_p11 }
  0x16   : > { %p2379_p1 = pnand %p2378_p0, %p2377_p13 }
  0x18   : > { %p2380_p2 = pneg %p2379_p1 }
  0x1a   : > { %p2385_p4 = pnand %p2383_p5, %p2380_p2 }
  0x1c   : > { %2388 = shalt.err (!%p2385_p4)
}
  0x1d   : > { %s2389_s8 = scalar_lea.vmem %s167_s24, 16  ;;  %s2396_s9 = scalar_lea.vmem %s167_s24, 32 }
  0x1e   : > { %p2390_p7 = scmp.ne.s32.totalorder %s167_s24, %s2389_s8  ;;  %p2397_p3 = scmp.lt.s32.totalorder %s167_s24, %s167_s24 }
  0x1f   : > { %p2398_p6 = scmp.lt.s32.totalorder %s2396_s9, %s2389_s8 }
  0x20   : > { %p2392_p9 = pnand %p2390_p7, %p2378_p0 }
  0x21   : > { %p2399_p8 = por %p2398_p6, %p2397_p3 }
  0x22   : > { %p2393_p10 = pneg %p2392_p9 }
  0x24   : > { %p2400_p12 = pnand %p2399_p8, %p2393_p10 }
  0x26   : > { %2403 = shalt.err (!%p2400_p12)
}
  0x27   : > { %2172 = dma.hbm_to_vmem [thread:$0]  (!%p2571_p11), %s2831_s2, 16, %s167_s24, [#allocation6]  }
  0x28   : > { %s29_s12 = sadd.s32 1, %s2484_s16  ;;  %s1828_s18 = sshll.u32 %s190_s25, 10 }
  0x29   : > { %p30_p13 = scmp.ge.s32.totalorder %s29_s12, 16  ;;  %s1986_s23 = sshll.u32 %s2484_s16, 14 }
  0x2a   : > { %s194_s28 = scalar_lea.vmem [#allocation3], %s1828_s18  ;;  %s2604_s4 = scalar_lea.hbm %s2830_s1, %s1986_s23 }
  0x2b   : > { %s202_s29 = sshll.u32 %s194_s28, 4  ;;  %s2855_s12 = smov (%p30_p13, %s29_s12), 0  ;;  %s2606_s29 = int_to_ptr.vmem [resolvable:$true] %s202_s29 }
  0x2c   : > { %s68_s24 = ssub.s32 %s2484_s16, %s2855_s12  ;;  %s2616_s6 = scalar_lea.sflag [#allocation4], %s190_s25 }
  0x2d   : > { %p2610_p3 = scmp.eq.s32.totalorder %s68_s24, 0  ;;  %s2404_s7 = scalar_lea.hbm %s2604_s4, 16384 }
  0x2e   : > { %p2405_p6 = scmp.ne.s32.totalorder %s2604_s4, %s2404_s7  ;;  %p2844_p8 = scmp.ne.s32.totalorder %s2842_s27, 0 }
  0x2f   : > { %s2409_s10 = scalar_lea.hbm %s2830_s1, 262144  ;;  %p2410_p1 = scmp.lt.u32.totalorder %s2604_s4, %s2830_s1 }
  0x30   : > { %p2406_p11 = pneg %p2844_p8  ;;  %p2411_p2 = scmp.lt.u32.totalorder %s2409_s10, %s2404_s7 }
  0x31   : > { %p2413_p4 = scmp.lt.u32.totalorder %s2404_s7, %s2604_s4 }
  0x32   : > { %p2407_p12 = pnand %p2406_p11, %p2405_p6  ;;  %p2412_p5 = por %p2411_p2, %p2410_p1 }
  0x34   : > { %p2408_p0 = pneg %p2407_p12  ;;  %p2414_p7 = por %p2413_p4, %p2412_p5 }
  0x36   : > { %p2415_p9 = pnand %p2414_p7, %p2408_p0 }
  0x38   : > { %2418 = shalt.err (!%p2415_p9)
}
  0x39   : > { %s2419_s25 = scalar_lea.vmem %s2606_s29, 16384  ;;  %s2491_s23 = smov [#allocation3]  }
  0x3a   : > { %p2420_p10 = scmp.ne.s32.totalorder %s2606_s29, %s2419_s25  ;;  %s2424_s28 = sshll.u32 %s2491_s23, 4  ;;  %s2425_s28 = int_to_ptr.vmem [resolvable:$false] %s2424_s28 }
  0x3b   : > { %s2426_s26 = scalar_lea.vmem %s2425_s28, 32768  ;;  %p2427_p12 = scmp.lt.s32.totalorder %s2606_s29, %s2425_s28 }
  0x3c   : > { %p2422_p13 = pnand %p2420_p10, %p2406_p11  ;;  %p2428_p1 = scmp.lt.s32.totalorder %s2426_s26, %s2419_s25 }
  0x3e   : > { %p2423_p6 = pneg %p2422_p13  ;;  %p2429_p2 = por %p2428_p1, %p2427_p12 }
  0x40   : > { %p2430_p5 = pnand %p2429_p2, %p2423_p6 }
  0x42   : > { %2433 = shalt.err (!%p2430_p5)
}
  0x43   : > { %s2492_s30 = smov 64   ;;  %s2493_s24 = smov 4  }
  0x44   : > { %2176 = dma.hbm_to_vmem [thread:$0]  (!%p2844_p8), %s2604_s4, 16384, %s2606_s29, %s2616_s6, %s2492_s30, %s2492_s30, %s2493_s24  }
  0x45   : > { %s2649_s7 = scalar_select %p2610_p3, %s2476_s14, %s73_s19  }
  0x46   : > { %p2845_p11 = scmp.ne.s32.totalorder %s2840_s22, 0 }
  0x47   : > { %s216_s8 = sand.u32 (!%p2845_p11), 1, %s2472_s13   ;;  %p2846_p0 = scmp.ne.s32.totalorder (!%p2845_p11), %s2839_s21, 0 }
  0x48   : > { %214 = sbr.rel (%p2845_p11) target bundleno = 458 (0x1ca), region = 32  ;;  %s1832_s9 = sshll.u32 (!%p2845_p11), %s216_s8, 10 }
  0x49   : > { %s217_s10 = scalar_lea.sflag (!%p2845_p11), [#allocation4], %s216_s8  ;;  %s2654_s11 = scalar_lea.vmem (!%p2845_p11), [#allocation3], %s1832_s9 }
  0x4f   : > { %2459 = dma.done.wait (%p2846_p0), %s217_s10, 16384  }
  0x50   : > { %2461 = vsyncadd (%p2846_p0), %s217_s10, 4294950912  ;;  %p2847_p8 = scmp.ne.s32.totalorder %s2838_s20, 0 }
  0x52   : > { %2463 = dma.done.wait (%p2847_p8), [#allocation6], 16  }
  0x53   : > { %2465 = vsyncadd (%p2847_p8), [#allocation6], 4294967280  ;;  %s1834_s19 = sshll.u32 %s2480_s15, 4  ;;  %p1836_p4 = scmp.ne.s32.totalorder %s2480_s15, 0 }
  0x54   : > { %p261_p3 = scmp.lt.s32.totalorder %s1834_s19, 255  ;;  %v2494_v0 = vmov (!%p1836_p4), 0.0  }
  0x55   : > { %280 = sbr.rel (%p1836_p4) target bundleno = 92 (0x5c), region = 44  ;;  %281 = vst [vmem:[#allocation2] sm:$0xff] (!%p1836_p4), %v2494_v0 }
  0x56   : > { %s2857_s19 = smov (!%p261_p3, %s1834_s19), 255 }
  0x57   : > { %s1835_s22 = sshll.u32 %s2857_s19, 2 }
  0x58   : > { %s2668_s4 = scalar_lea.vmem %s2829_s0, %s1835_s22 }
  0x5c PF: > { %v2232_v1 = vld [vmem:[%s2654_s11 + $0x40] sm:$0xff]   ;;  %v2236_v5 = vld [vmem:[%s2654_s11 + $0x48] sm:$0xff]   ;;  %v2240_v9 = vld [vmem:[%s2654_s11 + $0x50] sm:$0xff]   ;;  %p1981_p7 = scmp.ne.s32.totalorder %s2480_s15, 15 }
  0x5d   : > { %v2233_v2 = vld [vmem:[%s2654_s11 + $0xc0] sm:$0xff]   ;;  %1987 = vmatprep.subr.bf16.mxu0 %v2232_v1  ;;  %v2237_v6 = vld [vmem:[%s2654_s11 + $0xc8] sm:$0xff]   ;;  %v2241_v10 = vld [vmem:[%s2654_s11 + $0xd0] sm:$0xff]  }
  0x5e   : > { %v2234_v3 = vld [vmem:[%s2654_s11] sm:$0xff]   ;;  %2009 = vmatprep.subr.bf16.mxu1 %v2233_v2  ;;  %v2238_v7 = vld [vmem:[%s2654_s11 + $0x8] sm:$0xff]   ;;  %v2242_v11 = vld [vmem:[%s2654_s11 + $0x10] sm:$0xff]  }
  0x5f   : > { %v2235_v4 = vld [vmem:[%s2654_s11 + $0x80] sm:$0xff]   ;;  %1988 = vmatpush3.bf16.msra.mxu0 %v2234_v3  ;;  %v2239_v8 = vld [vmem:[%s2654_s11 + $0x88] sm:$0xff]   ;;  %v2243_v12 = vld [vmem:[%s2654_s11 + $0x90] sm:$0xff]  }
  0x60   : > { %2010 = vmatpush3.bf16.msra.mxu1 %v2235_v4  ;;  %1989 = vmatprep.subr.bf16.mxu0 %v2236_v5  ;;  %v2244_v13 = vld [vmem:[%s2654_s11 + $0x58] sm:$0xff]   ;;  %v2248_v17 = vld [vmem:[%s2654_s11 + $0x60] sm:$0xff]   ;;  %v2252_v21 = vld [vmem:[%s2654_s11 + $0x68] sm:$0xff]  }
  0x61   : > { %2011 = vmatprep.subr.bf16.mxu1 %v2237_v6  ;;  %v2245_v14 = vld [vmem:[%s2654_s11 + $0xd8] sm:$0xff]   ;;  %v2249_v18 = vld [vmem:[%s2654_s11 + $0xe0] sm:$0xff]   ;;  %v2253_v22 = vld [vmem:[%s2654_s11 + $0xe8] sm:$0xff]  }
  0x62   : > { %v2246_v15 = vld [vmem:[%s2654_s11 + $0x18] sm:$0xff]   ;;  %v2250_v19 = vld [vmem:[%s2654_s11 + $0x20] sm:$0xff]   ;;  %v2254_v23 = vld [vmem:[%s2654_s11 + $0x28] sm:$0xff]  }
  0x63   : > { %1990 = vmatpush3.bf16.msra.mxu0 %v2238_v7  ;;  %v2247_v16 = vld [vmem:[%s2654_s11 + $0x98] sm:$0xff]   ;;  %v2251_v20 = vld [vmem:[%s2654_s11 + $0xa0] sm:$0xff]   ;;  %v2255_v24 = vld [vmem:[%s2654_s11 + $0xa8] sm:$0xff]  }
  0x64   : > { %2012 = vmatpush3.bf16.msra.mxu1 %v2239_v8  ;;  %1991 = vmatprep.subr.bf16.mxu0 %v2240_v9  ;;  %v2256_v25 = vld [vmem:[%s2654_s11 + $0x70] sm:$0xff]   ;;  %v2260_v29 = vld [vmem:[%s2654_s11 + $0x78] sm:$0xff]   ;;  %v284_v34 = vld [vmem:[%s2668_s4 + $0x8] sm:$0xff] }
  0x65   : > { %2013 = vmatprep.subr.bf16.mxu1 %v2241_v10  ;;  %v2257_v26 = vld [vmem:[%s2654_s11 + $0xf0] sm:$0xff]   ;;  %v2261_v30 = vld [vmem:[%s2654_s11 + $0xf8] sm:$0xff]   ;;  %v1839_v37 = vcombine.low %v284_v34, %v284_v34  ;;  %v1840_v38 = vcombine.high %v284_v34, %v284_v34  ;;  %v2268_v39 = vld [vmem:[%s2654_s11 + $0x140] sm:$0xff]  }
  0x66   : > { %v2258_v27 = vld [vmem:[%s2654_s11 + $0x30] sm:$0xff]   ;;  %v2262_v31 = vld [vmem:[%s2654_s11 + $0x38] sm:$0xff]   ;;  %v2269_v40 = vld [vmem:[%s2654_s11 + $0x1c0] sm:$0xff]  }
  0x67   : > { %1992 = vmatpush3.bf16.msra.mxu0 %v2242_v11  ;;  %v2259_v28 = vld [vmem:[%s2654_s11 + $0xb0] sm:$0xff]   ;;  %v2263_v32 = vld [vmem:[%s2654_s11 + $0xb8] sm:$0xff]   ;;  %1443 = vmatprep.mubr.bf16.mxu1 %v1840_v38  ;;  %v2270_v41 = vld [vmem:[%s2654_s11 + $0x100] sm:$0xff]  }
  0x68   : > { %2014 = vmatpush3.bf16.msra.mxu1 %v2243_v12  ;;  %1993 = vmatprep.subr.bf16.mxu0 %v2244_v13  ;;  %v283_v33 = vld [vmem:[%s2668_s4] sm:$0xff]  ;;  %v2271_v42 = vld [vmem:[%s2654_s11 + $0x180] sm:$0xff]   ;;  %v2272_v43 = vld [vmem:[%s2654_s11 + $0x148] sm:$0xff]  }
  0x69   : > { %2015 = vmatprep.subr.bf16.mxu1 %v2245_v14  ;;  %v1837_v35 = vcombine.low %v283_v33, %v283_v33  ;;  %v1838_v36 = vcombine.high %v283_v33, %v283_v33  ;;  %v2273_v44 = vld [vmem:[%s2654_s11 + $0x1c8] sm:$0xff]   ;;  %v2276_v47 = vld [vmem:[%s2654_s11 + $0x150] sm:$0xff]   ;;  %v2280_v51 = vld [vmem:[%s2654_s11 + $0x158] sm:$0xff]  }
  0x6a   : > { %v2274_v45 = vld [vmem:[%s2654_s11 + $0x108] sm:$0xff]   ;;  %v2277_v48 = vld [vmem:[%s2654_s11 + $0x1d0] sm:$0xff]   ;;  %v2281_v52 = vld [vmem:[%s2654_s11 + $0x1d8] sm:$0xff]  }
  0x6b   : > { %1994 = vmatpush3.bf16.msra.mxu0 %v2246_v15  ;;  %1403 = vmatprep.mubr.bf16.mxu0 %v1838_v36  ;;  %v2275_v46 = vld [vmem:[%s2654_s11 + $0x188] sm:$0xff]   ;;  %v2278_v49 = vld [vmem:[%s2654_s11 + $0x110] sm:$0xff]   ;;  %v2282_v53 = vld [vmem:[%s2654_s11 + $0x118] sm:$0xff]  }
  0x6c   : > { %2016 = vmatpush3.bf16.msra.mxu1 %v2247_v16  ;;  %1995 = vmatprep.subr.bf16.mxu0 %v2248_v17  ;;  %v2279_v50 = vld [vmem:[%s2654_s11 + $0x190] sm:$0xff]   ;;  %v2283_v54 = vld [vmem:[%s2654_s11 + $0x198] sm:$0xff]   ;;  %v2284_v55 = vld [vmem:[%s2654_s11 + $0x160] sm:$0xff]  }
  0x6d   : > { %2017 = vmatprep.subr.bf16.mxu1 %v2249_v18  ;;  %v2285_v56 = vld [vmem:[%s2654_s11 + $0x1e0] sm:$0xff]   ;;  %v2288_v59 = vld [vmem:[%s2654_s11 + $0x168] sm:$0xff]   ;;  %v2292_v63 = vld [vmem:[%s2654_s11 + $0x170] sm:$0xff]  }
  0x6e   : > { %v2286_v57 = vld [vmem:[%s2654_s11 + $0x120] sm:$0xff]   ;;  %v2289_v60 = vld [vmem:[%s2654_s11 + $0x1e8] sm:$0xff]   ;;  %v2293_v0 = vld [vmem:[%s2654_s11 + $0x1f0] sm:$0xff]  }
  0x6f   : > { %1996 = vmatpush3.bf16.msra.mxu0 %v2250_v19  ;;  %v2287_v58 = vld [vmem:[%s2654_s11 + $0x1a0] sm:$0xff]   ;;  %v2290_v61 = vld [vmem:[%s2654_s11 + $0x128] sm:$0xff]   ;;  %v2294_v1 = vld [vmem:[%s2654_s11 + $0x130] sm:$0xff]  }
  0x70   : > { %2018 = vmatpush3.bf16.msra.mxu1 %v2251_v20  ;;  %1997 = vmatprep.subr.bf16.mxu0 %v2252_v21  ;;  %v2291_v62 = vld [vmem:[%s2654_s11 + $0x1a8] sm:$0xff]   ;;  %v2295_v2 = vld [vmem:[%s2654_s11 + $0x1b0] sm:$0xff]   ;;  %v2296_v3 = vld [vmem:[%s2654_s11 + $0x178] sm:$0xff]  }
  0x71   : > { %2019 = vmatprep.subr.bf16.mxu1 %v2253_v22  ;;  %v2297_v4 = vld [vmem:[%s2654_s11 + $0x1f8] sm:$0xff]   ;;  %v285_v7 = vld [vmem:[%s2668_s4 + $0x10] sm:$0xff]  ;;  %v286_v10 = vld [vmem:[%s2668_s4 + $0x18] sm:$0xff] }
  0x72   : > { %v2298_v5 = vld [vmem:[%s2654_s11 + $0x138] sm:$0xff]   ;;  %v1841_v8 = vcombine.low %v285_v7, %v285_v7  ;;  %v1842_v9 = vcombine.high %v285_v7, %v285_v7  ;;  %v1843_v11 = vcombine.low %v286_v10, %v286_v10  ;;  %v1844_v12 = vcombine.high %v286_v10, %v286_v10  ;;  %v2304_v13 = vld [vmem:[%s2654_s11 + $0x240] sm:$0xff]   ;;  %v2308_v17 = vld [vmem:[%s2654_s11 + $0x248] sm:$0xff]  }
  0x73   : > { %1998 = vmatpush3.bf16.msra.mxu0 %v2254_v23  ;;  %v2299_v6 = vld [vmem:[%s2654_s11 + $0x1b8] sm:$0xff]   ;;  %v2305_v14 = vld [vmem:[%s2654_s11 + $0x2c0] sm:$0xff]   ;;  %v2309_v18 = vld [vmem:[%s2654_s11 + $0x2c8] sm:$0xff]  }
  0x74   : > { %2020 = vmatpush3.bf16.msra.mxu1 %v2255_v24  ;;  %1999 = vmatprep.subr.bf16.mxu0 %v2256_v25  ;;  %v2306_v15 = vld [vmem:[%s2654_s11 + $0x200] sm:$0xff]   ;;  %v2310_v19 = vld [vmem:[%s2654_s11 + $0x208] sm:$0xff]   ;;  %v2312_v21 = vld [vmem:[%s2654_s11 + $0x250] sm:$0xff]  }
  0x75   : > { %2021 = vmatprep.subr.bf16.mxu1 %v2257_v26  ;;  %v2307_v16 = vld [vmem:[%s2654_s11 + $0x280] sm:$0xff]   ;;  %v2311_v20 = vld [vmem:[%s2654_s11 + $0x288] sm:$0xff]   ;;  %v2313_v22 = vld [vmem:[%s2654_s11 + $0x2d0] sm:$0xff]  }
  0x76   : > { %v2314_v23 = vld [vmem:[%s2654_s11 + $0x210] sm:$0xff]   ;;  %v2316_v25 = vld [vmem:[%s2654_s11 + $0x258] sm:$0xff]   ;;  %v2324_v33 = vld [vmem:[%s2654_s11 + $0x268] sm:$0xff]  }
  0x77   : > { %2000 = vmatpush3.bf16.msra.mxu0 %v2258_v27  ;;  %v2315_v24 = vld [vmem:[%s2654_s11 + $0x290] sm:$0xff]   ;;  %v2317_v26 = vld [vmem:[%s2654_s11 + $0x2d8] sm:$0xff]   ;;  %v2325_v34 = vld [vmem:[%s2654_s11 + $0x2e8] sm:$0xff]  }
  0x78   : > { %2022 = vmatpush3.bf16.msra.mxu1 %v2259_v28  ;;  %2001 = vmatprep.subr.bf16.mxu0 %v2260_v29  ;;  %v2318_v27 = vld [vmem:[%s2654_s11 + $0x218] sm:$0xff]   ;;  %v2320_v29 = vld [vmem:[%s2654_s11 + $0x260] sm:$0xff]   ;;  %v2327_v36 = vld [vmem:[%s2654_s11 + $0x2a8] sm:$0xff]  }
  0x79   : > { %2023 = vmatprep.subr.bf16.mxu1 %v2261_v30  ;;  %v2319_v28 = vld [vmem:[%s2654_s11 + $0x298] sm:$0xff]   ;;  %v2321_v30 = vld [vmem:[%s2654_s11 + $0x2e0] sm:$0xff]   ;;  %v2329_v38 = vld [vmem:[%s2654_s11 + $0x2f0] sm:$0xff]  }
  0x7a   : > { %v2360_v7 = vld [vmem:[%s2654_s11 + $0x368] sm:$0xff]  }
  0x7b   : > { %2002 = vmatpush3.bf16.msra.mxu0 %v2262_v31  ;;  %v2322_v31 = vld [vmem:[%s2654_s11 + $0x220] sm:$0xff]   ;;  %v2363_v10 = vld [vmem:[%s2654_s11 + $0x3a8] sm:$0xff]  }
  0x7c   : > { %2024 = vmatpush3.bf16.msra.mxu1 %v2263_v32  ;;  %2031 = vmatprep.subr.bf16.mxu0 %v2268_v39  ;;  %v2323_v32 = vld [vmem:[%s2654_s11 + $0x2a0] sm:$0xff]   ;;  %v2330_v39 = vld [vmem:[%s2654_s11 + $0x230] sm:$0xff]  }
  0x7d   : > { %2053 = vmatprep.subr.bf16.mxu1 %v2269_v40  ;;  %v2331_v40 = vld [vmem:[%s2654_s11 + $0x2b0] sm:$0xff]  }
  0x7e   : > { %1404 = vmatmul.mubr.bf16.vlgmr.msra.gmra.mrb[0].mxu0 %v1837_v35  ;;  %v2326_v35 = vld [vmem:[%s2654_s11 + $0x228] sm:$0xff]  }
  0x7f   : > { %1444 = vmatmul.mubr.bf16.vlgmr.msra.gmra.mrb[0].mxu1 %v1839_v37  ;;  %2032 = vmatpush3.bf16.msra.mxu0 %v2270_v41  ;;  %v2328_v37 = vld [vmem:[%s2654_s11 + $0x270] sm:$0xff]   ;;  %v2332_v41 = vld [vmem:[%s2654_s11 + $0x278] sm:$0xff]  }
  0x80   : > { %2054 = vmatpush3.bf16.msra.mxu1 %v2271_v42  ;;  %2033 = vmatprep.subr.bf16.mxu0 %v2272_v43  ;;  %v2333_v42 = vld [vmem:[%s2654_s11 + $0x2f8] sm:$0xff]  }
  0x81   : > { %2055 = vmatprep.subr.bf16.mxu1 %v2273_v44  ;;  %1483 = vmatprep.mubr.bf16.mxu0 %v1842_v9  ;;  %v2334_v43 = vld [vmem:[%s2654_s11 + $0x238] sm:$0xff]   ;;  %v2362_v9 = vld [vmem:[%s2654_s11 + $0x328] sm:$0xff]  }
  0x82   : > { %1523 = vmatprep.mubr.bf16.mxu1 %v1844_v12  ;;  %v2335_v44 = vld [vmem:[%s2654_s11 + $0x2b8] sm:$0xff]   ;;  %v2365_v12 = vld [vmem:[%s2654_s11 + $0x3f0] sm:$0xff]  }
  0x83   : > { %2034 = vmatpush3.bf16.msra.mxu0 %v2274_v45  ;;  %v287_v45 = vld [vmem:[%s2668_s4 + $0x20] sm:$0xff] }
  0x84   : > { %2056 = vmatpush3.bf16.msra.mxu1 %v2275_v46  ;;  %2035 = vmatprep.subr.bf16.mxu0 %v2276_v47  ;;  %v288_v46 = vld [vmem:[%s2668_s4 + $0x28] sm:$0xff]  ;;  %v1845_v47 = vcombine.low %v287_v45, %v287_v45 }
  0x85   : > { %2057 = vmatprep.subr.bf16.mxu1 %v2277_v48  ;;  %v1846_v48 = vcombine.high %v287_v45, %v287_v45 }
  0x87   : > { %2036 = vmatpush3.bf16.msra.mxu0 %v2278_v49  ;;  %v1847_v49 = vcombine.low %v288_v46, %v288_v46 }
  0x88   : > { %2058 = vmatpush3.bf16.msra.mxu1 %v2279_v50  ;;  %2037 = vmatprep.subr.bf16.mxu0 %v2280_v51  ;;  %v1848_v50 = vcombine.high %v288_v46, %v288_v46  ;;  %v2340_v51 = vld [vmem:[%s2654_s11 + $0x340] sm:$0xff]  }
  0x89   : > { %2059 = vmatprep.subr.bf16.mxu1 %v2281_v52  ;;  %v2341_v52 = vld [vmem:[%s2654_s11 + $0x3c0] sm:$0xff]  }
  0x8b   : > { %2038 = vmatpush3.bf16.msra.mxu0 %v2282_v53  ;;  %v2342_v53 = vld [vmem:[%s2654_s11 + $0x300] sm:$0xff]  }
  0x8c   : > { %2060 = vmatpush3.bf16.msra.mxu1 %v2283_v54  ;;  %2039 = vmatprep.subr.bf16.mxu0 %v2284_v55  ;;  %v2343_v54 = vld [vmem:[%s2654_s11 + $0x380] sm:$0xff]   ;;  %v2344_v55 = vld [vmem:[%s2654_s11 + $0x348] sm:$0xff]  }
  0x8d   : > { %2061 = vmatprep.subr.bf16.mxu1 %v2285_v56  ;;  %v2345_v56 = vld [vmem:[%s2654_s11 + $0x3c8] sm:$0xff]  }
  0x8f   : > { %2040 = vmatpush3.bf16.msra.mxu0 %v2286_v57  ;;  %v2346_v57 = vld [vmem:[%s2654_s11 + $0x308] sm:$0xff]  }
  0x90   : > { %2062 = vmatpush3.bf16.msra.mxu1 %v2287_v58  ;;  %2041 = vmatprep.subr.bf16.mxu0 %v2288_v59  ;;  %v2347_v58 = vld [vmem:[%s2654_s11 + $0x388] sm:$0xff]   ;;  %v2348_v59 = vld [vmem:[%s2654_s11 + $0x350] sm:$0xff]  }
  0x91   : > { %2063 = vmatprep.subr.bf16.mxu1 %v2289_v60  ;;  %v2349_v60 = vld [vmem:[%s2654_s11 + $0x3d0] sm:$0xff]  }
  0x93   : > { %2042 = vmatpush3.bf16.msra.mxu0 %v2290_v61  ;;  %v2350_v61 = vld [vmem:[%s2654_s11 + $0x310] sm:$0xff]  }
  0x94   : > { %2064 = vmatpush3.bf16.msra.mxu1 %v2291_v62  ;;  %2043 = vmatprep.subr.bf16.mxu0 %v2292_v63  ;;  %v2351_v62 = vld [vmem:[%s2654_s11 + $0x390] sm:$0xff]   ;;  %v2352_v63 = vld [vmem:[%s2654_s11 + $0x358] sm:$0xff]  }
  0x95   : > { %2065 = vmatprep.subr.bf16.mxu1 %v2293_v0  ;;  %v2353_v0 = vld [vmem:[%s2654_s11 + $0x3d8] sm:$0xff]  }
  0x97   : > { %2044 = vmatpush3.bf16.msra.mxu0 %v2294_v1  ;;  %v2354_v1 = vld [vmem:[%s2654_s11 + $0x318] sm:$0xff]  }
  0x98   : > { %2066 = vmatpush3.bf16.msra.mxu1 %v2295_v2  ;;  %2045 = vmatprep.subr.bf16.mxu0 %v2296_v3  ;;  %v2355_v2 = vld [vmem:[%s2654_s11 + $0x398] sm:$0xff]   ;;  %v2356_v3 = vld [vmem:[%s2654_s11 + $0x360] sm:$0xff]  }
  0x99   : > { %2067 = vmatprep.subr.bf16.mxu1 %v2297_v4  ;;  %v2357_v4 = vld [vmem:[%s2654_s11 + $0x3e0] sm:$0xff]  }
  0x9b   : > { %2046 = vmatpush3.bf16.msra.mxu0 %v2298_v5  ;;  %v2358_v5 = vld [vmem:[%s2654_s11 + $0x320] sm:$0xff]  }
  0x9c   : > { %2068 = vmatpush3.bf16.msra.mxu1 %v2299_v6  ;;  %2075 = vmatprep.subr.bf16.mxu0 %v2304_v13  ;;  %v2359_v6 = vld [vmem:[%s2654_s11 + $0x3a0] sm:$0xff]   ;;  %v2366_v13 = vld [vmem:[%s2654_s11 + $0x330] sm:$0xff]  }
  0x9d   : > { %2097 = vmatprep.subr.bf16.mxu1 %v2305_v14  ;;  %v2367_v14 = vld [vmem:[%s2654_s11 + $0x3b0] sm:$0xff]  }
  0x9e   : > { %1484 = vmatmul.mubr.bf16.vlgmr.msra.gmra.mrb[4].mxu0 %v1841_v8  ;;  %v2361_v8 = vld [vmem:[%s2654_s11 + $0x3e8] sm:$0xff]  }
  0x9f   : > { %1524 = vmatmul.mubr.bf16.vlgmr.msra.gmra.mrb[4].mxu1 %v1843_v11  ;;  %2076 = vmatpush3.bf16.msra.mxu0 %v2306_v15  ;;  %v2364_v11 = vld [vmem:[%s2654_s11 + $0x370] sm:$0xff]   ;;  %v2368_v15 = vld [vmem:[%s2654_s11 + $0x378] sm:$0xff]  }
  0xa0   : > { %2098 = vmatpush3.bf16.msra.mxu1 %v2307_v16  ;;  %2077 = vmatprep.subr.bf16.mxu0 %v2308_v17  ;;  %v2369_v16 = vld [vmem:[%s2654_s11 + $0x3f8] sm:$0xff]  }
  0xa1   : > { %2099 = vmatprep.subr.bf16.mxu1 %v2309_v18  ;;  %1563 = vmatprep.mubr.bf16.mxu0 %v1846_v48  ;;  %v2370_v17 = vld [vmem:[%s2654_s11 + $0x338] sm:$0xff]  }
  0xa2   : > { %1603 = vmatprep.mubr.bf16.mxu1 %v1848_v50  ;;  %v2371_v18 = vld [vmem:[%s2654_s11 + $0x3b8] sm:$0xff]  }
  0xa3   : > { %2078 = vmatpush3.bf16.msra.mxu0 %v2310_v19  ;;  %v289_v19 = vld [vmem:[%s2668_s4 + $0x30] sm:$0xff] }
  0xa4   : > { %2100 = vmatpush3.bf16.msra.mxu1 %v2311_v20  ;;  %2079 = vmatprep.subr.bf16.mxu0 %v2312_v21  ;;  %v290_v20 = vld [vmem:[%s2668_s4 + $0x38] sm:$0xff]  ;;  %v1849_v21 = vcombine.low %v289_v19, %v289_v19 }
  0xa5   : > { %2101 = vmatprep.subr.bf16.mxu1 %v2313_v22  ;;  %v1850_v22 = vcombine.high %v289_v19, %v289_v19 }
  0xa7   : > { %2080 = vmatpush3.bf16.msra.mxu0 %v2314_v23  ;;  %v1851_v23 = vcombine.low %v290_v20, %v290_v20 }
  0xa8   : > { %2102 = vmatpush3.bf16.msra.mxu1 %v2315_v24  ;;  %2081 = vmatprep.subr.bf16.mxu0 %v2316_v25  ;;  %v1852_v24 = vcombine.high %v290_v20, %v290_v20 }
  0xa9   : > { %2103 = vmatprep.subr.bf16.mxu1 %v2317_v26 }
  0xab   : > { %2082 = vmatpush3.bf16.msra.mxu0 %v2318_v27 }
  0xac   : > { %2104 = vmatpush3.bf16.msra.mxu1 %v2319_v28  ;;  %2083 = vmatprep.subr.bf16.mxu0 %v2320_v29 }
  0xad   : > { %2105 = vmatprep.subr.bf16.mxu1 %v2321_v30 }
  0xaf   : > { %2084 = vmatpush3.bf16.msra.mxu0 %v2322_v31 }
  0xb0   : > { %2106 = vmatpush3.bf16.msra.mxu1 %v2323_v32  ;;  %2085 = vmatprep.subr.bf16.mxu0 %v2324_v33 }
  0xb1   : > { %2107 = vmatprep.subr.bf16.mxu1 %v2325_v34 }
  0xb3   : > { %2086 = vmatpush3.bf16.msra.mxu0 %v2326_v35 }
  0xb4   : > { %2108 = vmatpush3.bf16.msra.mxu1 %v2327_v36  ;;  %2087 = vmatprep.subr.bf16.mxu0 %v2328_v37 }
  0xb5   : > { %2109 = vmatprep.subr.bf16.mxu1 %v2329_v38 }
  0xb7   : > { %2088 = vmatpush3.bf16.msra.mxu0 %v2330_v39 }
  0xb8   : > { %2110 = vmatpush3.bf16.msra.mxu1 %v2331_v40  ;;  %2089 = vmatprep.subr.bf16.mxu0 %v2332_v41 }
  0xb9   : > { %2111 = vmatprep.subr.bf16.mxu1 %v2333_v42 }
  0xbb   : > { %2090 = vmatpush3.bf16.msra.mxu0 %v2334_v43 }
  0xbc   : > { %2112 = vmatpush3.bf16.msra.mxu1 %v2335_v44  ;;  %2119 = vmatprep.subr.bf16.mxu0 %v2340_v51 }
  0xbd   : > { %2141 = vmatprep.subr.bf16.mxu1 %v2341_v52 }
  0xbe   : > { %1564 = vmatmul.mubr.bf16.vlgmr.msra.gmra.mrb[8].mxu0 %v1845_v47 }
  0xbf   : > { %1604 = vmatmul.mubr.bf16.vlgmr.msra.gmra.mrb[8].mxu1 %v1847_v49  ;;  %2120 = vmatpush3.bf16.msra.mxu0 %v2342_v53 }
  0xc0   : > { %2142 = vmatpush3.bf16.msra.mxu1 %v2343_v54  ;;  %2121 = vmatprep.subr.bf16.mxu0 %v2344_v55 }
  0xc1   : > { %2143 = vmatprep.subr.bf16.mxu1 %v2345_v56  ;;  %1643 = vmatprep.mubr.bf16.mxu0 %v1850_v22 }
  0xc2   : > { %1683 = vmatprep.mubr.bf16.mxu1 %v1852_v24 }
  0xc3   : > { %2122 = vmatpush3.bf16.msra.mxu0 %v2346_v57 }
  0xc4   : > { %2144 = vmatpush3.bf16.msra.mxu1 %v2347_v58  ;;  %2123 = vmatprep.subr.bf16.mxu0 %v2348_v59 }
  0xc5   : > { %2145 = vmatprep.subr.bf16.mxu1 %v2349_v60 }
  0xc7   : > { %2124 = vmatpush3.bf16.msra.mxu0 %v2350_v61 }
  0xc8   : > { %2146 = vmatpush3.bf16.msra.mxu1 %v2351_v62  ;;  %2125 = vmatprep.subr.bf16.mxu0 %v2352_v63 }
  0xc9   : > { %2147 = vmatprep.subr.bf16.mxu1 %v2353_v0 }
  0xcb   : > { %2126 = vmatpush3.bf16.msra.mxu0 %v2354_v1 }
  0xcc   : > { %2148 = vmatpush3.bf16.msra.mxu1 %v2355_v2  ;;  %2127 = vmatprep.subr.bf16.mxu0 %v2356_v3 }
  0xcd   : > { %2149 = vmatprep.subr.bf16.mxu1 %v2357_v4 }
  0xcf   : > { %2128 = vmatpush3.bf16.msra.mxu0 %v2358_v5 }
  0xd0   : > { %2150 = vmatpush3.bf16.msra.mxu1 %v2359_v6  ;;  %2129 = vmatprep.subr.bf16.mxu0 %v2360_v7  ;;  %v282_v7 = vld [vmem:[#allocation2] sm:$0xff] }
  0xd1   : > { %2151 = vmatprep.subr.bf16.mxu1 %v2361_v8 }
  0xd3   : > { %2130 = vmatpush3.bf16.msra.mxu0 %v2362_v9 }
  0xd4   : > { %2152 = vmatpush3.bf16.msra.mxu1 %v2363_v10  ;;  %2131 = vmatprep.subr.bf16.mxu0 %v2364_v11  ;;  %v1982_v11 = vld [vmem:[#allocation5] ss:$0 sm:$0xff] (!%p1981_p7) }
  0xd5   : > { %2153 = vmatprep.subr.bf16.mxu1 %v2365_v12 }
  0xd7   : > { %2132 = vmatpush3.bf16.msra.mxu0 %v2366_v13 }
  0xd8   : > { %2154 = vmatpush3.bf16.msra.mxu1 %v2367_v14  ;;  %2133 = vmatprep.subr.bf16.mxu0 %v2368_v15 }
  0xd9   : > { %2155 = vmatprep.subr.bf16.mxu1 %v2369_v16 }
  0xdb   : > { %2134 = vmatpush3.bf16.msra.mxu0 %v2370_v17 }
  0xdc   : > { %2156 = vmatpush3.bf16.msra.mxu1 %v2371_v18 }
  0xde   : > { %1644 = vmatmul.mubr.bf16.vlgmr.msra.gmra.mrb[12].mxu0 %v1849_v21 }
  0xdf   : > { %1684 = vmatmul.mubr.bf16.vlgmr.msra.gmra.mrb[12].mxu1 %v1851_v23 }
 0x151   : > { %v2003_v25 = vpop.f32.mrb[0].mxu0 }
 0x152   : > { %v2025_v26 = vpop.f32.mrb[0].mxu1  ;;  %v2004_v27 = vpop.f32.mrb[1].mxu0 }
 0x153   : > { %v2026_v28 = vpop.f32.mrb[1].mxu1  ;;  %v2005_v29 = vadd.f32 %v2004_v27, %v2003_v25  ;;  %v2006_v31 = vpop.f32.mrb[2].mxu0 }
 0x154   : > { %v2027_v30 = vadd.f32 %v2026_v28, %v2025_v26  ;;  %v2028_v32 = vpop.f32.mrb[2].mxu1  ;;  %v2007_v33 = vpop.f32.mrb[3].mxu0 }
 0x155   : > { %v2029_v34 = vpop.f32.mrb[3].mxu1 }
 0x156   : > { %v1446_v35 = vadd.f32 %v2027_v30, %v2005_v29 }
 0x171   : > { %v2047_v36 = vpop.f32.mrb[4].mxu0 }
 0x172   : > { %v2069_v37 = vpop.f32.mrb[4].mxu1  ;;  %v2048_v38 = vpop.f32.mrb[5].mxu0 }
 0x173   : > { %v2070_v39 = vpop.f32.mrb[5].mxu1  ;;  %v2049_v40 = vadd.f32 %v2048_v38, %v2047_v36  ;;  %v2050_v42 = vpop.f32.mrb[6].mxu0 }
 0x174   : > { %v2071_v41 = vadd.f32 %v2070_v39, %v2069_v37  ;;  %v2072_v43 = vpop.f32.mrb[6].mxu1  ;;  %v2051_v44 = vpop.f32.mrb[7].mxu0 }
 0x175   : > { %v2073_v45 = vpop.f32.mrb[7].mxu1  ;;  %v1486_v46 = vadd.f32 %v2049_v40, %v1446_v35 }
 0x177   : > { %v1526_v47 = vadd.f32 %v2071_v41, %v1486_v46 }
 0x191   : > { %v2091_v48 = vpop.f32.mrb[8].mxu0 }
 0x192   : > { %v2113_v49 = vpop.f32.mrb[8].mxu1  ;;  %v2092_v50 = vpop.f32.mrb[9].mxu0 }
 0x193   : > { %v2093_v51 = vadd.f32 %v2092_v50, %v2091_v48  ;;  %v2114_v52 = vpop.f32.mrb[9].mxu1  ;;  %v2094_v53 = vpop.f32.mrb[10].mxu0 }
 0x194   : > { %v2115_v54 = vadd.f32 %v2114_v52, %v2113_v49  ;;  %v2116_v55 = vpop.f32.mrb[10].mxu1  ;;  %v2095_v56 = vpop.f32.mrb[11].mxu0 }
 0x195   : > { %v1566_v57 = vadd.f32 %v2093_v51, %v1526_v47  ;;  %v2117_v58 = vpop.f32.mrb[11].mxu1 }
 0x197   : > { %v1606_v59 = vadd.f32 %v2115_v54, %v1566_v57 }
 0x1b1   : > { %v2135_v60 = vpop.f32.mrb[12].mxu0 }
 0x1b2   : > { %v2157_v61 = vpop.f32.mrb[12].mxu1  ;;  %v2136_v62 = vpop.f32.mrb[13].mxu0 }
 0x1b3   : > { %v2137_v63 = vadd.f32 %v2136_v62, %v2135_v60  ;;  %v2158_v0 = vpop.f32.mrb[13].mxu1  ;;  %v2138_v1 = vpop.f32.mrb[14].mxu0 }
 0x1b4   : > { %v2159_v2 = vadd.f32 %v2158_v0, %v2157_v61  ;;  %v2160_v3 = vpop.f32.mrb[14].mxu1  ;;  %v2139_v4 = vpop.f32.mrb[15].mxu0 }
 0x1b5   : > { %v1646_v5 = vadd.f32 %v2137_v63, %v1606_v59  ;;  %v2161_v6 = vpop.f32.mrb[15].mxu1  ;;  %1696 = sbr.rel (%p1981_p7) target bundleno = 458 (0x1ca), region = 48 }
 0x1b7   : > { %v1686_v8 = vadd.f32 %v2159_v2, %v1646_v5 }
 0x1b9   : > { %v1691_v9 = vadd.f32 %v1686_v8, %v282_v7 }
 0x1bb   : > { %1692 = vst [vmem:[#allocation2] sm:$0xff] %v1691_v9 }
 0x1c2   : > { %v1697_v10 = vld [vmem:[#allocation2] sm:$0xff] }
 0x1c3   : > { %v1705_v12 = vadd.f32 %v1982_v11, %v1697_v10 }
 0x1c5   : > { %v1706_v13 = vmax.f32 %v1705_v12, 0.0 }
 0x1c7   : > { %v1707_v14 = vpack.c.bf16 %v1706_v13, %v1706_v13 }
 0x1c9   : > { %1708 = vst [vmem:[%s2832_s3] sm:$0xf] %v1707_v14 }
 0x1ca PF: > { %s17_s17 = sadd.s32 1, %s2488_s17   ;;  %s2848_s5 = smov %s2855_s12 }
 0x1cb   : > { %p14_p9 = scmp.ge.s32.totalorder %s17_s17, 18   ;;  %s2849_s12 = smov %s2472_s13 }
 0x1cc   : > { %s2850_s13 = smov %s2476_s14  ;;  %s2851_s14 = smov %s2649_s7 }
 0x1cd   : > { %s2852_s15 = smov %s2484_s16  ;;  %s2853_s16 = smov %s2848_s5 }
 0x1ce   :  { %16 = sbr.rel (!%p14_p9) target bundleno = 5 (0x5), region = 88 }
 0x1d5   :  { %1734 = vsyncpa [#allocation4], 1 }
 0x1d6   :  { %1736 = vsyncpa [#allocation4 + $0x1], 1 }
 0x1d7   :  { %1737 = vsyncpa [#allocation6], 1 }

// kernel: _lambda_.4
= control target key start
LH: loop header
LB: loop body
LE: loop exit
PB: predicated region body
PF: predicated region fallthrough
CT: control target
= control target key end

     0   :  { %8 = vsyncpa [#allocation4], 0  ;;  %s9154_s0 = inlined_call_operand.vmem [shape: bf16[2,16,16,128], index: 0, kind: input, shape index: {}]   ;;  %s9155_s1 = inlined_call_operand.hbm [shape: bf16[9,128,128], index: 1, kind: input, shape index: {}]   ;;  %s9156_s2 = inlined_call_operand.hbm [shape: f32[1,128], index: 2, kind: input, shape index: {}]   ;;  %s9157_s3 = inlined_call_operand.vmem [shape: bf16[512,128], index: 3, kind: output, shape index: {}]  }
   0x1   :  { %9 = vsyncpa [#allocation6], 0  ;;  %s7527_s12 = smov 0  }
   0x2 LB: > { %s7533_s13 = sadd.s32 4294967295, %s7500_s12   ;;  %p5847_p0 = scmp.ge.s32.totalorder %s7500_s12, 1  ;;  %s7500_s12 = sphi %s7527_s12, %s15_s12  }
   0x3   : > { %p114_p1 = scmp.lt.s32.totalorder %s7500_s12, 3  ;;  %s7502_s14 = smov [#allocation3]  }
   0x4   : > { %s126_s15 = sshll.u32 %s7502_s14, 4  ;;  %p9158_p3 = scmp.eq.s32.totalorder %s7533_s13, 0  ;;  %s127_s15 = int_to_ptr.vmem [resolvable:$true] %s126_s15 }
   0x5   : > { %p7537_p2 = pnand %p5847_p0, %p114_p1  ;;  %s7503_s17 = smov [#allocation5]  }
   0x6   : > { %s140_s18 = sshll.u32 %s7503_s17, 4  ;;  %s7430_s22 = scalar_lea.hbm %s9155_s1, 9216  ;;  %s7550_s18 = int_to_ptr.vmem [resolvable:$true] %s140_s18 }
   0x7   : > { %s9179_s16 = scalar_select %p7537_p2, 1, 0 }
   0x8   : > { %p7213_p4 = pneg %p7537_p2  ;;  %p7431_p6 = scmp.ne.s32.totalorder %s9155_s1, %s7430_s22 }
   0x9   : > { %p7437_p10 = scmp.lt.u32.totalorder %s7430_s22, %s9155_s1 }
   0xa   : > { %p7546_p5 = pnand %p9158_p3, %p7213_p4 }
   0xc   : > { %p7432_p7 = pneg %p7546_p5 }
   0xe   : > { %p7433_p8 = pnand %p7432_p7, %p7431_p6 }
  0x10   : > { %p7434_p9 = pneg %p7433_p8 }
  0x12   : > { %p7439_p11 = pnand %p7437_p10, %p7434_p9 }
  0x14   : > { %7442 = shalt.err (!%p7439_p11)
}
  0x15   : > { %s7443_s27 = scalar_lea.vmem %s127_s15, 9216  ;;  %p7451_p1 = scmp.lt.s32.totalorder %s127_s15, %s127_s15 }
  0x16   : > { %p7444_p12 = scmp.ne.s32.totalorder %s127_s15, %s7443_s27  ;;  %p7452_p4 = scmp.lt.s32.totalorder %s7443_s27, %s7443_s27 }
  0x18   : > { %p7446_p13 = pnand %p7444_p12, %p7432_p7  ;;  %p7453_p3 = por %p7452_p4, %p7451_p1 }
  0x1a   : > { %p7447_p0 = pneg %p7446_p13 }
  0x1c   : > { %p7454_p2 = pnand %p7453_p3, %p7447_p0 }
  0x1e   : > { %7457 = shalt.err (!%p7454_p2)
}
  0x1f   : > { %s7504_s28 = smov 64   ;;  %s7505_s29 = smov 4  }
  0x20   : > { %7216 = dma.hbm_to_vmem [thread:$0]  (!%p7546_p5), %s9155_s1, 9216, %s127_s15, [#allocation4], %s7504_s28, %s7504_s28, %s7505_s29  }
  0x21   : > { %s7458_s7 = scalar_lea.hbm %s9156_s2, 16 }
  0x22   : > { %p7459_p6 = scmp.ne.s32.totalorder %s9156_s2, %s7458_s7  ;;  %p7465_p8 = scmp.lt.u32.totalorder %s7458_s7, %s9156_s2 }
  0x24   : > { %p7461_p2 = pnand %p7459_p6, %p7432_p7 }
  0x26   : > { %p7462_p3 = pneg %p7461_p2 }
  0x28   : > { %p7467_p9 = pnand %p7465_p8, %p7462_p3 }
  0x2a   : > { %7470 = shalt.err (!%p7467_p9)
}
  0x2b   : > { %s7471_s14 = scalar_lea.vmem %s7550_s18, 16  ;;  %s7478_s15 = scalar_lea.vmem %s7550_s18, 32 }
  0x2c   : > { %p7472_p10 = scmp.ne.s32.totalorder %s7550_s18, %s7471_s14  ;;  %p7479_p13 = scmp.lt.s32.totalorder %s7550_s18, %s7550_s18 }
  0x2d   : > { %p7480_p0 = scmp.lt.s32.totalorder %s7478_s15, %s7471_s14 }
  0x2e   : > { %p7474_p11 = pnand %p7472_p10, %p7432_p7 }
  0x2f   : > { %p7481_p1 = por %p7480_p0, %p7479_p13 }
  0x30   : > { %p7475_p12 = pneg %p7474_p11 }
  0x32   : > { %p7482_p4 = pnand %p7481_p1, %p7475_p12 }
  0x34   : > { %7485 = shalt.err (!%p7482_p4)
}
  0x35   : > { %7219 = dma.hbm_to_vmem [thread:$0]  (!%p7546_p5), %s9156_s2, 16, %s7550_s18, [#allocation6]  }
  0x36   : > { %p9181_p6 = scmp.ne.s32.totalorder %s9179_s16, 0 }
  0x38   : > { %161 = sbr.rel (%p9181_p6) target bundleno = 725 (0x2d5), region = 32 }
  0x3f   : > { %p9182_p7 = scmp.eq.s32.totalorder %s7533_s13, 0 }
  0x41   : > { %7491 = dma.done.wait (%p9182_p7), [#allocation4], 9216   ;;  %p9183_p2 = pmov %p9182_p7 }
  0x43   : > { %7493 = vsyncadd (%p9183_p2), [#allocation4], 4294958080  ;;  %p9184_p3 = pmov %p9183_p2 }
  0x44   : > { %p9185_p8 = pmov %p9183_p2 }
  0x45   : > { %7495 = dma.done.wait (%p9184_p3), [#allocation6], 16  }
  0x46   : > { %7497 = vsyncadd (%p9185_p8), [#allocation6], 4294967280  ;;  %v7506_v0 = vmov 0   ;;  %v7237_v1 = vld [vmem:[#allocation3 + $0x40] sm:$0xff]   ;;  %v7239_v3 = vld [vmem:[#allocation3 + $0x48] sm:$0xff]   ;;  %p189_p5 = scmp.lt.s32.totalorder %s7533_s13, 1 }
  0x47   : > { %201 = vst [vmem:[#allocation2] sm:$0xf] %v7506_v0  ;;  %202 = vst [vmem:[#allocation2 + $0x4] sm:$0xf] %v7506_v0  ;;  %v7238_v2 = vld [vmem:[#allocation3 + $0x100] sm:$0xff]   ;;  %6501 = vmatprep.subr.bf16.mxu1 %v7237_v1  ;;  %v7240_v4 = vld [vmem:[#allocation3 + $0x108] sm:$0xff]  }
  0x48   : > { %203 = vst [vmem:[#allocation2 + $0x8] sm:$0x1] %v7506_v0  ;;  %204 = vst [vmem:[#allocation2 + $0xc] sm:$0xf] %v7506_v0  ;;  %6693 = vmatprep.subr.bf16.mxu0 %v7238_v2  ;;  %6502 = vmatpush3.bf16.msra.mxu1 %v7237_v1  ;;  %v7241_v5 = vld [vmem:[#allocation3 + $0x50] sm:$0xff]   ;;  %s190_s16 = scalar_select %p189_p5, %s7533_s13, 1 }
  0x49   : > { %205 = vst [vmem:[#allocation2 + $0x10] sm:$0xf] %v7506_v0  ;;  %206 = vst [vmem:[#allocation2 + $0x14] sm:$0x1] %v7506_v0  ;;  %6694 = vmatpush3.bf16.msra.mxu0 %v7238_v2  ;;  %6503 = vmatprep.subr.bf16.mxu1 %v7239_v3  ;;  %v7242_v6 = vld [vmem:[#allocation3 + $0x110] sm:$0xff]   ;;  %v7243_v7 = vld [vmem:[#allocation3 + $0x58] sm:$0xff]  }
  0x4a   : > { %207 = vst [vmem:[#allocation2 + $0x18] sm:$0xf] %v7506_v0  ;;  %208 = vst [vmem:[#allocation2 + $0x1c] sm:$0xf] %v7506_v0  ;;  %6695 = vmatprep.subr.bf16.mxu0 %v7240_v4  ;;  %vm792_vm0 = vsmask.f32 3328 }
  0x4b   : > { %209 = vst [vmem:[#allocation2 + $0x20] sm:$0x1] %v7506_v0  ;;  %210 = vst [vmem:[#allocation2 + $0x24] sm:$0xf] %v7506_v0  ;;  %vm793_vm1 = vsmask.f32 7440 }
  0x4c   : > { %211 = vst [vmem:[#allocation2 + $0x28] sm:$0xf] %v7506_v0  ;;  %212 = vst [vmem:[#allocation2 + $0x2c] sm:$0x1] %v7506_v0  ;;  %6504 = vmatpush3.bf16.msra.mxu1 %v7239_v3  ;;  %v7244_v8 = vld [vmem:[#allocation3 + $0x118] sm:$0xff]   ;;  %s6157_s18 = sshll.u32 %s190_s16, 7 }
  0x4d   : > { %213 = vst [vmem:[#allocation2 + $0x30] sm:$0xf] %v7506_v0  ;;  %214 = vst [vmem:[#allocation2 + $0x34] sm:$0xf] %v7506_v0  ;;  %6696 = vmatpush3.bf16.msra.mxu0 %v7240_v4  ;;  %6505 = vmatprep.subr.bf16.mxu1 %v7241_v5  ;;  %vm612_vm2 = vsmask.f32 7938  ;;  %s7615_s22 = scalar_lea.vmem %s9154_s0, %s6157_s18 }
  0x4e   : > { %215 = vst [vmem:[#allocation2 + $0x38] sm:$0x1] %v7506_v0  ;;  %216 = vst [vmem:[#allocation2 + $0x3c] sm:$0xf] %v7506_v0  ;;  %6697 = vmatprep.subr.bf16.mxu0 %v7242_v6  ;;  %vm287_vm3 = vsmask.f32 256 }
  0x4f   : > { %217 = vst [vmem:[#allocation2 + $0x40] sm:$0xf] %v7506_v0  ;;  %218 = vst [vmem:[#allocation2 + $0x44] sm:$0x1] %v7506_v0  ;;  %vm288_vm4 = vsmask.f32 4368 }
  0x50   : > { %219 = vst [vmem:[#allocation2 + $0x48] sm:$0xf] %v7506_v0  ;;  %220 = vst [vmem:[#allocation2 + $0x4c] sm:$0xf] %v7506_v0  ;;  %6506 = vmatpush3.bf16.msra.mxu1 %v7241_v5  ;;  %v7245_v9 = vld [vmem:[#allocation3 + $0x60] sm:$0xff]   ;;  %v7247_v11 = vld [vmem:[#allocation3 + $0x68] sm:$0xff]  }
  0x51   : > { %221 = vst [vmem:[#allocation2 + $0x50] sm:$0x1] %v7506_v0  ;;  %222 = vst [vmem:[#allocation2 + $0x54] sm:$0xf] %v7506_v0  ;;  %6698 = vmatpush3.bf16.msra.mxu0 %v7242_v6  ;;  %6507 = vmatprep.subr.bf16.mxu1 %v7243_v7  ;;  %v7246_v10 = vld [vmem:[#allocation3 + $0x120] sm:$0xff]   ;;  %v7248_v12 = vld [vmem:[#allocation3 + $0x128] sm:$0xff]  }
  0x52   : > { %223 = vst [vmem:[#allocation2 + $0x58] sm:$0xf] %v7506_v0  ;;  %224 = vst [vmem:[#allocation2 + $0x5c] sm:$0x1] %v7506_v0  ;;  %6699 = vmatprep.subr.bf16.mxu0 %v7244_v8  ;;  %vm611_vm5 = vcmask 1043456   ;;  %vm618_vm6 = vcmask 1040384  }
  0x53   : > { %225 = vst [vmem:[#allocation2 + $0x60] sm:$0xf] %v7506_v0  ;;  %226 = vst [vmem:[#allocation2 + $0x64] sm:$0xf] %v7506_v0  ;;  %v728_v13 = vld [vmem:[#allocation2] sm:$0xf] }
  0x54   : > { %227 = vst [vmem:[#allocation2 + $0x68] sm:$0x1] %v7506_v0  ;;  %228 = vst [vmem:[#allocation2 + $0x6c] sm:$0xf] %v7506_v0  ;;  %6508 = vmatpush3.bf16.msra.mxu1 %v7243_v7  ;;  %v729_v14 = vld [vmem:[#allocation2 + $0x4] sm:$0xf] }
  0x55   : > { %229 = vst [vmem:[#allocation2 + $0x70] sm:$0xf] %v7506_v0  ;;  %230 = vst [vmem:[#allocation2 + $0x74] sm:$0x1] %v7506_v0  ;;  %6700 = vmatpush3.bf16.msra.mxu0 %v7244_v8  ;;  %6509 = vmatprep.subr.bf16.mxu1 %v7245_v9  ;;  %v776_v15 = vld [vmem:[#allocation2 + $0x8] sm:$0x1] }
  0x56   : > { %231 = vst [vmem:[#allocation2 + $0x78] sm:$0xf] %v7506_v0  ;;  %232 = vst [vmem:[#allocation2 + $0x7c] sm:$0xf] %v7506_v0  ;;  %6701 = vmatprep.subr.bf16.mxu0 %v7246_v10  ;;  %v796_v16 = vshrl.u32 %v728_v13, 16  ;;  %v799_v17 = vshll.u32 %v728_v13, 16 }
  0x57   : > { %233 = vst [vmem:[#allocation2 + $0x80] sm:$0x1] %v7506_v0  ;;  %234 = vst [vmem:[#allocation2 + $0x84] sm:$0xf] %v7506_v0  ;;  %v805_v18 = vshll.u32 %v729_v14, 16  ;;  %v809_v19 = vshrl.u32 %v729_v14, 16 }
  0x58   : > { %235 = vst [vmem:[#allocation2 + $0x88] sm:$0xf] %v7506_v0  ;;  %236 = vst [vmem:[#allocation2 + $0x8c] sm:$0x1] %v7506_v0  ;;  %v255_v20 = vld [vmem:[%s7615_s22] sm:$0xf]  ;;  %6510 = vmatpush3.bf16.msra.mxu1 %v7245_v9 }
  0x59   : > { %237 = vst [vmem:[#allocation2 + $0x90] sm:$0xf] %v7506_v0  ;;  %238 = vst [vmem:[#allocation2 + $0x94] sm:$0xf] %v7506_v0  ;;  %v815_v21 = vshll.u32 %v776_v15, 16  ;;  %v291_v23 = vshrl.u32 %v255_v20, 16  ;;  %6702 = vmatpush3.bf16.msra.mxu0 %v7246_v10  ;;  %6511 = vmatprep.subr.bf16.mxu1 %v7247_v11 }
  0x5a   : > { %239 = vst [vmem:[#allocation2 + $0x98] sm:$0x1] %v7506_v0  ;;  %240 = vst [vmem:[#allocation2 + $0x9c] sm:$0xf] %v7506_v0  ;;  %v256_v22 = vld [vmem:[%s7615_s22 + $0x4] sm:$0xf]  ;;  %6703 = vmatprep.subr.bf16.mxu0 %v7248_v12 }
  0x5b   : > { %241 = vst [vmem:[#allocation2 + $0xa0] sm:$0xf] %v7506_v0  ;;  %242 = vst [vmem:[#allocation2 + $0xa4] sm:$0x1] %v7506_v0  ;;  %v294_v24 = vshll.u32 %v255_v20, 16  ;;  %v798_v26 = vrot.slane %v796_v16, 4 }
  0x5c   : > { %243 = vst [vmem:[#allocation2 + $0xa8] sm:$0xf] %v7506_v0  ;;  %244 = vst [vmem:[#allocation2 + $0xac] sm:$0xf] %v7506_v0  ;;  %v801_v27 = vrot.slane %v799_v17, 5  ;;  %v807_v28 = vrot.slane %v805_v18, 5  ;;  %6512 = vmatpush3.bf16.msra.mxu1 %v7247_v11 }
  0x5d   : > { %245 = vst [vmem:[#allocation2 + $0xb0] sm:$0x1] %v7506_v0  ;;  %246 = vst [vmem:[#allocation2 + $0xb4] sm:$0xf] %v7506_v0  ;;  %v811_v29 = vrot.slane %v809_v19, 4  ;;  %v7249_v30 = vld [vmem:[#allocation3 + $0x70] sm:$0xff]   ;;  %6704 = vmatpush3.bf16.msra.mxu0 %v7248_v12 }
  0x5e   : > { %247 = vst [vmem:[#allocation2 + $0xb8] sm:$0xf] %v7506_v0  ;;  %248 = vst [vmem:[#allocation2 + $0xbc] sm:$0x1] %v7506_v0  ;;  %v293_v31 = vrot.slane %v291_v23, 7  ;;  %v299_v32 = vshrl.u32 %v256_v22, 16  ;;  %v802_v37 = vor.u32 %v801_v27, %v798_v26  ;;  %6513 = vmatprep.subr.bf16.mxu1 %v7249_v30 }
  0x5f   : > { %249 = vst [vmem:[#allocation2 + $0xc0] sm:$0xf] %v7506_v0  ;;  %250 = vst [vmem:[#allocation2 + $0xc4] sm:$0xf] %v7506_v0  ;;  %v302_v33 = vshll.u32 %v256_v22, 16  ;;  %v7250_v36 = vld [vmem:[#allocation3 + $0x130] sm:$0xff]   ;;  %v812_v38 = vor.u32 %v811_v29, %v807_v28 }
  0x60   : > { %251 = vst [vmem:[#allocation2 + $0xc8] sm:$0x1] %v7506_v0  ;;  %252 = vst [vmem:[#allocation2 + $0xcc] sm:$0xf] %v7506_v0  ;;  %v614_v35 = vld [vmem:[#allocation2 + $0xc] sm:$0xf]  ;;  %v296_v42 = vor.u32 %v294_v24, %v293_v31  ;;  %6705 = vmatprep.subr.bf16.mxu0 %v7250_v36  ;;  %6514 = vmatpush3.bf16.msra.mxu1 %v7249_v30 }
  0x61   : > { %253 = vst [vmem:[#allocation2 + $0xd0] sm:$0xf] %v7506_v0  ;;  %254 = vst [vmem:[#allocation2 + $0xd4] sm:$0x1] %v7506_v0  ;;  %v817_v39 = vrot.slane %v815_v21, 5  ;;  %v7251_v40 = vld [vmem:[#allocation3 + $0x78] sm:$0xff]   ;;  %6706 = vmatpush3.bf16.msra.mxu0 %v7250_v36 }
  0x62   : > { %vm7621_vm7 = vmor %vm792_vm0, %vm793_vm1  ;;  %v297_v43 = vrot.slane %v293_v31, 4  ;;  %v301_v44 = vrot.slane %v299_v32, 7  ;;  %v257_v45 = vld [vmem:[%s7615_s22 + $0x8] sm:$0xf]  ;;  %v258_v46 = vld [vmem:[%s7615_s22 + $0xc] sm:$0xf]  ;;  %6515 = vmatprep.subr.bf16.mxu1 %v7251_v40 }
  0x63   : > { %vm7627_vm8 = vmand %vm611_vm5, %vm612_vm2  ;;  %v7252_v47 = vld [vmem:[#allocation3 + $0x138] sm:$0xff]   ;;  %v803_v48 = vrot.slane %v802_v37, 4  ;;  %v813_v49 = vrot.slane %v812_v38, 4  ;;  %v308_v52 = vshrl.u32 %v257_v45, 16  ;;  %v311_v53 = vshll.u32 %v257_v45, 16  ;;  %v7657_v8 = vld [vmem:[#allocation3] sm:$0xff]  }
  0x64   : > { %vm7633_vm9 = vmor %vm287_vm3, %vm288_vm4  ;;  %v620_v51 = vld [vmem:[#allocation2 + $0x14] sm:$0x1]  ;;  %v304_v54 = vor.u32 %v302_v33, %v301_v44  ;;  %v306_v55 = vrot.slane %v301_v44, 4  ;;  %v615_v56 = vsel %vm7627_vm8, %v296_v42, %v614_v35  ;;  %v316_v57 = vshrl.u32 %v258_v46, 16  ;;  %v623_v58 = vld [vmem:[#allocation2 + $0x18] sm:$0xf]  ;;  %6707 = vmatprep.subr.bf16.mxu0 %v7252_v47  ;;  %6516 = vmatpush3.bf16.msra.mxu1 %v7251_v40 }
  0x65   : > { %vm7641_vm10 = vmand %vm618_vm6, %vm287_vm3  ;;  %v808_v59 = vsel %vm7621_vm7, %v803_v48, %v807_v28  ;;  %v818_v60 = vsel %vm7621_vm7, %v813_v49, %v817_v39  ;;  %616 = vst [vmem:[#allocation2 + $0xc] sm:$0xf] %v615_v56  ;;  %v310_v61 = vrot.slane %v308_v52, 7  ;;  %v319_v62 = vshll.u32 %v258_v46, 16  ;;  %v627_v63 = vld [vmem:[#allocation2 + $0x20] sm:$0x1]  ;;  %6708 = vmatpush3.bf16.msra.mxu0 %v7252_v47  ;;  %6549 = vmatprep.subr.bf16.mxu1 %v7657_v8 }
  0x66   : > { %v5858_v0 = vcombine.low %v808_v59, %v818_v60  ;;  %v305_v1 = vsel %vm7633_vm9, %v297_v43, %v304_v54  ;;  %v621_v2 = vsel %vm7641_vm10, %v306_v55, %v620_v51  ;;  %v318_v3 = vrot.slane %v316_v57, 7  ;;  %v259_v6 = vld [vmem:[%s7615_s22 + $0x10] sm:$0xf]  ;;  %v260_v7 = vld [vmem:[%s7615_s22 + $0x14] sm:$0xf]  ;;  %v7661_v14 = vld [vmem:[#allocation3 + $0x140] sm:$0xff]  }
  0x67   : > { %617 = vst [vmem:[#allocation2 + $0x10] sm:$0xf] %v305_v1  ;;  %622 = vst [vmem:[#allocation2 + $0x14] sm:$0x1] %v621_v2  ;;  %v313_v4 = vor.u32 %v311_v53, %v310_v61  ;;  %v314_v5 = vrot.slane %v310_v61, 4  ;;  %v325_v11 = vshrl.u32 %v259_v6, 16  ;;  %6741 = vmatprep.subr.bf16.mxu0 %v7661_v14 }
  0x68   : > { %v321_v9 = vor.u32 %v319_v62, %v318_v3  ;;  %v323_v10 = vrot.slane %v318_v3, 4  ;;  %v328_v12 = vshll.u32 %v259_v6, 16  ;;  %6517 = vmatprep.mubr.bf16.mxu1 %v5858_v0  ;;  %v333_v15 = vshrl.u32 %v260_v7, 16  ;;  %v630_v16 = vld [vmem:[#allocation2 + $0x24] sm:$0xf]  ;;  %s5856_s23 = sshll.u32 %s7533_s13, 5 }
  0x69   : > { %v624_v13 = vsel %vm7627_vm8, %v313_v4, %v623_v58  ;;  %v7667_v19 = vrot.slane %v325_v11, 7  ;;  %v7670_v20 = vld [vmem:[%s7615_s22 + $0x18] sm:$0xf]  ;;  %v336_v22 = vshll.u32 %v260_v7, 16  ;;  %v7675_v23 = vld [vmem:[%s7615_s22 + $0x1c] sm:$0xf] }
  0x6a   : > { %v322_v17 = vsel %vm7633_vm9, %v314_v5, %v321_v9  ;;  %625 = vst [vmem:[#allocation2 + $0x18] sm:$0xf] %v624_v13  ;;  %v628_v18 = vsel %vm7641_vm10, %v323_v10, %v627_v63  ;;  %v7672_v21 = vrot.slane %v333_v15, 7  ;;  %v342_v24 = vshrl.u32 %v7670_v20, 16  ;;  %p195_p9 = scmp.lt.s32.totalorder %s5856_s23, 63 }
  0x6b   : > { %626 = vst [vmem:[#allocation2 + $0x1c] sm:$0xf] %v322_v17  ;;  %629 = vst [vmem:[#allocation2 + $0x20] sm:$0x1] %v628_v18  ;;  %v345_v26 = vshll.u32 %v7670_v20, 16  ;;  %v330_v29 = vor.u32 %v328_v12, %v7667_v19  ;;  %v331_v30 = vrot.slane %v7667_v19, 4 }
  0x6c   : > { %v2645_v27 = vld [vmem:[#allocation2 + $0xc] sm:$0xf]  ;;  %v350_v31 = vshrl.u32 %v7675_v23, 16  ;;  %v7694_v51 = vor.u32 %v336_v22, %v7672_v21  ;;  %vm1822_vm11 = vcmask 1042432   ;;  %vm1823_vm12 = vcmask 1046532   ;;  %s9263_s23 = smov (!%p195_p9, %s5856_s23), 63 }
  0x6d   : > { %v730_v28 = vld [vmem:[#allocation2 + $0xc] sm:$0xf]  ;;  %v2694_v32 = vshrl.u32 %v2645_v27, 16  ;;  %v2697_v33 = vshll.u32 %v2645_v27, 16  ;;  %v631_v40 = vsel %vm7627_vm8, %v330_v29, %v630_v16  ;;  %vm7780_vm13 = vmor %vm1822_vm11, %vm1823_vm12  ;;  %s5857_s13 = sshll.u32 %s9263_s23, 2 }
  0x6e   : > { %v820_v35 = vshrl.u32 %v730_v28, 16  ;;  %v823_v36 = vshll.u32 %v730_v28, 16  ;;  %v7684_v37 = vld [vmem:[#allocation2 + $0x10] sm:$0xf]  ;;  %v7686_v38 = vld [vmem:[#allocation2 + $0x14] sm:$0x1]  ;;  %s9101_s26 = scalar_lea.vmem %s9157_s3, %s5857_s13 }
  0x6f   : > { %v731_v39 = vld [vmem:[#allocation2 + $0x10] sm:$0xf]  ;;  %v2696_v42 = vrot.slane %v2694_v32, 4  ;;  %v2699_v43 = vrot.slane %v2697_v33, 5  ;;  %v2703_v44 = vshll.u32 %v7684_v37, 16  ;;  %v2707_v45 = vshrl.u32 %v7684_v37, 16 }
  0x70   : > { %v777_v46 = vld [vmem:[#allocation2 + $0x14] sm:$0x1]  ;;  %632 = vst [vmem:[#allocation2 + $0x24] sm:$0xf] %v631_v40  ;;  %v2713_v47 = vshll.u32 %v7686_v38, 16  ;;  %v822_v48 = vrot.slane %v820_v35, 4 }
  0x71   : > { %v825_v49 = vrot.slane %v823_v36, 5  ;;  %v2700_v52 = vor.u32 %v2699_v43, %v2696_v42  ;;  %v2705_v53 = vrot.slane %v2703_v44, 5  ;;  %v2709_v54 = vrot.slane %v2707_v45, 4  ;;  %v2648_v56 = vld [vmem:[#allocation2 + $0x18] sm:$0xf] }
  0x72   : > { %v829_v55 = vshll.u32 %v731_v39, 16  ;;  %v3468_v57 = vrot.slane %v7686_v38, 5  ;;  %v833_v59 = vshrl.u32 %v731_v39, 16  ;;  %v839_v60 = vshll.u32 %v777_v46, 16  ;;  %v7697_v61 = vld [vmem:[#allocation2 + $0x1c] sm:$0xf] }
  0x73   : > { %v826_v58 = vor.u32 %v825_v49, %v822_v48  ;;  %v2701_v62 = vrot.slane %v2700_v52, 4  ;;  %v2710_v63 = vor.u32 %v2709_v54, %v2705_v53  ;;  %v2715_v0 = vrot.slane %v2713_v47, 5  ;;  %v7699_v5 = vld [vmem:[#allocation2 + $0x20] sm:$0x1]  ;;  %v732_v17 = vld [vmem:[#allocation2 + $0x18] sm:$0xf] }
  0x74   : > { %v831_v1 = vrot.slane %v829_v55, 5  ;;  %v835_v3 = vrot.slane %v833_v59, 4  ;;  %v841_v4 = vrot.slane %v839_v60, 5  ;;  %v2718_v6 = vshrl.u32 %v2648_v56, 16  ;;  %v733_v18 = vld [vmem:[#allocation2 + $0x1c] sm:$0xf] }
  0x75   : > { %v827_v2 = vrot.slane %v826_v58, 4  ;;  %v2706_v7 = vsel %vm7621_vm7, %v2701_v62, %v2705_v53  ;;  %v2711_v9 = vrot.slane %v2710_v63, 4  ;;  %v2721_v10 = vshll.u32 %v2648_v56, 16  ;;  %v778_v32 = vld [vmem:[#allocation2 + $0x20] sm:$0x1] }
  0x76   : > { %v2727_v11 = vshll.u32 %v7697_v61, 16  ;;  %v836_v13 = vor.u32 %v835_v3, %v831_v1  ;;  %v2720_v15 = vrot.slane %v2718_v6, 4  ;;  %v2731_v16 = vshrl.u32 %v7697_v61, 16  ;;  %v634_v55 = vld [vmem:[#allocation2 + $0x2c] sm:$0x1]  ;;  %v7256_v56 = vld [vmem:[#allocation3 + $0x8] sm:$0xff]  }
  0x77   : > { %v832_v12 = vsel %vm7621_vm7, %v827_v2, %v831_v1  ;;  %v2716_v22 = vsel %vm7621_vm7, %v2711_v9, %v2715_v0  ;;  %v2723_v27 = vrot.slane %v2721_v10, 5  ;;  %v2737_v29 = vshll.u32 %v7699_v5, 16  ;;  %v2651_v63 = vld [vmem:[#allocation2 + $0x24] sm:$0xf] }
  0x78   : > { %v2729_v28 = vrot.slane %v2727_v11, 5  ;;  %v5970_v33 = vcombine.low %v2706_v7, %v2716_v22  ;;  %v837_v35 = vrot.slane %v836_v13, 4  ;;  %v2733_v36 = vrot.slane %v2731_v16, 4  ;;  %v7364_v34 = vld [vmem:[#allocation2 + $0x24] sm:$0xf] }
  0x79   : > { %v3472_v39 = vrot.slane %v7697_v61, 5  ;;  %v2724_v40 = vor.u32 %v2723_v27, %v2720_v15  ;;  %v2739_v42 = vrot.slane %v2737_v29, 5  ;;  %v3475_v43 = vrot.slane %v7699_v5, 5  ;;  %v7736_v29 = vld [vmem:[%s7615_s22 + $0x20] sm:$0xf] }
  0x7a   : > { %v844_v44 = vshrl.u32 %v732_v17, 16  ;;  %6709 = vmatprep.mubr.bf16.mxu0 %v5970_v33  ;;  %v842_v45 = vsel %vm7621_vm7, %v837_v35, %v841_v4  ;;  %v2734_v46 = vor.u32 %v2733_v36, %v2729_v28  ;;  %v847_v48 = vshll.u32 %v732_v17, 16  ;;  %v734_v4 = vld [vmem:[#allocation2 + $0x24] sm:$0xf]  ;;  %v637_v17 = vld [vmem:[#allocation2 + $0x30] sm:$0xf] }
  0x7b   : > { %v7716_v47 = vrot.slane %v3472_v39, 4  ;;  %v5859_v49 = vcombine.low %v832_v12, %v842_v45  ;;  %v2725_v52 = vrot.slane %v2724_v40, 4  ;;  %v853_v54 = vshll.u32 %v733_v18, 16  ;;  %v7255_v12 = vld [vmem:[#allocation3 + $0x148] sm:$0xff]   ;;  %v641_v40 = vld [vmem:[#allocation2 + $0x38] sm:$0x1] }
  0x7c   : > { %v846_v53 = vrot.slane %v844_v44, 4  ;;  %v2735_v58 = vrot.slane %v2734_v46, 4  ;;  %v849_v59 = vrot.slane %v847_v48, 5  ;;  %v857_v60 = vshrl.u32 %v733_v18, 16 }
  0x7d   : > { %v863_v62 = vshll.u32 %v778_v32, 16  ;;  %6518 = vmatmul.mubr.bf16.vlgmr.msra.gmra.mrb[0].mxu1 %v5859_v49  ;;  %v2730_v0 = vsel %vm7621_vm7, %v2725_v52, %v2729_v28  ;;  %v855_v1 = vrot.slane %v853_v54, 5  ;;  %v339_v2 = vsel %vm7633_vm9, %v331_v30, %v7694_v51  ;;  %v7262_v52 = vld [vmem:[#allocation3 + $0x18] sm:$0xff]  }
  0x7e   : > { %v340_v3 = vrot.slane %v7672_v21, 4  ;;  %v2740_v6 = vsel %vm7621_vm7, %v2735_v58, %v2739_v42  ;;  %6550 = vmatpush3.bf16.msra.mxu1 %v7657_v8  ;;  %v850_v7 = vor.u32 %v849_v59, %v846_v53  ;;  %v859_v9 = vrot.slane %v857_v60, 4  ;;  %633 = vst [vmem:[#allocation2 + $0x28] sm:$0xf] %v339_v2  ;;  %v7259_v21 = vld [vmem:[#allocation3 + $0x10] sm:$0xff]   ;;  %v7265_v58 = vld [vmem:[#allocation3 + $0x20] sm:$0xff]  }
  0x7f   : > { %v865_v10 = vrot.slane %v863_v62, 5  ;;  %v5971_v11 = vcombine.low %v2730_v0, %v2740_v6  ;;  %v2742_v13 = vshrl.u32 %v2651_v63, 16  ;;  %v2745_v15 = vshll.u32 %v2651_v63, 16  ;;  %6551 = vmatprep.subr.bf16.mxu1 %v7256_v56  ;;  %v7257_v42 = vld [vmem:[#allocation3 + $0x150] sm:$0xff]   ;;  %v264_v0 = vld [vmem:[%s7615_s22 + $0x24] sm:$0xf] }
  0x80   : > { %v635_v19 = vsel %vm7641_vm10, %v340_v3, %v634_v55  ;;  %v851_v30 = vrot.slane %v850_v7, 4  ;;  %v860_v51 = vor.u32 %v859_v9, %v855_v1  ;;  %v868_v8 = vshrl.u32 %v734_v4, 16 }
  0x81   : > { %636 = vst [vmem:[#allocation2 + $0x2c] sm:$0x1] %v635_v19  ;;  %v871_v16 = vshll.u32 %v734_v4, 16  ;;  %6710 = vmatmul.mubr.bf16.vlgmr.msra.gmra.mrb[0].mxu0 %v5971_v11  ;;  %v2744_v18 = vrot.slane %v2742_v13, 4  ;;  %v2747_v22 = vrot.slane %v2745_v15, 5  ;;  %v344_v27 = vrot.slane %v342_v24, 7 }
  0x82   : > { %v352_v28 = vrot.slane %v350_v31, 7  ;;  %6742 = vmatpush3.bf16.msra.mxu0 %v7661_v14  ;;  %v856_v32 = vsel %vm7621_vm7, %v851_v30, %v855_v1  ;;  %v861_v33 = vrot.slane %v860_v51, 4  ;;  %v870_v35 = vrot.slane %v868_v8, 4  ;;  %6552 = vmatpush3.bf16.msra.mxu1 %v7256_v56  ;;  %v7258_v56 = vld [vmem:[#allocation3 + $0x158] sm:$0xff]   ;;  %v644_v19 = vld [vmem:[#allocation2 + $0x3c] sm:$0xf] }
  0x83   : > { %v873_v36 = vrot.slane %v871_v16, 5  ;;  %6743 = vmatprep.subr.bf16.mxu0 %v7255_v12  ;;  %v2748_v44 = vor.u32 %v2747_v22, %v2744_v18  ;;  %v347_v24 = vor.u32 %v345_v26, %v344_v27  ;;  %v348_v45 = vrot.slane %v344_v27, 4  ;;  %6553 = vmatprep.subr.bf16.mxu1 %v7259_v21  ;;  %v7770_v51 = vld [vmem:[%s7615_s22 + $0x28] sm:$0xf] }
  0x84   : > { %v353_v31 = vshll.u32 %v7675_v23, 16  ;;  %v866_v14 = vsel %vm7621_vm7, %v861_v33, %v865_v10  ;;  %v357_v48 = vrot.slane %v352_v28, 4  ;;  %v359_v49 = vshrl.u32 %v7736_v29, 16  ;;  %v7260_v33 = vld [vmem:[#allocation3 + $0x160] sm:$0xff]  }
  0x85   : > { %v874_v46 = vor.u32 %v873_v36, %v870_v35  ;;  %v5860_v53 = vcombine.low %v856_v32, %v866_v14  ;;  %v7747_v54 = vld [vmem:[#allocation2 + $0x28] sm:$0xf]  ;;  %v7749_v55 = vrot.slane %v2748_v44, 4  ;;  %v638_v23 = vsel %vm7627_vm8, %v347_v24, %v637_v17  ;;  %v7267_v35 = vld [vmem:[#allocation3 + $0x28] sm:$0xff]  }
  0x86   : > { %v735_v20 = vld [vmem:[#allocation2 + $0x28] sm:$0xf]  ;;  %v355_v26 = vor.u32 %v353_v31, %v352_v28  ;;  %6744 = vmatpush3.bf16.msra.mxu0 %v7255_v12  ;;  %v2751_v59 = vshll.u32 %v7747_v54, 16  ;;  %v2755_v60 = vshrl.u32 %v7747_v54, 16  ;;  %639 = vst [vmem:[#allocation2 + $0x30] sm:$0xf] %v638_v23  ;;  %6554 = vmatpush3.bf16.msra.mxu1 %v7259_v21  ;;  %v642_v6 = vsel %vm7641_vm10, %v357_v48, %v641_v40 }
  0x87   : > { %v7755_v62 = vrot.slane %v874_v46, 4  ;;  %v877_v63 = vshll.u32 %v735_v20, 16  ;;  %6521 = vmatprep.mubr.bf16.mxu1 %v5860_v53  ;;  %v881_v3 = vshrl.u32 %v735_v20, 16  ;;  %6745 = vmatprep.subr.bf16.mxu0 %v7257_v42  ;;  %v7764_v7 = vrot.slane %v359_v49, 7  ;;  %643 = vst [vmem:[#allocation2 + $0x38] sm:$0x1] %v642_v6 }
  0x88   : > { %v7758_v1 = vld [vmem:[#allocation2 + $0x2c] sm:$0x1]  ;;  %v356_v4 = vsel %vm7633_vm9, %v348_v45, %v355_v26  ;;  %v2753_v9 = vrot.slane %v2751_v59, 5  ;;  %v2757_v10 = vrot.slane %v2755_v60, 4  ;;  %6555 = vmatprep.subr.bf16.mxu1 %v7262_v52  ;;  %v362_v21 = vshll.u32 %v7736_v29, 16  ;;  %v7261_v20 = vld [vmem:[#allocation3 + $0x168] sm:$0xff]  }
  0x89   : > { %v779_v2 = vld [vmem:[#allocation2 + $0x2c] sm:$0x1]  ;;  %v2761_v11 = vshll.u32 %v7758_v1, 16  ;;  %v879_v12 = vrot.slane %v877_v63, 5  ;;  %640 = vst [vmem:[#allocation2 + $0x34] sm:$0xf] %v356_v4  ;;  %v7796_v48 = vsel %vm7780_vm13, %v7716_v47, %v3475_v43 }
  0x8a   : > { %v883_v13 = vrot.slane %v881_v3, 4  ;;  %v887_v15 = vshll.u32 %v779_v2, 16  ;;  %v365_v30 = vrot.slane %v7764_v7, 4  ;;  %v2754_v8 = vsel %vm7621_vm7, %v7749_v55, %v2753_v9  ;;  %6746 = vmatpush3.bf16.msra.mxu0 %v7257_v42  ;;  %6556 = vmatpush3.bf16.msra.mxu1 %v7262_v52 }
  0x8b   : > { %v2758_v16 = vor.u32 %v2757_v10, %v2753_v9  ;;  %v2763_v17 = vrot.slane %v2761_v11, 5  ;;  %v880_v18 = vsel %vm7621_vm7, %v7755_v62, %v879_v12  ;;  %6747 = vmatprep.subr.bf16.mxu0 %v7258_v56  ;;  %v364_v29 = vor.u32 %v362_v21, %v7764_v7  ;;  %6557 = vmatprep.subr.bf16.mxu1 %v7265_v58 }
  0x8c   : > { %v884_v27 = vor.u32 %v883_v13, %v879_v12  ;;  %v889_v28 = vrot.slane %v887_v15, 5  ;;  %v367_v32 = vshrl.u32 %v264_v0, 16  ;;  %v370_v40 = vshll.u32 %v264_v0, 16  ;;  %v7263_v13 = vld [vmem:[#allocation3 + $0x170] sm:$0xff]  }
  0x8d   : > { %v2759_v36 = vrot.slane %v2758_v16, 4  ;;  %v376_v42 = vshrl.u32 %v7770_v51, 16  ;;  %v379_v44 = vshll.u32 %v7770_v51, 16  ;;  %v2654_v45 = vld [vmem:[#allocation2 + $0x30] sm:$0xf]  ;;  %v645_v46 = vsel %vm7627_vm8, %v364_v29, %v644_v19 }
  0x8e   : > { %v885_v24 = vrot.slane %v884_v27, 4  ;;  %v736_v31 = vld [vmem:[#allocation2 + $0x30] sm:$0xf]  ;;  %v7787_v14 = vrot.slane %v367_v32, 7  ;;  %v2766_v52 = vshrl.u32 %v2654_v45, 16  ;;  %v2769_v53 = vshll.u32 %v2654_v45, 16  ;;  %6748 = vmatpush3.bf16.msra.mxu0 %v7258_v56  ;;  %6558 = vmatpush3.bf16.msra.mxu1 %v7265_v58 }
  0x8f   : > { %v2764_v49 = vsel %vm7621_vm7, %v2759_v36, %v2763_v17  ;;  %v892_v55 = vshrl.u32 %v736_v31, 16  ;;  %646 = vst [vmem:[#allocation2 + $0x3c] sm:$0xf] %v645_v46  ;;  %v7804_v59 = vld [vmem:[#allocation2 + $0x38] sm:$0x1]  ;;  %6749 = vmatprep.subr.bf16.mxu0 %v7260_v33  ;;  %6559 = vmatprep.subr.bf16.mxu1 %v7267_v35  ;;  %v7269_v58 = vld [vmem:[#allocation3 + $0x30] sm:$0xff]  }
  0x90   : > { %v5972_v26 = vcombine.low %v2754_v8, %v2764_v49  ;;  %v890_v23 = vsel %vm7621_vm7, %v885_v24, %v889_v28  ;;  %v7802_v5 = vld [vmem:[#allocation2 + $0x34] sm:$0xf]  ;;  %v372_v47 = vor.u32 %v370_v40, %v7787_v14  ;;  %v2768_v62 = vrot.slane %v2766_v52, 4  ;;  %v780_v0 = vld [vmem:[#allocation2 + $0x38] sm:$0x1] }
  0x91   : > { %v737_v43 = vld [vmem:[#allocation2 + $0x34] sm:$0xf]  ;;  %v5861_v60 = vcombine.low %v880_v18, %v890_v23  ;;  %v2771_v56 = vrot.slane %v2769_v53, 5  ;;  %v2775_v63 = vshll.u32 %v7802_v5, 16  ;;  %v2779_v2 = vshrl.u32 %v7802_v5, 16 }
  0x92   : > { %6713 = vmatprep.mubr.bf16.mxu0 %v5972_v26  ;;  %v2785_v3 = vshll.u32 %v7804_v59, 16  ;;  %v894_v4 = vrot.slane %v892_v55, 4  ;;  %v895_v6 = vshll.u32 %v736_v31, 16  ;;  %v901_v11 = vshll.u32 %v737_v43, 16  ;;  %v648_v19 = vld [vmem:[#allocation2 + $0x44] sm:$0x1]  ;;  %6750 = vmatpush3.bf16.msra.mxu0 %v7260_v33 }
  0x93   : > { %6522 = vmatmul.mubr.bf16.gmra.mrb[4].mxu1 %v5861_v60  ;;  %v2772_v9 = vor.u32 %v2771_v56, %v2768_v62  ;;  %v2777_v10 = vrot.slane %v2775_v63, 5  ;;  %v905_v12 = vshrl.u32 %v737_v43, 16  ;;  %v2781_v15 = vrot.slane %v2779_v2, 4  ;;  %6751 = vmatprep.subr.bf16.mxu0 %v7261_v20  ;;  %v7264_v53 = vld [vmem:[#allocation3 + $0x178] sm:$0xff]   ;;  %v651_v63 = vld [vmem:[#allocation2 + $0x48] sm:$0xf] }
  0x94   : > { %v2787_v21 = vrot.slane %v2785_v3, 5  ;;  %v897_v8 = vrot.slane %v895_v6, 5  ;;  %v911_v16 = vshll.u32 %v780_v0, 16  ;;  %6560 = vmatpush3.bf16.msra.mxu1 %v7267_v35  ;;  %v903_v18 = vrot.slane %v901_v11, 5  ;;  %v7831_v6 = vld [vmem:[#allocation3 + $0x180] sm:$0xff]  }
  0x95   : > { %v2773_v17 = vrot.slane %v2772_v9, 4  ;;  %v907_v27 = vrot.slane %v905_v12, 4  ;;  %v373_v28 = vsel %vm7633_vm9, %v365_v30, %v372_v47  ;;  %6561 = vmatprep.subr.bf16.mxu1 %v7269_v58  ;;  %v2782_v29 = vor.u32 %v2781_v15, %v2777_v10  ;;  %v266_v47 = vld [vmem:[%s7615_s22 + $0x2c] sm:$0xf]  ;;  %v7366_v50 = vld [vmem:[#allocation2 + $0x30] sm:$0xf] }
  0x96   : > { %v898_v32 = vor.u32 %v897_v8, %v894_v4  ;;  %v913_v36 = vrot.slane %v911_v16, 5  ;;  %v374_v33 = vrot.slane %v7787_v14, 4  ;;  %647 = vst [vmem:[#allocation2 + $0x40] sm:$0xf] %v373_v28  ;;  %v2657_v40 = vld [vmem:[#allocation2 + $0x3c] sm:$0xf]  ;;  %6752 = vmatpush3.bf16.msra.mxu0 %v7261_v20 }
  0x97   : > { %v738_v24 = vld [vmem:[#allocation2 + $0x3c] sm:$0xf]  ;;  %v2778_v35 = vsel %vm7621_vm7, %v2773_v17, %v2777_v10  ;;  %v908_v45 = vor.u32 %v907_v27, %v903_v18  ;;  %v2790_v31 = vshrl.u32 %v2657_v40, 16  ;;  %v2793_v46 = vshll.u32 %v2657_v40, 16  ;;  %6753 = vmatprep.subr.bf16.mxu0 %v7263_v13  ;;  %v7271_v14 = vld [vmem:[#allocation3 + $0x38] sm:$0xff]  }
  0x98   : > { %v2783_v7 = vrot.slane %v2782_v29, 4  ;;  %v899_v49 = vrot.slane %v898_v32, 4  ;;  %v649_v30 = vsel %vm7641_vm10, %v374_v33, %v648_v19  ;;  %v916_v52 = vshrl.u32 %v738_v24, 16  ;;  %6562 = vmatpush3.bf16.msra.mxu1 %v7269_v58  ;;  %v7829_v4 = vld [vmem:[%s7615_s22 + $0x30] sm:$0xf]  ;;  %v7275_v29 = vld [vmem:[#allocation3 + $0x80] sm:$0xff]  }
  0x99   : > { %v909_v55 = vrot.slane %v908_v45, 4  ;;  %650 = vst [vmem:[#allocation2 + $0x44] sm:$0x1] %v649_v30  ;;  %v2792_v26 = vrot.slane %v2790_v31, 4  ;;  %v2795_v23 = vrot.slane %v2793_v46, 5  ;;  %v919_v43 = vshll.u32 %v738_v24, 16  ;;  %6563 = vmatprep.subr.bf16.mxu1 %v7271_v14 }
  0x9a   : > { %v2788_v20 = vsel %vm7621_vm7, %v2783_v7, %v2787_v21  ;;  %v904_v60 = vsel %vm7621_vm7, %v899_v49, %v903_v18  ;;  %v918_v62 = vrot.slane %v916_v52, 4  ;;  %v378_v56 = vrot.slane %v376_v42, 7  ;;  %6754 = vmatpush3.bf16.msra.mxu0 %v7263_v13  ;;  %v655_v46 = vld [vmem:[#allocation2 + $0x50] sm:$0x1] }
  0x9b   : > { %v5973_v0 = vcombine.low %v2778_v35, %v2788_v20  ;;  %v914_v58 = vsel %vm7621_vm7, %v909_v55, %v913_v36  ;;  %v2796_v2 = vor.u32 %v2795_v23, %v2792_v26  ;;  %v921_v3 = vrot.slane %v919_v43, 5  ;;  %6755 = vmatprep.subr.bf16.mxu0 %v7264_v53  ;;  %v269_v43 = vld [vmem:[%s7615_s22 + $0x38] sm:$0xf] }
  0x9c   : > { %v5862_v9 = vcombine.low %v904_v60, %v914_v58  ;;  %v381_v10 = vor.u32 %v379_v44, %v378_v56  ;;  %v382_v11 = vrot.slane %v378_v56, 4  ;;  %v384_v12 = vshrl.u32 %v266_v47, 16  ;;  %6564 = vmatpush3.bf16.msra.mxu1 %v7271_v14  ;;  %v658_v56 = vld [vmem:[#allocation2 + $0x54] sm:$0xf] }
  0x9d   : > { %6714 = vmatmul.mubr.bf16.gmra.mrb[4].mxu0 %v5973_v0  ;;  %v7835_v42 = vld [vmem:[#allocation2 + $0x40] sm:$0xf]  ;;  %v2797_v19 = vrot.slane %v2796_v2, 4  ;;  %v922_v21 = vor.u32 %v921_v3, %v918_v62  ;;  %v387_v8 = vshll.u32 %v266_v47, 16  ;;  %v393_v28 = vshrl.u32 %v7829_v4, 16  ;;  %6597 = vmatprep.subr.bf16.mxu1 %v7275_v29 }
  0x9e   : > { %v739_v15 = vld [vmem:[#allocation2 + $0x40] sm:$0xf]  ;;  %6525 = vmatprep.mubr.bf16.mxu1 %v5862_v9  ;;  %v2799_v13 = vshll.u32 %v7835_v42, 16  ;;  %v2803_v16 = vshrl.u32 %v7835_v42, 16  ;;  %v386_v44 = vrot.slane %v384_v12, 7  ;;  %v652_v27 = vsel %vm7627_vm8, %v381_v10, %v651_v63  ;;  %6756 = vmatpush3.bf16.msra.mxu0 %v7264_v53 }
  0x9f   : > { %v925_v17 = vshll.u32 %v739_v15, 16  ;;  %v929_v18 = vshrl.u32 %v739_v15, 16  ;;  %v923_v51 = vrot.slane %v922_v21, 4  ;;  %653 = vst [vmem:[#allocation2 + $0x48] sm:$0xf] %v652_v27  ;;  %6789 = vmatprep.subr.bf16.mxu0 %v7831_v6  ;;  %v395_v62 = vrot.slane %v393_v28, 7 }
  0xa0   : > { %v7842_v32 = vld [vmem:[#allocation2 + $0x44] sm:$0x1]  ;;  %v2801_v36 = vrot.slane %v2799_v13, 5  ;;  %v2805_v33 = vrot.slane %v2803_v16, 4  ;;  %v389_v30 = vor.u32 %v387_v8, %v386_v44  ;;  %v391_v52 = vrot.slane %v386_v44, 4 }
  0xa1   : > { %v781_v40 = vld [vmem:[#allocation2 + $0x44] sm:$0x1]  ;;  %v2809_v24 = vshll.u32 %v7842_v32, 16  ;;  %v927_v35 = vrot.slane %v925_v17, 5  ;;  %v931_v45 = vrot.slane %v929_v18, 4  ;;  %v396_v0 = vshll.u32 %v7829_v4, 16 }
  0xa2   : > { %v935_v31 = vshll.u32 %v781_v40, 16  ;;  %v2802_v7 = vsel %vm7621_vm7, %v2797_v19, %v2801_v36  ;;  %v2806_v49 = vor.u32 %v2805_v33, %v2801_v36  ;;  %v268_v53 = vld [vmem:[%s7615_s22 + $0x34] sm:$0xf]  ;;  %v390_v20 = vsel %vm7633_vm9, %v382_v11, %v389_v30  ;;  %v662_v10 = vld [vmem:[#allocation2 + $0x5c] sm:$0x1] }
  0xa3   : > { %v2811_v14 = vrot.slane %v2809_v24, 5  ;;  %v928_v55 = vsel %vm7621_vm7, %v923_v51, %v927_v35  ;;  %v932_v26 = vor.u32 %v931_v45, %v927_v35  ;;  %v656_v60 = vsel %vm7641_vm10, %v391_v52, %v655_v46  ;;  %654 = vst [vmem:[#allocation2 + $0x4c] sm:$0xf] %v390_v20  ;;  %v270_v44 = vld [vmem:[%s7615_s22 + $0x3c] sm:$0xf] }
  0xa4   : > { %v937_v23 = vrot.slane %v935_v31, 5  ;;  %v2807_v47 = vrot.slane %v2806_v49, 4  ;;  %657 = vst [vmem:[#allocation2 + $0x50] sm:$0x1] %v656_v60  ;;  %v401_v58 = vshrl.u32 %v268_v53, 16  ;;  %v404_v2 = vshll.u32 %v268_v53, 16 }
  0xa5   : > { %v933_v63 = vrot.slane %v932_v26, 4  ;;  %v399_v9 = vrot.slane %v395_v62, 4  ;;  %v410_v12 = vshrl.u32 %v269_v43, 16  ;;  %v413_v11 = vshll.u32 %v269_v43, 16 }
  0xa6   : > { %v2812_v3 = vsel %vm7621_vm7, %v2807_v47, %v2811_v14  ;;  %v2660_v21 = vld [vmem:[#allocation2 + $0x48] sm:$0xf]  ;;  %v398_v13 = vor.u32 %v396_v0, %v395_v62  ;;  %v403_v16 = vrot.slane %v401_v58, 7 }
  0xa7   : > { %v5974_v19 = vcombine.low %v2802_v7, %v2812_v3  ;;  %v938_v15 = vsel %vm7621_vm7, %v933_v63, %v937_v23  ;;  %v740_v8 = vld [vmem:[#allocation2 + $0x48] sm:$0xf]  ;;  %v2814_v4 = vshrl.u32 %v2660_v21, 16  ;;  %v2817_v18 = vshll.u32 %v2660_v21, 16 }
  0xa8   : > { %v5863_v17 = vcombine.low %v928_v55, %v938_v15  ;;  %v940_v51 = vshrl.u32 %v740_v8, 16  ;;  %v943_v27 = vshll.u32 %v740_v8, 16  ;;  %v406_v28 = vor.u32 %v404_v2, %v403_v16 }
  0xa9   : > { %6717 = vmatprep.mubr.bf16.mxu0 %v5974_v19  ;;  %v408_v29 = vrot.slane %v403_v16, 4  ;;  %v659_v36 = vsel %vm7627_vm8, %v398_v13, %v658_v56  ;;  %v2816_v33 = vrot.slane %v2814_v4, 4  ;;  %v2819_v40 = vrot.slane %v2817_v18, 5 }
  0xaa   : > { %6526 = vmatmul.mubr.bf16.gmra.mrb[8].mxu1 %v5863_v17  ;;  %v942_v24 = vrot.slane %v940_v51, 4  ;;  %660 = vst [vmem:[#allocation2 + $0x54] sm:$0xf] %v659_v36  ;;  %v7864_v35 = vrot.slane %v410_v12, 7  ;;  %v945_v45 = vrot.slane %v943_v27, 5  ;;  %v407_v31 = vsel %vm7633_vm9, %v399_v9, %v406_v28 }
  0xab   : > { %v663_v46 = vsel %vm7641_vm10, %v408_v29, %v662_v10  ;;  %v418_v7 = vshrl.u32 %v270_v44, 16  ;;  %v7870_v49 = vld [vmem:[#allocation2 + $0x4c] sm:$0xf]  ;;  %v7872_v30 = vld [vmem:[#allocation2 + $0x50] sm:$0x1]  ;;  %v2820_v52 = vor.u32 %v2819_v40, %v2816_v33  ;;  %v421_v16 = vshll.u32 %v270_v44, 16 }
  0xac   : > { %v741_v53 = vld [vmem:[#allocation2 + $0x4c] sm:$0xf]  ;;  %661 = vst [vmem:[#allocation2 + $0x58] sm:$0xf] %v407_v31  ;;  %664 = vst [vmem:[#allocation2 + $0x5c] sm:$0x1] %v663_v46  ;;  %v415_v14 = vor.u32 %v413_v11, %v7864_v35  ;;  %v946_v47 = vor.u32 %v945_v45, %v942_v24 }
  0xad   : > { %v2823_v55 = vshll.u32 %v7870_v49, 16  ;;  %v2827_v26 = vshrl.u32 %v7870_v49, 16  ;;  %v2833_v23 = vshll.u32 %v7872_v30, 16  ;;  %v782_v43 = vld [vmem:[#allocation2 + $0x50] sm:$0x1]  ;;  %v2821_v20 = vrot.slane %v2820_v52, 4 }
  0xae   : > { %v949_v60 = vshll.u32 %v741_v53, 16  ;;  %v953_v62 = vshrl.u32 %v741_v53, 16  ;;  %v959_v56 = vshll.u32 %v782_v43, 16  ;;  %v947_v2 = vrot.slane %v946_v47, 4  ;;  %v665_v11 = vld [vmem:[#allocation2 + $0x60] sm:$0xf] }
  0xaf   : > { %v2825_v63 = vrot.slane %v2823_v55, 5  ;;  %v2829_v0 = vrot.slane %v2827_v26, 4  ;;  %v2835_v58 = vrot.slane %v2833_v23, 5  ;;  %v416_v12 = vrot.slane %v7864_v35, 4  ;;  %v669_v47 = vld [vmem:[#allocation2 + $0x68] sm:$0x1] }
  0xb0   : > { %v951_v3 = vrot.slane %v949_v60, 5  ;;  %v955_v9 = vrot.slane %v953_v62, 4  ;;  %v961_v10 = vrot.slane %v959_v56, 5  ;;  %v420_v13 = vrot.slane %v418_v7, 7 }
  0xb1   : > { %v2826_v19 = vsel %vm7621_vm7, %v2821_v20, %v2825_v63  ;;  %v2830_v15 = vor.u32 %v2829_v0, %v2825_v63  ;;  %v2663_v21 = vld [vmem:[#allocation2 + $0x54] sm:$0xf]  ;;  %v666_v40 = vsel %vm7627_vm8, %v415_v14, %v665_v11 }
  0xb2   : > { %v742_v8 = vld [vmem:[#allocation2 + $0x54] sm:$0xf]  ;;  %v952_v17 = vsel %vm7621_vm7, %v947_v2, %v951_v3  ;;  %v956_v4 = vor.u32 %v955_v9, %v951_v3  ;;  %v2838_v18 = vshrl.u32 %v2663_v21, 16  ;;  %v2841_v51 = vshll.u32 %v2663_v21, 16  ;;  %667 = vst [vmem:[#allocation2 + $0x60] sm:$0xf] %v666_v40 }
  0xb3   : > { %v2831_v27 = vrot.slane %v2830_v15, 4  ;;  %v7883_v28 = vld [vmem:[#allocation2 + $0x58] sm:$0xf]  ;;  %v7885_v29 = vld [vmem:[#allocation2 + $0x5c] sm:$0x1]  ;;  %v964_v36 = vshrl.u32 %v742_v8, 16  ;;  %v423_v33 = vor.u32 %v421_v16, %v420_v13 }
  0xb4   : > { %v957_v24 = vrot.slane %v956_v4, 4  ;;  %v2840_v35 = vrot.slane %v2838_v18, 4  ;;  %v2843_v45 = vrot.slane %v2841_v51, 5  ;;  %v2847_v44 = vshll.u32 %v7883_v28, 16  ;;  %v743_v31 = vld [vmem:[#allocation2 + $0x58] sm:$0xf] }
  0xb5   : > { %v2836_v46 = vsel %vm7621_vm7, %v2831_v27, %v2835_v58  ;;  %v2851_v7 = vshrl.u32 %v7883_v28, 16  ;;  %v2857_v52 = vshll.u32 %v7885_v29, 16  ;;  %v783_v53 = vld [vmem:[#allocation2 + $0x5c] sm:$0x1]  ;;  %v966_v55 = vrot.slane %v964_v36, 4 }
  0xb6   : > { %v5975_v26 = vcombine.low %v2826_v19, %v2836_v46  ;;  %v962_v14 = vsel %vm7621_vm7, %v957_v24, %v961_v10  ;;  %v2844_v23 = vor.u32 %v2843_v45, %v2840_v35  ;;  %v2849_v43 = vrot.slane %v2847_v44, 5  ;;  %v3399_v3 = vld [vmem:[#allocation2 + $0xc] sm:$0xe] }
  0xb7   : > { %v5864_v20 = vcombine.low %v952_v17, %v962_v14  ;;  %v2853_v60 = vrot.slane %v2851_v7, 4  ;;  %v2859_v62 = vrot.slane %v2857_v52, 5  ;;  %v967_v56 = vshll.u32 %v742_v8, 16 }
  0xb8   : > { %6718 = vmatmul.mubr.bf16.gmra.mrb[8].mxu0 %v5975_v26  ;;  %v2845_v63 = vrot.slane %v2844_v23, 4  ;;  %v973_v0 = vshll.u32 %v743_v31, 16  ;;  %v977_v58 = vshrl.u32 %v743_v31, 16  ;;  %v983_v2 = vshll.u32 %v783_v53, 16  ;;  %v271_v31 = vld [vmem:[%s7615_s22 + $0x40] sm:$0xf] }
  0xb9   : > { %6529 = vmatprep.mubr.bf16.mxu1 %v5864_v20  ;;  %v2854_v9 = vor.u32 %v2853_v60, %v2849_v43  ;;  %v969_v11 = vrot.slane %v967_v56, 5  ;;  %v424_v19 = vsel %vm7633_vm9, %v416_v12, %v423_v33  ;;  %v425_v10 = vrot.slane %v420_v13, 4  ;;  %v2666_v51 = vld [vmem:[#allocation2 + $0x60] sm:$0xf] }
  0xba   : > { %v2850_v15 = vsel %vm7621_vm7, %v2845_v63, %v2849_v43  ;;  %v975_v21 = vrot.slane %v973_v0, 5  ;;  %v979_v16 = vrot.slane %v977_v58, 4  ;;  %v985_v17 = vrot.slane %v983_v2, 5  ;;  %668 = vst [vmem:[#allocation2 + $0x64] sm:$0xf] %v424_v19 }
  0xbb   : > { %v2855_v8 = vrot.slane %v2854_v9, 4  ;;  %v970_v4 = vor.u32 %v969_v11, %v966_v55  ;;  %v670_v18 = vsel %vm7641_vm10, %v425_v10, %v669_v47  ;;  %v744_v27 = vld [vmem:[#allocation2 + $0x60] sm:$0xf]  ;;  %v5994_v36 = vrot.slane %v3399_v3, 9  ;;  %v272_v55 = vld [vmem:[%s7615_s22 + $0x44] sm:$0xf] }
  0xbc   : > { %v980_v40 = vor.u32 %v979_v16, %v975_v21  ;;  %671 = vst [vmem:[#allocation2 + $0x68] sm:$0x1] %v670_v18  ;;  %v2862_v12 = vshrl.u32 %v2666_v51, 16  ;;  %v2865_v13 = vshll.u32 %v2666_v51, 16  ;;  %v988_v33 = vshrl.u32 %v744_v27, 16 }
  0xbd   : > { %v2860_v24 = vsel %vm7621_vm7, %v2855_v8, %v2859_v62  ;;  %v971_v35 = vrot.slane %v970_v4, 4  ;;  %v991_v45 = vshll.u32 %v744_v27, 16  ;;  %v3465_v44 = vrot.slane %v7684_v37, 5  ;;  %v3400_v8 = vld [vmem:[#allocation2 + $0x18] sm:$0xe] }
  0xbe   : > { %v5976_v46 = vcombine.low %v2850_v15, %v2860_v24  ;;  %v981_v7 = vrot.slane %v980_v40, 4  ;;  %v2864_v52 = vrot.slane %v2862_v12, 4  ;;  %v2867_v53 = vrot.slane %v2865_v13, 5 }
  0xbf   : > { %v976_v26 = vsel %vm7621_vm7, %v971_v35, %v975_v21  ;;  %v990_v14 = vrot.slane %v988_v33, 4  ;;  %v993_v23 = vrot.slane %v991_v45, 5  ;;  %v7911_v43 = vsel %vm7780_vm13, %v5994_v36, %v3465_v44  ;;  %v672_v36 = vld [vmem:[#allocation2 + $0x6c] sm:$0xf]  ;;  %v273_v45 = vld [vmem:[%s7615_s22 + $0x48] sm:$0xf] }
  0xc0   : > { %6721 = vmatprep.mubr.bf16.mxu0 %v5976_v46  ;;  %v986_v47 = vsel %vm7621_vm7, %v981_v7, %v985_v17  ;;  %v2868_v37 = vor.u32 %v2867_v53, %v2864_v52  ;;  %v3467_v20 = vrot.slane %v3465_v44, 4  ;;  %v427_v60 = vshrl.u32 %v271_v31, 16  ;;  %v676_v52 = vld [vmem:[#allocation2 + $0x74] sm:$0x1]  ;;  %v274_v53 = vld [vmem:[%s7615_s22 + $0x4c] sm:$0xf] }
  0xc1   : > { %v5865_v62 = vcombine.low %v976_v26, %v986_v47  ;;  %v7915_v56 = vld [vmem:[#allocation2 + $0x64] sm:$0xf]  ;;  %v994_v0 = vor.u32 %v993_v23, %v990_v14  ;;  %v430_v58 = vshll.u32 %v271_v31, 16  ;;  %v435_v2 = vshrl.u32 %v272_v55, 16 }
  0xc2   : > { %v745_v63 = vld [vmem:[#allocation2 + $0x64] sm:$0xf]  ;;  %v2869_v3 = vrot.slane %v2868_v37, 4  ;;  %v2871_v9 = vshll.u32 %v7915_v56, 16  ;;  %v2875_v11 = vshrl.u32 %v7915_v56, 16  ;;  %v3469_v17 = vsel %vm7780_vm13, %v3467_v20, %v3468_v57 }
  0xc3   : > { %v997_v19 = vshll.u32 %v745_v63, 16  ;;  %6530 = vmatmul.mubr.bf16.gmra.mrb[12].mxu1 %v5865_v62  ;;  %v7919_v10 = vld [vmem:[#allocation2 + $0x68] sm:$0x1]  ;;  %v995_v21 = vrot.slane %v994_v0, 4  ;;  %v1001_v16 = vshrl.u32 %v745_v63, 16  ;;  %v6010_v13 = vcombine.low %v7911_v43, %v3469_v17 }
  0xc4   : > { %v784_v15 = vld [vmem:[#allocation2 + $0x68] sm:$0x1]  ;;  %v2873_v4 = vrot.slane %v2871_v9, 5  ;;  %v2877_v18 = vrot.slane %v2875_v11, 4  ;;  %v2881_v51 = vshll.u32 %v7919_v10, 16  ;;  %v429_v33 = vrot.slane %v427_v60, 7 }
  0xc5   : > { %v999_v27 = vrot.slane %v997_v19, 5  ;;  %v1003_v40 = vrot.slane %v1001_v16, 4  ;;  %v1007_v12 = vshll.u32 %v784_v15, 16  ;;  %v437_v14 = vrot.slane %v435_v2, 7  ;;  %v3401_v47 = vld [vmem:[#allocation2 + $0x24] sm:$0xe] }
  0xc6   : > { %v2874_v38 = vsel %vm7621_vm7, %v2869_v3, %v2873_v4  ;;  %v2878_v24 = vor.u32 %v2877_v18, %v2873_v4  ;;  %v2883_v35 = vrot.slane %v2881_v51, 5  ;;  %v432_v46 = vor.u32 %v430_v58, %v429_v33  ;;  %v275_v63 = vld [vmem:[%s7615_s22 + $0x50] sm:$0xf]  ;;  %v679_v2 = vld [vmem:[#allocation2 + $0x78] sm:$0xf] }
  0xc7   : > { %v1000_v57 = vsel %vm7621_vm7, %v995_v21, %v999_v27  ;;  %v1004_v44 = vor.u32 %v1003_v40, %v999_v27  ;;  %v1009_v31 = vrot.slane %v1007_v12, 5  ;;  %v433_v7 = vrot.slane %v429_v33, 4  ;;  %v276_v9 = vld [vmem:[%s7615_s22 + $0x54] sm:$0xf]  ;;  %v3402_v4 = vld [vmem:[#allocation2 + $0x30] sm:$0xe] }
  0xc8   : > { %v2879_v26 = vrot.slane %v2878_v24, 4  ;;  %v438_v23 = vshll.u32 %v272_v55, 16  ;;  %v5995_v43 = vrot.slane %v3400_v8, 9  ;;  %v673_v20 = vsel %vm7627_vm8, %v432_v46, %v672_v36  ;;  %v683_v27 = vld [vmem:[#allocation2 + $0x80] sm:$0x1] }
  0xc9   : > { %v1005_v37 = vrot.slane %v1004_v44, 4  ;;  %v444_v60 = vshrl.u32 %v273_v45, 16  ;;  %v447_v62 = vshll.u32 %v273_v45, 16  ;;  %v442_v3 = vrot.slane %v437_v14, 4  ;;  %674 = vst [vmem:[#allocation2 + $0x6c] sm:$0xf] %v673_v20 }
  0xca   : > { %v2884_v0 = vsel %vm7621_vm7, %v2879_v26, %v2883_v35  ;;  %v440_v58 = vor.u32 %v438_v23, %v437_v14  ;;  %v3473_v55 = vsel %vm7780_vm13, %v5995_v43, %v3472_v39  ;;  %v452_v61 = vshrl.u32 %v274_v53, 16 }
  0xcb   : > { %v5977_v11 = vcombine.low %v2874_v38, %v2884_v0  ;;  %v1010_v19 = vsel %vm7621_vm7, %v1005_v37, %v1009_v31  ;;  %v6011_v15 = vcombine.low %v3473_v55, %v7796_v48  ;;  %v446_v21 = vrot.slane %v444_v60, 7  ;;  %v686_v60 = vld [vmem:[#allocation2 + $0x84] sm:$0xf] }
  0xcc   : > { %v5866_v16 = vcombine.low %v1000_v57, %v1010_v19  ;;  %v441_v17 = vsel %vm7633_vm9, %v433_v7, %v440_v58  ;;  %v677_v8 = vsel %vm7641_vm10, %v442_v3, %v676_v52  ;;  %v455_v51 = vshll.u32 %v274_v53, 16 }
  0xcd   : > { %6722 = vmatmul.mubr.bf16.gmra.mrb[12].mxu0 %v5977_v11  ;;  %675 = vst [vmem:[#allocation2 + $0x70] sm:$0xf] %v441_v17  ;;  %678 = vst [vmem:[#allocation2 + $0x74] sm:$0x1] %v677_v8  ;;  %v449_v39 = vor.u32 %v447_v62, %v446_v21  ;;  %v450_v18 = vrot.slane %v446_v21, 4  ;;  %v5996_v36 = vrot.slane %v3401_v47, 9 }
  0xce   : > { %6533 = vmatprep.mubr.bf16.mxu1 %v5866_v16  ;;  %6757 = vmatprep.mubr.bf16.mxu0 %v6010_v13  ;;  %v454_v48 = vrot.slane %v452_v61, 7  ;;  %v3479_v40 = vrot.slane %v7747_v54, 5  ;;  %v3482_v12 = vrot.slane %v7758_v1, 5  ;;  %v461_v33 = vshrl.u32 %v275_v63, 16  ;;  %v7268_v62 = vld [vmem:[#allocation3 + $0x188] sm:$0xff]  }
  0xcf   : > { %v680_v38 = vsel %vm7627_vm8, %v449_v39, %v679_v2  ;;  %v464_v24 = vshll.u32 %v275_v63, 16  ;;  %v469_v35 = vshrl.u32 %v276_v9, 16  ;;  %v472_v57 = vshll.u32 %v276_v9, 16  ;;  %v690_v21 = vld [vmem:[#allocation2 + $0x8c] sm:$0x1] }
  0xd0   : > { %v457_v45 = vor.u32 %v455_v51, %v454_v48  ;;  %v459_v44 = vrot.slane %v454_v48, 4  ;;  %681 = vst [vmem:[#allocation2 + $0x78] sm:$0xf] %v680_v38  ;;  %v3480_v31 = vsel %vm7780_vm13, %v5996_v36, %v3479_v40  ;;  %v3481_v46 = vrot.slane %v3479_v40, 4  ;;  %v746_v13 = vld [vmem:[#allocation2 + $0x6c] sm:$0xf] }
  0xd1   : > { %v463_v7 = vrot.slane %v461_v33, 7  ;;  %v471_v52 = vrot.slane %v469_v35, 7  ;;  %v5997_v54 = vrot.slane %v3402_v4, 9  ;;  %v3486_v1 = vrot.slane %v7802_v5, 5  ;;  %v277_v4 = vld [vmem:[%s7615_s22 + $0x58] sm:$0xf] }
  0xd2   : > { %v1012_v53 = vshrl.u32 %v746_v13, 16  ;;  %v1015_v26 = vshll.u32 %v746_v13, 16  ;;  %v458_v14 = vsel %vm7633_vm9, %v450_v18, %v457_v45  ;;  %v684_v23 = vsel %vm7641_vm10, %v459_v44, %v683_v27  ;;  %v7270_v39 = vld [vmem:[#allocation3 + $0x190] sm:$0xff]   ;;  %v7979_v33 = vld [vmem:[%s7615_s22 + $0x5c] sm:$0xf] }
  0xd3   : > { %682 = vst [vmem:[#allocation2 + $0x7c] sm:$0xf] %v458_v14  ;;  %685 = vst [vmem:[#allocation2 + $0x80] sm:$0x1] %v684_v23  ;;  %v3483_v43 = vsel %vm7780_vm13, %v3481_v46, %v3482_v12  ;;  %v466_v47 = vor.u32 %v464_v24, %v463_v7  ;;  %v467_v37 = vrot.slane %v463_v7, 4  ;;  %v474_v20 = vor.u32 %v472_v57, %v471_v52 }
  0xd4   : > { %v747_v63 = vld [vmem:[#allocation2 + $0x70] sm:$0xf]  ;;  %v785_v5 = vld [vmem:[#allocation2 + $0x74] sm:$0x1]  ;;  %v1014_v0 = vrot.slane %v1012_v53, 4  ;;  %v1017_v58 = vrot.slane %v1015_v26, 5  ;;  %v6012_v3 = vcombine.low %v3480_v31, %v3483_v43  ;;  %v3487_v55 = vsel %vm7780_vm13, %v5997_v54, %v3486_v1 }
  0xd5   : > { %v1021_v2 = vshll.u32 %v747_v63, 16  ;;  %v1025_v9 = vshrl.u32 %v747_v63, 16  ;;  %v1031_v11 = vshll.u32 %v785_v5, 16  ;;  %6758 = vmatmul.mubr.bf16.vlgmr.msra.gmra.mrb[0].mxu0 %v6011_v15  ;;  %v475_v19 = vsel %vm7633_vm9, %v467_v37, %v474_v20  ;;  %v7272_v53 = vld [vmem:[#allocation3 + $0x198] sm:$0xff]  }
  0xd6   : > { %v1018_v16 = vor.u32 %v1017_v58, %v1014_v0  ;;  %6790 = vmatpush3.bf16.msra.mxu0 %v7831_v6  ;;  %6761 = vmatprep.mubr.bf16.mxu0 %v6012_v3  ;;  %v476_v17 = vrot.slane %v471_v52, 4  ;;  %v687_v8 = vsel %vm7627_vm8, %v466_v47, %v686_v60  ;;  %689 = vst [vmem:[#allocation2 + $0x88] sm:$0xf] %v475_v19  ;;  %v3488_v61 = vrot.slane %v3486_v1, 4 }
  0xd7   : > { %v1023_v18 = vrot.slane %v1021_v2, 5  ;;  %v1027_v51 = vrot.slane %v1025_v9, 4  ;;  %v1033_v15 = vrot.slane %v1031_v11, 5  ;;  %v7971_v27 = vld [vmem:[#allocation2 + $0x78] sm:$0xf]  ;;  %v3489_v36 = vrot.slane %v7804_v59, 5  ;;  %6791 = vmatprep.subr.bf16.mxu0 %v7268_v62 }
  0xd8   : > { %688 = vst [vmem:[#allocation2 + $0x84] sm:$0xf] %v687_v8  ;;  %v1019_v6 = vrot.slane %v1018_v16, 4  ;;  %v1036_v48 = vshrl.u32 %v7971_v27, 16  ;;  %v1039_v40 = vshll.u32 %v7971_v27, 16  ;;  %v691_v12 = vsel %vm7641_vm10, %v476_v17, %v690_v21 }
  0xd9   : > { %v1028_v38 = vor.u32 %v1027_v51, %v1023_v18  ;;  %692 = vst [vmem:[#allocation2 + $0x8c] sm:$0x1] %v691_v12  ;;  %v3490_v24 = vsel %vm7780_vm13, %v3488_v61, %v3489_v36  ;;  %v478_v35 = vshrl.u32 %v277_v4, 16  ;;  %v481_v57 = vshll.u32 %v277_v4, 16  ;;  %v693_v21 = vld [vmem:[#allocation2 + $0x90] sm:$0xf] }
  0xda   : > { %v1024_v59 = vsel %vm7621_vm7, %v1019_v6, %v1023_v18  ;;  %v7985_v45 = vld [vmem:[#allocation2 + $0x7c] sm:$0xf]  ;;  %v786_v44 = vld [vmem:[#allocation2 + $0x80] sm:$0x1]  ;;  %v1038_v31 = vrot.slane %v1036_v48, 4  ;;  %v1041_v46 = vrot.slane %v1039_v40, 5  ;;  %v6013_v13 = vcombine.low %v3487_v55, %v3490_v24  ;;  %6792 = vmatpush3.bf16.msra.mxu0 %v7268_v62 }
  0xdb   : > { %v1029_v7 = vrot.slane %v1028_v38, 4  ;;  %v1045_v52 = vshll.u32 %v7985_v45, 16  ;;  %v1049_v54 = vshrl.u32 %v7985_v45, 16  ;;  %v1055_v1 = vshll.u32 %v786_v44, 16  ;;  %6793 = vmatprep.subr.bf16.mxu0 %v7270_v39  ;;  %v7276_v55 = vld [vmem:[#allocation3 + $0x1a0] sm:$0xff]   ;;  %v7280_v40 = vld [vmem:[#allocation3 + $0x1a8] sm:$0xff]  }
  0xdc   : > { %v1042_v26 = vor.u32 %v1041_v46, %v1038_v31  ;;  %v480_v14 = vrot.slane %v478_v35, 7  ;;  %v486_v23 = vshrl.u32 %v7979_v33, 16  ;;  %v489_v43 = vshll.u32 %v7979_v33, 16  ;;  %v3403_v16 = vld [vmem:[#allocation2 + $0x3c] sm:$0xe] }
  0xdd   : > { %v1034_v47 = vsel %vm7621_vm7, %v1029_v7, %v1033_v15  ;;  %v1047_v37 = vrot.slane %v1045_v52, 5  ;;  %v1051_v20 = vrot.slane %v1049_v54, 4  ;;  %v1057_v60 = vrot.slane %v1055_v1, 5  ;;  %v7993_v62 = vld [vmem:[#allocation2 + $0x88] sm:$0xf]  ;;  %6762 = vmatmul.mubr.bf16.gmra.mrb[4].mxu0 %v6013_v13 }
  0xde   : > { %v5867_v63 = vcombine.low %v1024_v59, %v1034_v47  ;;  %v1043_v5 = vrot.slane %v1042_v26, 4  ;;  %v1069_v58 = vshll.u32 %v7993_v62, 16  ;;  %v1073_v3 = vshrl.u32 %v7993_v62, 16  ;;  %6794 = vmatpush3.bf16.msra.mxu0 %v7270_v39  ;;  %v697_v6 = vld [vmem:[#allocation2 + $0x98] sm:$0x1] }
  0xdf   : > { %v7995_v0 = vld [vmem:[#allocation2 + $0x84] sm:$0xf]  ;;  %v1052_v2 = vor.u32 %v1051_v20, %v1047_v37  ;;  %v483_v19 = vor.u32 %v481_v57, %v480_v14  ;;  %6795 = vmatprep.subr.bf16.mxu0 %v7272_v53  ;;  %v484_v39 = vrot.slane %v480_v14, 4  ;;  %v279_v48 = vld [vmem:[%s7615_s22 + $0x60] sm:$0xf]  ;;  %v488_v33 = vrot.slane %v486_v23, 7 }
  0xe0   : > { %v1060_v9 = vshrl.u32 %v7995_v0, 16  ;;  %v1063_v11 = vshll.u32 %v7995_v0, 16  ;;  %6534 = vmatmul.mubr.bf16.gmra.mrb[16].mxu1 %v5867_v63  ;;  %v1048_v17 = vsel %vm7621_vm7, %v1043_v5, %v1047_v37  ;;  %v787_v8 = vld [vmem:[#allocation2 + $0x8c] sm:$0x1]  ;;  %v1071_v61 = vrot.slane %v1069_v58, 5 }
  0xe1   : > { %v1075_v4 = vrot.slane %v1073_v3, 4  ;;  %v1053_v18 = vrot.slane %v1052_v2, 4  ;;  %v1079_v36 = vshll.u32 %v787_v8, 16  ;;  %v694_v38 = vsel %vm7627_vm8, %v483_v19, %v693_v21  ;;  %v280_v35 = vld [vmem:[%s7615_s22 + $0x64] sm:$0xf]  ;;  %v7284_v20 = vld [vmem:[#allocation3 + $0x1b0] sm:$0xff]  }
  0xe2   : > { %v1062_v51 = vrot.slane %v1060_v9, 4  ;;  %v1065_v15 = vrot.slane %v1063_v11, 5  ;;  %v5998_v24 = vrot.slane %v3403_v16, 9  ;;  %6796 = vmatpush3.bf16.msra.mxu0 %v7272_v53  ;;  %695 = vst [vmem:[#allocation2 + $0x90] sm:$0xf] %v694_v38  ;;  %v3493_v31 = vrot.slane %v7835_v42, 5 }
  0xe3   : > { %v1076_v12 = vor.u32 %v1075_v4, %v1071_v61  ;;  %v1058_v57 = vsel %vm7621_vm7, %v1053_v18, %v1057_v60  ;;  %v1081_v44 = vrot.slane %v1079_v36, 5  ;;  %6797 = vmatprep.subr.bf16.mxu0 %v7276_v55  ;;  %v491_v7 = vor.u32 %v489_v43, %v488_v33  ;;  %v3404_v54 = vld [vmem:[#allocation2 + $0x48] sm:$0xe]  ;;  %v700_v58 = vld [vmem:[#allocation2 + $0x9c] sm:$0xf] }
  0xe4   : > { %v1066_v59 = vor.u32 %v1065_v15, %v1062_v51  ;;  %v5868_v46 = vcombine.low %v1048_v17, %v1058_v57  ;;  %v493_v52 = vrot.slane %v488_v33, 4  ;;  %v3494_v26 = vsel %vm7780_vm13, %v5998_v24, %v3493_v31  ;;  %v281_v23 = vld [vmem:[%s7615_s22 + $0x68] sm:$0xf]  ;;  %v704_v19 = vld [vmem:[#allocation2 + $0xa4] sm:$0x1] }
  0xe5   : > { %v1077_v13 = vrot.slane %v1076_v12, 4  ;;  %v3495_v53 = vrot.slane %v3493_v31, 4  ;;  %v3496_v14 = vrot.slane %v7842_v32, 5  ;;  %v492_v42 = vsel %vm7633_vm9, %v484_v39, %v491_v7  ;;  %v282_v8 = vld [vmem:[%s7615_s22 + $0x6c] sm:$0xf] }
  0xe6   : > { %v1067_v1 = vrot.slane %v1066_v59, 4  ;;  %6537 = vmatprep.mubr.bf16.mxu1 %v5868_v46  ;;  %v698_v43 = vsel %vm7641_vm10, %v493_v52, %v697_v6  ;;  %v495_v37 = vshrl.u32 %v279_v48, 16  ;;  %6798 = vmatpush3.bf16.msra.mxu0 %v7276_v55  ;;  %696 = vst [vmem:[#allocation2 + $0x94] sm:$0xf] %v492_v42  ;;  %v498_v63 = vshll.u32 %v279_v48, 16 }
  0xe7   : > { %v1082_v47 = vsel %vm7621_vm7, %v1077_v13, %v1081_v44  ;;  %699 = vst [vmem:[#allocation2 + $0x98] sm:$0x1] %v698_v43  ;;  %v3497_v32 = vsel %vm7780_vm13, %v3495_v53, %v3496_v14  ;;  %v503_v5 = vshrl.u32 %v280_v35, 16  ;;  %6799 = vmatprep.subr.bf16.mxu0 %v7280_v40  ;;  %v506_v11 = vshll.u32 %v280_v35, 16  ;;  %v707_v12 = vld [vmem:[#allocation2 + $0xa8] sm:$0xf] }
  0xe8   : > { %v1072_v60 = vsel %vm7621_vm7, %v1067_v1, %v1071_v61  ;;  %v6014_v2 = vcombine.low %v3494_v26, %v3497_v32  ;;  %v497_v9 = vrot.slane %v495_v37, 7  ;;  %v5999_v21 = vrot.slane %v3404_v54, 9  ;;  %v3405_v44 = vld [vmem:[#allocation2 + $0x54] sm:$0xe]  ;;  %v8050_v32 = vld [vmem:[#allocation3 + $0x1c0] sm:$0xff]  }
  0xe9   : > { %v5869_v3 = vcombine.low %v1072_v60, %v1082_v47  ;;  %v505_v55 = vrot.slane %v503_v5, 7  ;;  %v3500_v16 = vrot.slane %v7870_v49, 5  ;;  %v3503_v17 = vrot.slane %v7872_v30, 5  ;;  %v8027_v61 = vld [vmem:[#allocation2 + $0x90] sm:$0xf] }
  0xea   : > { %6765 = vmatprep.mubr.bf16.mxu0 %v6014_v2  ;;  %v500_v4 = vor.u32 %v498_v63, %v497_v9  ;;  %v501_v39 = vrot.slane %v497_v9, 4  ;;  %v512_v18 = vshrl.u32 %v281_v23, 16  ;;  %v515_v51 = vshll.u32 %v281_v23, 16  ;;  %6800 = vmatpush3.bf16.msra.mxu0 %v7280_v40  ;;  %v7288_v49 = vld [vmem:[#allocation3 + $0x1b8] sm:$0xff]  }
  0xeb   : > { %6538 = vmatmul.mubr.bf16.gmra.mrb[20].mxu1 %v5869_v3  ;;  %v1084_v15 = vshrl.u32 %v8027_v61, 16  ;;  %v1087_v36 = vshll.u32 %v8027_v61, 16  ;;  %v508_v6 = vor.u32 %v506_v11, %v505_v55  ;;  %v510_v48 = vrot.slane %v505_v55, 4  ;;  %6801 = vmatprep.subr.bf16.mxu0 %v7284_v20  ;;  %v711_v23 = vld [vmem:[#allocation2 + $0xb0] sm:$0x1] }
  0xec   : > { %v701_v30 = vsel %vm7627_vm8, %v500_v4, %v700_v58  ;;  %v3501_v33 = vsel %vm7780_vm13, %v5999_v21, %v3500_v16  ;;  %v3502_v38 = vrot.slane %v3500_v16, 4  ;;  %v514_v24 = vrot.slane %v512_v18, 7  ;;  %v8046_v47 = vld [vmem:[%s7615_s22 + $0x70] sm:$0xf] }
  0xed   : > { %v1086_v35 = vrot.slane %v1084_v15, 4  ;;  %v1089_v57 = vrot.slane %v1087_v36, 5  ;;  %v509_v59 = vsel %vm7633_vm9, %v501_v39, %v508_v6  ;;  %702 = vst [vmem:[#allocation2 + $0x9c] sm:$0xf] %v701_v30  ;;  %v705_v40 = vsel %vm7641_vm10, %v510_v48, %v704_v19  ;;  %v8039_v31 = vld [vmem:[#allocation2 + $0x94] sm:$0xf] }
  0xee   : > { %v788_v46 = vld [vmem:[#allocation2 + $0x98] sm:$0x1]  ;;  %703 = vst [vmem:[#allocation2 + $0xa0] sm:$0xf] %v509_v59  ;;  %706 = vst [vmem:[#allocation2 + $0xa4] sm:$0x1] %v705_v40  ;;  %v3504_v13 = vsel %vm7780_vm13, %v3502_v38, %v3503_v17  ;;  %v517_v7 = vor.u32 %v515_v51, %v514_v24  ;;  %6802 = vmatpush3.bf16.msra.mxu0 %v7284_v20 }
  0xef   : > { %v518_v52 = vrot.slane %v514_v24, 4  ;;  %v520_v54 = vshrl.u32 %v282_v8, 16  ;;  %v1090_v1 = vor.u32 %v1089_v57, %v1086_v35  ;;  %v1093_v26 = vshll.u32 %v8039_v31, 16  ;;  %6803 = vmatprep.subr.bf16.mxu0 %v7288_v49  ;;  %v284_v38 = vld [vmem:[%s7615_s22 + $0x74] sm:$0xf] }
  0xf0   : > { %v1097_v53 = vshrl.u32 %v8039_v31, 16  ;;  %v1103_v14 = vshll.u32 %v788_v46, 16  ;;  %v6015_v42 = vcombine.low %v3501_v33, %v3504_v13  ;;  %v523_v37 = vshll.u32 %v282_v8, 16 }
  0xf1   : > { %v522_v43 = vrot.slane %v520_v54, 7  ;;  %v708_v60 = vsel %vm7627_vm8, %v517_v7, %v707_v12  ;;  %v1091_v63 = vrot.slane %v1090_v1, 4  ;;  %v1095_v5 = vrot.slane %v1093_v26, 5  ;;  %v714_v54 = vld [vmem:[#allocation2 + $0xb4] sm:$0xf] }
  0xf2   : > { %v1099_v58 = vrot.slane %v1097_v53, 4  ;;  %v1105_v3 = vrot.slane %v1103_v14, 5  ;;  %709 = vst [vmem:[#allocation2 + $0xa8] sm:$0xf] %v708_v60  ;;  %6766 = vmatmul.mubr.bf16.gmra.mrb[8].mxu0 %v6015_v42  ;;  %v6000_v11 = vrot.slane %v3405_v44, 9  ;;  %v3507_v20 = vrot.slane %v7883_v28, 5 }
  0xf3   : > { %v525_v2 = vor.u32 %v523_v37, %v522_v43  ;;  %v527_v9 = vrot.slane %v522_v43, 4  ;;  %v3510_v55 = vrot.slane %v7885_v29, 5  ;;  %v529_v21 = vshrl.u32 %v8046_v47, 16  ;;  %6804 = vmatpush3.bf16.msra.mxu0 %v7288_v49  ;;  %v3406_v60 = vld [vmem:[#allocation2 + $0x60] sm:$0xe] }
  0xf4   : > { %v1100_v19 = vor.u32 %v1099_v58, %v1095_v5  ;;  %v8055_v16 = vld [vmem:[#allocation2 + $0x9c] sm:$0xf]  ;;  %v3509_v4 = vrot.slane %v3507_v20, 4  ;;  %6837 = vmatprep.subr.bf16.mxu0 %v8050_v32  ;;  %v1096_v28 = vsel %vm7621_vm7, %v1091_v63, %v1095_v5  ;;  %v3508_v15 = vsel %vm7780_vm13, %v6000_v11, %v3507_v20 }
  0xf5   : > { %v526_v17 = vsel %vm7633_vm9, %v518_v52, %v525_v2  ;;  %v712_v8 = vsel %vm7641_vm10, %v527_v9, %v711_v23  ;;  %v8064_v29 = vld [vmem:[#allocation2 + $0xa0] sm:$0xf]  ;;  %v789_v18 = vld [vmem:[#allocation2 + $0xa4] sm:$0x1]  ;;  %v1108_v51 = vshrl.u32 %v8055_v16, 16  ;;  %v1111_v36 = vshll.u32 %v8055_v16, 16 }
  0xf6   : > { %v1101_v39 = vrot.slane %v1100_v19, 4  ;;  %710 = vst [vmem:[#allocation2 + $0xac] sm:$0xf] %v526_v17  ;;  %713 = vst [vmem:[#allocation2 + $0xb0] sm:$0x1] %v712_v8  ;;  %v1117_v6 = vshll.u32 %v8064_v29, 16  ;;  %v3511_v33 = vsel %vm7780_vm13, %v3509_v4, %v3510_v55 }
  0xf7   : > { %v1121_v48 = vshrl.u32 %v8064_v29, 16  ;;  %v1127_v12 = vshll.u32 %v789_v18, 16  ;;  %v1110_v30 = vrot.slane %v1108_v51, 4  ;;  %v531_v24 = vrot.slane %v529_v21, 7  ;;  %v2670_v55 = vld [vmem:[#allocation2 + $0x70] sm:$0xf] }
  0xf8   : > { %v1106_v49 = vsel %vm7621_vm7, %v1101_v39, %v1105_v3  ;;  %v1113_v57 = vrot.slane %v1111_v36, 5  ;;  %v1119_v59 = vrot.slane %v1117_v6, 5  ;;  %v6016_v52 = vcombine.low %v3508_v15, %v3511_v33  ;;  %v3407_v21 = vld [vmem:[#allocation2 + $0x6c] sm:$0xe]  ;;  %v2671_v39 = vld [vmem:[#allocation2 + $0x74] sm:$0x1] }
  0xf9   : > { %v5870_v35 = vcombine.low %v1096_v28, %v1106_v49  ;;  %v1123_v40 = vrot.slane %v1121_v48, 4  ;;  %v8077_v44 = vld [vmem:[#allocation2 + $0xa8] sm:$0xf]  ;;  %v1129_v46 = vrot.slane %v1127_v12, 5  ;;  %v532_v53 = vshll.u32 %v8046_v47, 16 }
  0xfa   : > { %v1132_v13 = vshrl.u32 %v8077_v44, 16  ;;  %v1135_v7 = vshll.u32 %v8077_v44, 16  ;;  %v1114_v1 = vor.u32 %v1113_v57, %v1110_v30  ;;  %v535_v14 = vrot.slane %v531_v24, 4  ;;  %6769 = vmatprep.mubr.bf16.mxu0 %v6016_v52  ;;  %v718_v47 = vld [vmem:[#allocation2 + $0xbc] sm:$0x1] }
  0xfb   : > { %6541 = vmatprep.mubr.bf16.mxu1 %v5870_v35  ;;  %v1124_v26 = vor.u32 %v1123_v40, %v1119_v59  ;;  %v537_v43 = vshrl.u32 %v284_v38, 16  ;;  %v540_v37 = vshll.u32 %v284_v38, 16  ;;  %v534_v2 = vor.u32 %v532_v53, %v531_v24 }
  0xfc   : > { %v1134_v23 = vrot.slane %v1132_v13, 4  ;;  %v1137_v42 = vrot.slane %v1135_v7, 5  ;;  %v1115_v63 = vrot.slane %v1114_v1, 4  ;;  %v6001_v49 = vrot.slane %v3406_v60, 9  ;;  %v8104_v1 = vld [vmem:[#allocation2 + $0x7c] sm:$0xf] }
  0xfd   : > { %v1125_v5 = vrot.slane %v1124_v26, 4  ;;  %v8082_v58 = vld [vmem:[#allocation2 + $0xac] sm:$0xf]  ;;  %v790_v3 = vld [vmem:[#allocation2 + $0xb0] sm:$0x1]  ;;  %v539_v4 = vrot.slane %v537_v43, 7  ;;  %v715_v28 = vsel %vm7627_vm8, %v534_v2, %v714_v54 }
  0xfe   : > { %v1138_v9 = vor.u32 %v1137_v42, %v1134_v23  ;;  %v1141_v11 = vshll.u32 %v8082_v58, 16  ;;  %v1145_v20 = vshrl.u32 %v8082_v58, 16  ;;  %v1151_v19 = vshll.u32 %v790_v3, 16  ;;  %716 = vst [vmem:[#allocation2 + $0xb4] sm:$0xf] %v715_v28 }
  0xff   : > { %v1120_v17 = vsel %vm7621_vm7, %v1115_v63, %v1119_v59  ;;  %v1130_v8 = vsel %vm7621_vm7, %v1125_v5, %v1129_v46  ;;  %v542_v48 = vor.u32 %v540_v37, %v539_v4  ;;  %v544_v12 = vrot.slane %v539_v4, 4  ;;  %v3408_v46 = vld [vmem:[#allocation2 + $0x78] sm:$0xe]  ;;  %v8106_v26 = vld [vmem:[#allocation2 + $0x80] sm:$0x1] }
 0x100   : > { %v5871_v18 = vcombine.low %v1120_v17, %v1130_v8  ;;  %v1139_v51 = vrot.slane %v1138_v9, 4  ;;  %v1143_v15 = vrot.slane %v1141_v11, 5  ;;  %v1147_v36 = vrot.slane %v1145_v20, 4  ;;  %v3409_v23 = vld [vmem:[#allocation2 + $0x84] sm:$0xe] }
 0x101   : > { %v1153_v6 = vrot.slane %v1151_v19, 5  ;;  %v3514_v38 = vrot.slane %v7915_v56, 5  ;;  %v3517_v24 = vrot.slane %v7919_v10, 5  ;;  %v543_v35 = vsel %vm7633_vm9, %v535_v14, %v542_v48  ;;  %v2676_v5 = vld [vmem:[#allocation2 + $0x88] sm:$0xf] }
 0x102   : > { %6542 = vmatmul.mubr.bf16.gmra.mrb[24].mxu1 %v5871_v18  ;;  %v1144_v30 = vsel %vm7621_vm7, %v1139_v51, %v1143_v15  ;;  %v1148_v33 = vor.u32 %v1147_v36, %v1143_v15  ;;  %v719_v57 = vsel %vm7641_vm10, %v544_v12, %v718_v47  ;;  %v6002_v59 = vrot.slane %v3407_v21, 9  ;;  %717 = vst [vmem:[#allocation2 + $0xb8] sm:$0xf] %v543_v35  ;;  %v2677_v11 = vld [vmem:[#allocation2 + $0x8c] sm:$0x1] }
 0x103   : > { %v3521_v40 = vrot.slane %v2670_v55, 5  ;;  %720 = vst [vmem:[#allocation2 + $0xbc] sm:$0x1] %v719_v57  ;;  %v3515_v7 = vsel %vm7780_vm13, %v6001_v49, %v3514_v38  ;;  %v3516_v52 = vrot.slane %v3514_v38, 4  ;;  %v3524_v54 = vrot.slane %v2671_v39, 5 }
 0x104   : > { %v1149_v13 = vrot.slane %v1148_v33, 4  ;;  %v6003_v63 = vrot.slane %v3408_v46, 9  ;;  %v3528_v20 = vrot.slane %v8104_v1, 5  ;;  %v3531_v19 = vrot.slane %v8106_v26, 5  ;;  %v2679_v8 = vld [vmem:[#allocation2 + $0x94] sm:$0xf] }
 0x105   : > { %v3522_v56 = vsel %vm7780_vm13, %v6002_v59, %v3521_v40  ;;  %v3523_v10 = vrot.slane %v3521_v40, 4  ;;  %v3518_v14 = vsel %vm7780_vm13, %v3516_v52, %v3517_v24  ;;  %v8112_v43 = vld [vmem:[#allocation2 + $0xb4] sm:$0xf]  ;;  %v6004_v47 = vrot.slane %v3409_v23, 9  ;;  %v3410_v4 = vld [vmem:[#allocation2 + $0x90] sm:$0xe] }
 0x106   : > { %v1154_v53 = vsel %vm7621_vm7, %v1149_v13, %v1153_v6  ;;  %v6017_v37 = vcombine.low %v3515_v7, %v3518_v14  ;;  %v1156_v3 = vshrl.u32 %v8112_v43, 16  ;;  %v1159_v2 = vshll.u32 %v8112_v43, 16  ;;  %v2680_v36 = vld [vmem:[#allocation2 + $0x98] sm:$0x1]  ;;  %v3411_v33 = vld [vmem:[#allocation2 + $0x9c] sm:$0xe] }
 0x107   : > { %v5872_v42 = vcombine.low %v1144_v30, %v1154_v53  ;;  %v3525_v60 = vsel %vm7780_vm13, %v3523_v10, %v3524_v54  ;;  %v3535_v17 = vrot.slane %v2676_v5, 5  ;;  %v3529_v18 = vsel %vm7780_vm13, %v6003_v63, %v3528_v20  ;;  %v2682_v30 = vld [vmem:[#allocation2 + $0xa0] sm:$0xf]  ;;  %v2683_v57 = vld [vmem:[#allocation2 + $0xa4] sm:$0x1] }
 0x108   : > { %v6018_v9 = vcombine.low %v3522_v56, %v3525_v60  ;;  %6770 = vmatmul.mubr.bf16.gmra.mrb[12].mxu0 %v6017_v37  ;;  %v1158_v55 = vrot.slane %v1156_v3, 4  ;;  %v1161_v21 = vrot.slane %v1159_v2, 5  ;;  %v3530_v51 = vrot.slane %v3528_v20, 4  ;;  %v2685_v13 = vld [vmem:[#allocation2 + $0xac] sm:$0xf] }
 0x109   : > { %6545 = vmatprep.mubr.bf16.mxu1 %v5872_v42  ;;  %v8120_v28 = vld [vmem:[#allocation2 + $0xb8] sm:$0xf]  ;;  %v3538_v15 = vrot.slane %v2677_v11, 5  ;;  %v3536_v24 = vsel %vm7780_vm13, %v6004_v47, %v3535_v17  ;;  %v3537_v35 = vrot.slane %v3535_v17, 4  ;;  %v6005_v54 = vrot.slane %v3410_v4, 9 }
 0x10a   : > { %6773 = vmatprep.mubr.bf16.mxu0 %v6018_v9  ;;  %v791_v39 = vld [vmem:[#allocation2 + $0xbc] sm:$0x1]  ;;  %v1162_v6 = vor.u32 %v1161_v21, %v1158_v55  ;;  %v1165_v48 = vshll.u32 %v8120_v28, 16  ;;  %v1169_v12 = vshrl.u32 %v8120_v28, 16  ;;  %v3532_v38 = vsel %vm7780_vm13, %v3530_v51, %v3531_v19  ;;  %v2686_v10 = vld [vmem:[#allocation2 + $0xb0] sm:$0x1] }
 0x10b   : > { %v1175_v49 = vshll.u32 %v791_v39, 16  ;;  %v6019_v7 = vcombine.low %v3529_v18, %v3532_v38  ;;  %v3539_v52 = vsel %vm7780_vm13, %v3537_v35, %v3538_v15  ;;  %v3542_v56 = vrot.slane %v2679_v8, 5  ;;  %v3412_v53 = vld [vmem:[#allocation2 + $0xa8] sm:$0xe]  ;;  %v2688_v60 = vld [vmem:[#allocation2 + $0xb8] sm:$0xf] }
 0x10c   : > { %v1163_v59 = vrot.slane %v1162_v6, 4  ;;  %v1167_v40 = vrot.slane %v1165_v48, 5  ;;  %v1171_v46 = vrot.slane %v1169_v12, 4  ;;  %v6020_v42 = vcombine.low %v3536_v24, %v3539_v52  ;;  %v2689_v9 = vld [vmem:[#allocation2 + $0xbc] sm:$0x1] }
 0x10d   : > { %v1177_v23 = vrot.slane %v1175_v49, 5  ;;  %v3545_v37 = vrot.slane %v2680_v36, 5  ;;  %v3543_v63 = vsel %vm7780_vm13, %v6005_v54, %v3542_v56  ;;  %v3544_v5 = vrot.slane %v3542_v56, 4  ;;  %v3413_v11 = vld [vmem:[#allocation2 + $0xb4] sm:$0xe] }
 0x10e   : > { %v1172_v14 = vor.u32 %v1171_v46, %v1167_v40  ;;  %v6006_v3 = vrot.slane %v3411_v33, 9  ;;  %v3549_v2 = vrot.slane %v2682_v30, 5  ;;  %v285_v20 = vld [vmem:[%s7615_s22 + $0x78] sm:$0xf]  ;;  %v1168_v19 = vsel %vm7621_vm7, %v1163_v59, %v1167_v40  ;;  %v7357_v17 = vld [vmem:[#allocation2] sm:$0xf] }
 0x10f   : > { %v3552_v55 = vrot.slane %v2683_v57, 5  ;;  %v3556_v21 = vrot.slane %v2685_v13, 5  ;;  %v8137_v8 = vld [vmem:[#allocation2 + $0x4] sm:$0xf]  ;;  %v3546_v39 = vsel %vm7780_vm13, %v3544_v5, %v3545_v37  ;;  %v6007_v6 = vrot.slane %v3412_v53, 9 }
 0x110   : > { %6774 = vmatmul.mubr.bf16.gmra.mrb[16].mxu0 %v6019_v7  ;;  %v1173_v47 = vrot.slane %v1172_v14, 4  ;;  %v5882_v4 = vcombine.low %v7357_v17, %v8137_v8  ;;  %v3550_v18 = vsel %vm7780_vm13, %v6006_v3, %v3549_v2  ;;  %v3551_v51 = vrot.slane %v3549_v2, 4  ;;  %v286_v12 = vld [vmem:[%s7615_s22 + $0x7c] sm:$0xf]  ;;  %v721_v56 = vld [vmem:[#allocation2 + $0xc0] sm:$0xf] }
 0x111   : > { %6777 = vmatprep.mubr.bf16.mxu0 %v6020_v42  ;;  %v6021_v36 = vcombine.low %v3543_v63, %v3546_v39  ;;  %v3559_v48 = vrot.slane %v2686_v10, 5  ;;  %v3558_v33 = vrot.slane %v3556_v21, 4  ;;  %v3563_v38 = vrot.slane %v2688_v60, 5  ;;  %v7359_v42 = vld [vmem:[#allocation2 + $0xc] sm:$0xf] }
 0x112   : > { %v1178_v15 = vsel %vm7621_vm7, %v1173_v47, %v1177_v23  ;;  %v3553_v30 = vsel %vm7780_vm13, %v3551_v51, %v3552_v55  ;;  %v6008_v35 = vrot.slane %v3413_v11, 9  ;;  %v3566_v57 = vrot.slane %v2689_v9, 5  ;;  %v8153_v37 = vld [vmem:[#allocation2 + $0x10] sm:$0xf]  ;;  %v725_v3 = vld [vmem:[#allocation2 + $0xc8] sm:$0x1] }
 0x113   : > { %v5873_v49 = vcombine.low %v1168_v19, %v1178_v15  ;;  %v6022_v24 = vcombine.low %v3550_v18, %v3553_v30  ;;  %v546_v59 = vshrl.u32 %v285_v20, 16  ;;  %v3565_v40 = vrot.slane %v3563_v38, 4  ;;  %v7361_v2 = vld [vmem:[#allocation2 + $0x18] sm:$0xf]  ;;  %v8160_v9 = vld [vmem:[#allocation2 + $0x1c] sm:$0xf] }
 0x114   : > { %v549_v46 = vshll.u32 %v285_v20, 16  ;;  %v554_v7 = vshrl.u32 %v286_v12, 16  ;;  %v557_v52 = vshll.u32 %v286_v12, 16  ;;  %v3557_v54 = vsel %vm7780_vm13, %v6007_v6, %v3556_v21  ;;  %v7279_v55 = vld [vmem:[#allocation3 + $0x88] sm:$0xff]   ;;  %v7363_v18 = vld [vmem:[#allocation3 + $0x80] sm:$0xff]   ;;  %v7283_v51 = vld [vmem:[#allocation3 + $0x90] sm:$0xff]  }
 0x115   : > { %6546 = vmatmul.mubr.bf16.gmra.mrb[28].mxu1 %v5873_v49  ;;  %v548_v13 = vrot.slane %v546_v59, 7  ;;  %v3560_v10 = vsel %vm7780_vm13, %v3558_v33, %v3559_v48  ;;  %v5883_v60 = vcombine.low %v7359_v42, %v8153_v37  ;;  %v3564_v63 = vsel %vm7780_vm13, %v6008_v35, %v3563_v38  ;;  %v8169_v15 = vld [vmem:[#allocation2 + $0x28] sm:$0xf]  ;;  %v8173_v6 = vld [vmem:[#allocation2 + $0x34] sm:$0xf] }
 0x116   : > { %6565 = vmatprep.mubr.bf16.mxu1 %v5882_v4  ;;  %v556_v23 = vrot.slane %v554_v7, 7  ;;  %v3567_v5 = vsel %vm7780_vm13, %v3565_v40, %v3566_v57  ;;  %v5884_v11 = vcombine.low %v7361_v2, %v8160_v9  ;;  %v6023_v21 = vcombine.low %v3557_v54, %v3560_v10  ;;  %v7287_v12 = vld [vmem:[#allocation3 + $0x98] sm:$0xff]   ;;  %v7292_v7 = vld [vmem:[#allocation3 + $0xa0] sm:$0xff]   ;;  %v1774_v2 = vld [vmem:[#allocation2] sm:$0xe] }
 0x117   : > { %v551_v53 = vor.u32 %v549_v46, %v548_v13  ;;  %v552_v14 = vrot.slane %v548_v13, 4  ;;  %v6024_v17 = vcombine.low %v3564_v63, %v3567_v5  ;;  %v2919_v41 = vshll.u32 %v8104_v1, 16  ;;  %v7290_v10 = vld [vmem:[#allocation2 + $0x18] sm:$0xff]  }
 0x118   : > { %6778 = vmatmul.mubr.bf16.gmra.mrb[20].mxu0 %v6021_v36  ;;  %v559_v20 = vor.u32 %v557_v52, %v556_v23  ;;  %v561_v19 = vrot.slane %v556_v23, 4  ;;  %v5885_v36 = vcombine.low %v7364_v34, %v8169_v15  ;;  %v5886_v48 = vcombine.low %v7366_v50, %v8173_v6  ;;  %v7368_v52 = vld [vmem:[#allocation2 + $0x3c] sm:$0xf]  ;;  %v8202_v34 = vld [vmem:[#allocation2 + $0x64] sm:$0xf] }
 0x119   : > { %6781 = vmatprep.mubr.bf16.mxu0 %v6022_v24  ;;  %v722_v47 = vsel %vm7627_vm8, %v551_v53, %v721_v56  ;;  %v2923_v30 = vshrl.u32 %v8104_v1, 16  ;;  %v8177_v59 = vrot.slane %v2919_v41, 5  ;;  %v8181_v1 = vld [vmem:[#allocation2 + $0x40] sm:$0xf]  ;;  %v7370_v53 = vld [vmem:[#allocation2 + $0x48] sm:$0xf] }
 0x11a   : > { %723 = vst [vmem:[#allocation2 + $0xc0] sm:$0xf] %v722_v47  ;;  %v560_v4 = vsel %vm7633_vm9, %v552_v14, %v559_v20  ;;  %v726_v39 = vsel %vm7641_vm10, %v561_v19, %v725_v3  ;;  %v5887_v54 = vcombine.low %v7368_v52, %v8181_v1  ;;  %v8186_v14 = vld [vmem:[#allocation2 + $0x4c] sm:$0xf]  ;;  %v2929_v5 = vshll.u32 %v8106_v26, 16  ;;  %v7298_v3 = vld [vmem:[#allocation3 + $0xa8] sm:$0xff]  }
 0x11b   : > { %724 = vst [vmem:[#allocation2 + $0xc4] sm:$0xf] %v560_v4  ;;  %727 = vst [vmem:[#allocation2 + $0xc8] sm:$0x1] %v726_v39  ;;  %v2925_v40 = vrot.slane %v2923_v30, 4  ;;  %v5888_v23 = vcombine.low %v7370_v53, %v8186_v14  ;;  %v5906_v26 = vrot.slane %v1774_v2, 9  ;;  %v5892_v30 = vcombine.low %v7971_v27, %v7985_v45 }
 0x11c   : > { %9196 = vst [vmem:[#allocation9_spill] sm:$0xff] %v8177_v59  ;;  %v8192_v19 = vld [vmem:[#allocation2 + $0x14] sm:$0x1]  ;;  %v1775_v4 = vld [vmem:[#allocation2 + $0xc] sm:$0xe]  ;;  %v1855_v53 = vrot.slane %v8173_v6, 5 }
 0x11d   : > { %6566 = vmatmul.mubr.bf16.vlgmr.msra.gmra.mrb[0].mxu1 %v5883_v60  ;;  %v1827_v60 = vrot.slane %v8137_v8, 5  ;;  %v2926_v63 = vor.u32 %v2925_v40, %v8177_v59  ;;  %v1837_v47 = vrot.slane %v8192_v19, 5  ;;  %v8205_v41 = vld [vmem:[#allocation2 + $0x6c] sm:$0xf]  ;;  %v8207_v50 = vld [vmem:[#allocation2 + $0x70] sm:$0xf] }
 0x11e   : > { %6598 = vmatpush3.bf16.msra.mxu1 %v7363_v18  ;;  %6569 = vmatprep.mubr.bf16.mxu1 %v5884_v11  ;;  %v7372_v11 = vld [vmem:[#allocation2 + $0x8] sm:$0x1]  ;;  %v8200_v18 = vrot.slane %v2929_v5, 5  ;;  %v7300_v40 = vld [vmem:[#allocation3 + $0x1c8] sm:$0xff]   ;;  %v5907_v52 = vrot.slane %v1775_v4, 9  ;;  %v1869_v6 = vrot.slane %v8186_v14, 5 }
 0x11f   : > { %6599 = vmatprep.subr.bf16.mxu1 %v7279_v55  ;;  %v1830_v20 = vrot.slane %v7372_v11, 5  ;;  %v8198_v39 = vrot.slane %v2926_v63, 4  ;;  %v7380_v5 = vld [vmem:[#allocation2 + $0x20] sm:$0x1]  ;;  %v1779_v2 = vld [vmem:[#allocation2 + $0x3c] sm:$0xe] }
 0x120   : > { %6782 = vmatmul.mubr.bf16.gmra.mrb[24].mxu0 %v6023_v21  ;;  %v8195_v21 = vld [vmem:[#allocation2 + $0x58] sm:$0xf]  ;;  %9198 = vst [vmem:[#allocation11_spill] sm:$0xff] %v8200_v18  ;;  %v8236_v11 = vld [vmem:[#allocation3 + $0x1d0] sm:$0xff]   ;;  %v5911_v14 = vrot.slane %v1779_v2, 9  ;;  %v1871_v2 = vrot.slane %v1869_v6, 4 }
 0x121   : > { %6785 = vmatprep.mubr.bf16.mxu0 %v6024_v17  ;;  %v3414_v49 = vld [vmem:[#allocation2 + $0xc0] sm:$0xe]  ;;  %v1829_v17 = vrot.slane %v1827_v60, 4  ;;  %9197 = vst [vmem:[#allocation10_spill] sm:$0xff] %v8198_v39  ;;  %v4292_v18 = vld [vmem:[#allocation2 + $0x38] sm:$0x1] }
 0x122   : > { %6600 = vmatpush3.bf16.msra.mxu1 %v7279_v55  ;;  %v6009_v33 = vrot.slane %v3414_v49, 9  ;;  %v2691_v38 = vld [vmem:[#allocation2 + $0xc4] sm:$0xf]  ;;  %v2692_v24 = vld [vmem:[#allocation2 + $0xc8] sm:$0x1] }
 0x123   : > { %6601 = vmatprep.subr.bf16.mxu1 %v7283_v51  ;;  %v3570_v35 = vrot.slane %v2691_v38, 5  ;;  %v3573_v57 = vrot.slane %v2692_v24, 5  ;;  %v7374_v55 = vld [vmem:[#allocation2 + $0x54] sm:$0xf]  ;;  %v7293_v49 = vld [vmem:[#allocation2 + $0x24] sm:$0xff]   ;;  %v1834_v24 = vrot.slane %v8153_v37, 5  ;;  %v8229_v37 = vsel %vm7780_vm13, %v1829_v17, %v1830_v20 }
 0x124   : > { %v5889_v8 = vcombine.low %v7374_v55, %v8195_v21  ;;  %v7387_v38 = vld [vmem:[#allocation2 + $0x74] sm:$0x1] }
 0x125   : > { %6570 = vmatmul.mubr.bf16.gmra.mrb[4].mxu1 %v5885_v36  ;;  %v3571_v46 = vsel %vm7780_vm13, %v6009_v33, %v3570_v35  ;;  %v3572_v13 = vrot.slane %v3570_v35, 4  ;;  %v7296_v33 = vld [vmem:[#allocation2 + $0x30] sm:$0xff]   ;;  %v1776_v35 = vld [vmem:[#allocation2 + $0x18] sm:$0xe]  ;;  %v1836_v20 = vrot.slane %v1834_v24, 4  ;;  %v8244_v4 = vsel %vm7780_vm13, %v5907_v52, %v1834_v24 }
 0x126   : > { %6573 = vmatprep.mubr.bf16.mxu1 %v5886_v48  ;;  %6602 = vmatpush3.bf16.msra.mxu1 %v7283_v51  ;;  %v7376_v51 = vld [vmem:[#allocation2 + $0x60] sm:$0xf]  ;;  %v5891_v48 = vcombine.low %v8205_v41, %v8207_v50  ;;  %v5908_v63 = vrot.slane %v1776_v35, 9  ;;  %v1890_v41 = vrot.slane %v8207_v50, 5  ;;  %v1893_v59 = vrot.slane %v7387_v38, 5 }
 0x127   : > { %6603 = vmatprep.subr.bf16.mxu1 %v7287_v12  ;;  %v3574_v56 = vsel %vm7780_vm13, %v3572_v13, %v3573_v57  ;;  %v5890_v36 = vcombine.low %v7376_v51, %v8202_v34  ;;  %v1841_v57 = vrot.slane %v8160_v9, 5  ;;  %v1848_v9 = vrot.slane %v8169_v15, 5  ;;  %v7302_v13 = vld [vmem:[#allocation2 + $0x48] sm:$0xff]  }
 0x128   : > { %v6025_v42 = vcombine.low %v3571_v46, %v3574_v56  ;;  %v8225_v56 = vsel %vm7780_vm13, %v5906_v26, %v1827_v60  ;;  %v1862_v60 = vrot.slane %v8181_v1, 5  ;;  %v1780_v26 = vld [vmem:[#allocation2 + $0x48] sm:$0xe]  ;;  %v7381_v1 = vld [vmem:[#allocation2 + $0x2c] sm:$0x1] }
 0x129   : > { %v1843_v55 = vrot.slane %v1841_v57, 4  ;;  %v1851_v51 = vrot.slane %v7381_v1, 5  ;;  %v1850_v35 = vrot.slane %v1848_v9, 4  ;;  %v8250_v24 = vsel %vm7780_vm13, %v5908_v63, %v1841_v57  ;;  %v7383_v1 = vld [vmem:[#allocation2 + $0x44] sm:$0x1] }
 0x12a   : > { %6604 = vmatpush3.bf16.msra.mxu1 %v7287_v12  ;;  %6786 = vmatmul.mubr.bf16.gmra.mrb[28].mxu0 %v6025_v42  ;;  %v7304_v12 = vld [vmem:[#allocation3 + $0xb0] sm:$0xff]   ;;  %v7310_v42 = vld [vmem:[#allocation3 + $0xb8] sm:$0xff]   ;;  %v1864_v52 = vrot.slane %v1862_v60, 4  ;;  %v1782_v63 = vld [vmem:[#allocation2 + $0x60] sm:$0xe] }
 0x12b   : > { %6605 = vmatprep.subr.bf16.mxu1 %v7292_v7  ;;  %6805 = vmatprep.mubr.bf16.mxu0 %v7290_v10  ;;  %v1778_v10 = vld [vmem:[#allocation2 + $0x30] sm:$0xe]  ;;  %v1781_v57 = vld [vmem:[#allocation2 + $0x54] sm:$0xe] }
 0x12d   : > { %6574 = vmatmul.mubr.bf16.gmra.mrb[8].mxu1 %v5887_v54  ;;  %v1777_v54 = vld [vmem:[#allocation2 + $0x24] sm:$0xe] }
 0x12e   : > { %6577 = vmatprep.mubr.bf16.mxu1 %v5888_v23  ;;  %6606 = vmatpush3.bf16.msra.mxu1 %v7292_v7  ;;  %v5909_v15 = vrot.slane %v1777_v54, 9  ;;  %v1857_v54 = vrot.slane %v1855_v53, 4  ;;  %v7299_v7 = vld [vmem:[#allocation2 + $0x3c] sm:$0xff]  }
 0x12f   : > { %6607 = vmatprep.subr.bf16.mxu1 %v7298_v3 }
 0x132   : > { %6608 = vmatpush3.bf16.msra.mxu1 %v7298_v3  ;;  %v1844_v3 = vrot.slane %v7380_v5, 5  ;;  %6806 = vmatmul.mubr.bf16.vlgmr.msra.gmra.mrb[0].mxu0 %v7293_v49  ;;  %v5910_v49 = vrot.slane %v1778_v10, 9  ;;  %v7382_v5 = vld [vmem:[#allocation2 + $0x38] sm:$0x1]  ;;  %v1865_v10 = vrot.slane %v7383_v1, 5 }
 0x133   : > { %6609 = vmatprep.subr.bf16.mxu1 %v7304_v12  ;;  %6838 = vmatpush3.bf16.msra.mxu0 %v8050_v32  ;;  %v1858_v23 = vrot.slane %v7382_v5, 5  ;;  %v8246_v32 = vld [vmem:[#allocation3 + $0xc0] sm:$0xff]   ;;  %v7384_v5 = vld [vmem:[#allocation2 + $0x50] sm:$0x1] }
 0x134   : > { %6809 = vmatprep.mubr.bf16.mxu0 %v7296_v33  ;;  %6839 = vmatprep.subr.bf16.mxu0 %v7300_v40  ;;  %v8256_v33 = vsel %vm7780_vm13, %v1836_v20, %v1837_v47  ;;  %v1872_v17 = vrot.slane %v7384_v5, 5  ;;  %v8268_v19 = vsel %vm7780_vm13, %v5910_v49, %v1855_v53  ;;  %v4285_v47 = vld [vmem:[#allocation2 + $0x1c] sm:$0xf]  ;;  %v1876_v53 = vrot.slane %v8195_v21, 5  ;;  %v4290_v5 = vld [vmem:[#allocation2 + $0x30] sm:$0xf] }
 0x135   : > { %6578 = vmatmul.mubr.bf16.gmra.mrb[12].mxu1 %v5889_v8  ;;  %v4284_v8 = vld [vmem:[#allocation2 + $0x18] sm:$0xf]  ;;  %v5913_v49 = vrot.slane %v1781_v57, 9  ;;  %v1883_v21 = vrot.slane %v8202_v34, 5  ;;  %v1783_v57 = vld [vmem:[#allocation2 + $0x6c] sm:$0xe] }
 0x136   : > { %6581 = vmatprep.mubr.bf16.mxu1 %v5890_v36  ;;  %6610 = vmatpush3.bf16.msra.mxu1 %v7304_v12  ;;  %v5912_v36 = vrot.slane %v1780_v26, 9  ;;  %v8260_v12 = vsel %vm7780_vm13, %v1843_v55, %v1844_v3  ;;  %v8264_v26 = vsel %vm7780_vm13, %v5909_v15, %v1848_v9  ;;  %v4333_v20 = vshrl.u32 %v4284_v8, 16  ;;  %v7312_v55 = vld [vmem:[#allocation3 + $0x1d8] sm:$0xff]  }
 0x137   : > { %6611 = vmatprep.subr.bf16.mxu1 %v7310_v42  ;;  %6840 = vmatpush3.bf16.msra.mxu0 %v7300_v40  ;;  %v4336_v1 = vshll.u32 %v4284_v8, 16  ;;  %v8273_v3 = vsel %vm7780_vm13, %v1850_v35, %v1851_v51  ;;  %v8277_v40 = vsel %vm7780_vm13, %v1857_v54, %v1858_v23  ;;  %v8281_v9 = vsel %vm7780_vm13, %v5911_v14, %v1862_v60  ;;  %v7305_v34 = vld [vmem:[#allocation2 + $0x54] sm:$0xff]  }
 0x138   : > { %6841 = vmatprep.subr.bf16.mxu0 %v8236_v11  ;;  %v8286_v15 = vsel %vm7780_vm13, %v1864_v52, %v1865_v10  ;;  %v8290_v51 = vsel %vm7780_vm13, %v5912_v36, %v1869_v6  ;;  %v5914_v35 = vrot.slane %v1782_v63, 9  ;;  %v8295_v23 = vsel %vm7780_vm13, %v1871_v2, %v1872_v17  ;;  %v4287_v52 = vld [vmem:[#allocation2 + $0x24] sm:$0xf]  ;;  %v4288_v10 = vld [vmem:[#allocation2 + $0x28] sm:$0xf] }
 0x139   : > { %9199 = vst [vmem:[#allocation12_spill] sm:$0xff] %v8295_v23  ;;  %v4342_v60 = vshll.u32 %v4285_v47, 16  ;;  %v4346_v54 = vshrl.u32 %v4285_v47, 16  ;;  %v4335_v8 = vrot.slane %v4333_v20, 4  ;;  %v4338_v17 = vrot.slane %v4336_v1, 5  ;;  %v7315_v23 = vld [vmem:[#allocation2 + $0x84] sm:$0xff]  }
 0x13a   : > { %6612 = vmatpush3.bf16.msra.mxu1 %v7310_v42  ;;  %6810 = vmatmul.mubr.bf16.gmra.mrb[4].mxu0 %v7299_v7  ;;  %v4286_v42 = vld [vmem:[#allocation2 + $0x20] sm:$0x1]  ;;  %v7316_v7 = vld [vmem:[#allocation3 + $0x1e0] sm:$0xff]   ;;  %v8319_v45 = vsel %vm7780_vm13, %v5913_v49, %v1876_v53  ;;  %v1885_v63 = vrot.slane %v1883_v21, 4  ;;  %v4357_v27 = vshrl.u32 %v4287_v52, 16  ;;  %v4360_v14 = vshll.u32 %v4287_v52, 16 }
 0x13b   : > { %6645 = vmatprep.subr.bf16.mxu1 %v8246_v32  ;;  %6813 = vmatprep.mubr.bf16.mxu0 %v7302_v13  ;;  %v1878_v13 = vrot.slane %v1876_v53, 4  ;;  %v7385_v36 = vld [vmem:[#allocation2 + $0x5c] sm:$0x1]  ;;  %9200 = vst [vmem:[#allocation13_spill] sm:$0xff] %v8319_v45  ;;  %v8325_v47 = vrot.slane %v4342_v60, 5  ;;  %v4348_v20 = vrot.slane %v4346_v54, 4  ;;  %v9204_v45 = vcombine.low %v8055_v16, %v8064_v29 }
 0x13c   : > { %6842 = vmatpush3.bf16.msra.mxu0 %v8236_v11  ;;  %v1879_v2 = vrot.slane %v7385_v36, 5  ;;  %v4291_v11 = vld [vmem:[#allocation2 + $0x34] sm:$0xf]  ;;  %v4352_v1 = vshll.u32 %v4286_v42, 16  ;;  %v7308_v36 = vld [vmem:[#allocation2 + $0x60] sm:$0xff]   ;;  %v4370_v60 = vshrl.u32 %v4288_v10, 16 }
 0x13d   : > { %6582 = vmatmul.mubr.bf16.gmra.mrb[16].mxu1 %v5891_v48  ;;  %6843 = vmatprep.subr.bf16.mxu0 %v7312_v55  ;;  %v4339_v48 = vor.u32 %v4338_v17, %v4335_v8  ;;  %v7320_v53 = vld [vmem:[#allocation3 + $0x1e8] sm:$0xff]   ;;  %v4381_v54 = vshrl.u32 %v4290_v5, 16  ;;  %v4384_v42 = vshll.u32 %v4290_v5, 16  ;;  %v4390_v46 = vshll.u32 %v4291_v11, 16  ;;  %v4293_v17 = vld [vmem:[#allocation2 + $0x3c] sm:$0xf] }
 0x13e   : > { %6585 = vmatprep.mubr.bf16.mxu1 %v5892_v30  ;;  %v8323_v30 = vsel %vm7780_vm13, %v5914_v35, %v1883_v21  ;;  %v8330_v49 = vsel %vm7780_vm13, %v1878_v13, %v1879_v2  ;;  %v7386_v35 = vld [vmem:[#allocation2 + $0x68] sm:$0x1]  ;;  %v4366_v21 = vshll.u32 %v4288_v10, 16  ;;  %v4394_v8 = vshrl.u32 %v4291_v11, 16  ;;  %v4289_v13 = vld [vmem:[#allocation2 + $0x2c] sm:$0x1] }
 0x13f   : > { %9201 = vst [vmem:[#allocation14_spill] sm:$0xff] %v8330_v49  ;;  %v1886_v6 = vrot.slane %v7386_v35, 5  ;;  %v4349_v50 = vor.u32 %v4348_v20, %v8325_v47  ;;  %v8333_v52 = vrot.slane %v4352_v1, 5  ;;  %v4294_v2 = vld [vmem:[#allocation2 + $0x40] sm:$0xf]  ;;  %v9202_v35 = vcombine.low %v7995_v0, %v7993_v62  ;;  %v7324_v10 = vld [vmem:[#allocation3 + $0x1f0] sm:$0xff]  }
 0x140   : > { %6844 = vmatpush3.bf16.msra.mxu0 %v7312_v55  ;;  %v5915_v55 = vrot.slane %v1783_v57, 9  ;;  %v8338_v5 = vrot.slane %v4339_v48, 4  ;;  %v1892_v11 = vrot.slane %v1890_v41, 4  ;;  %v4359_v39 = vrot.slane %v4357_v27, 4  ;;  %v8371_v49 = vld [vmem:[#allocation2 + $0x4c] sm:$0xf] }
 0x141   : > { %6845 = vmatprep.subr.bf16.mxu0 %v7316_v7  ;;  %v9203_v20 = vcombine.low %v8027_v61, %v8039_v31  ;;  %v8347_v62 = vsel %vm7780_vm13, %v1885_v63, %v1886_v6  ;;  %v8349_v0 = vrot.slane %v4366_v21, 5  ;;  %v4372_v48 = vrot.slane %v4370_v60, 4  ;;  %v1784_v60 = vld [vmem:[#allocation2 + $0x78] sm:$0xe] }
 0x142   : > { %6814 = vmatmul.mubr.bf16.gmra.mrb[8].mxu0 %v7305_v34  ;;  %v4362_v34 = vrot.slane %v4360_v14, 5  ;;  %v4383_v57 = vrot.slane %v4381_v54, 4  ;;  %v4386_v27 = vrot.slane %v4384_v42, 5  ;;  %v8351_v14 = vrot.slane %v4390_v46, 5  ;;  %v7388_v42 = vld [vmem:[#allocation2 + $0x7c] sm:$0xf] }
 0x143   : > { %6817 = vmatprep.mubr.bf16.mxu0 %v7308_v36  ;;  %v4396_v1 = vrot.slane %v4394_v8, 4  ;;  %v7311_v36 = vld [vmem:[#allocation2 + $0x6c] sm:$0xff]   ;;  %v4405_v61 = vshrl.u32 %v4293_v17, 16  ;;  %v4408_v31 = vshll.u32 %v4293_v17, 16  ;;  %v8353_v38 = vrot.slane %v4349_v50, 4 }
 0x144   : > { %6846 = vmatpush3.bf16.msra.mxu0 %v7316_v7  ;;  %v4414_v7 = vshll.u32 %v4294_v2, 16  ;;  %v8357_v6 = vsel %vm7780_vm13, %v5915_v55, %v1890_v41  ;;  %v4363_v63 = vor.u32 %v4362_v34, %v4359_v39  ;;  %v4376_v21 = vshll.u32 %v4289_v13, 16  ;;  %v7328_v50 = vld [vmem:[#allocation3 + $0x1f8] sm:$0xff]   ;;  %v7389_v55 = vld [vmem:[#allocation2 + $0x88] sm:$0xf] }
 0x145   : > { %6586 = vmatmul.mubr.bf16.gmra.mrb[20].mxu1 %v9202_v35  ;;  %6847 = vmatprep.subr.bf16.mxu0 %v7320_v53  ;;  %v4418_v35 = vshrl.u32 %v4294_v2, 16  ;;  %v8361_v46 = vsel %vm7780_vm13, %v1892_v11, %v1893_v59  ;;  %v4373_v54 = vor.u32 %v4372_v48, %v8349_v0  ;;  %v1897_v8 = vrot.slane %v7388_v42, 5  ;;  %v1785_v2 = vld [vmem:[#allocation2 + $0x84] sm:$0xe]  ;;  %v4295_v59 = vld [vmem:[#allocation2 + $0x44] sm:$0x1] }
 0x146   : > { %6589 = vmatprep.mubr.bf16.mxu1 %v9203_v20  ;;  %v7313_v20 = vld [vmem:[#allocation2 + $0x78] sm:$0xff]   ;;  %v4400_v17 = vshll.u32 %v4292_v18, 16  ;;  %v4387_v41 = vor.u32 %v4386_v27, %v4383_v57  ;;  %v1904_v13 = vrot.slane %v7389_v55, 5  ;;  %v4407_v11 = vrot.slane %v4405_v61, 4  ;;  %v4296_v42 = vld [vmem:[#allocation2 + $0x48] sm:$0xf] }
 0x147   : > { %v4410_v34 = vrot.slane %v4408_v31, 5  ;;  %v8369_v48 = vrot.slane %v4414_v7, 5  ;;  %v4420_v18 = vrot.slane %v4418_v35, 4  ;;  %v8376_v57 = vrot.slane %v4363_v63, 4  ;;  %v7390_v61 = vld [vmem:[#allocation2 + $0x80] sm:$0x1] }
 0x148   : > { %6848 = vmatpush3.bf16.msra.mxu0 %v7320_v53  ;;  %v4397_v53 = vor.u32 %v4396_v1, %v8351_v14  ;;  %v8378_v27 = vrot.slane %v4376_v21, 5  ;;  %v8380_v1 = vld [vmem:[#allocation3 + $0x200] sm:$0xff]   ;;  %v1900_v31 = vrot.slane %v7390_v61, 5  ;;  %v9205_v7 = vcombine.low %v8077_v44, %v8082_v58  ;;  %v7391_v63 = vld [vmem:[#allocation2 + $0x8c] sm:$0x1] }
 0x149   : > { %6849 = vmatprep.subr.bf16.mxu0 %v7324_v10  ;;  %v4374_v35 = vrot.slane %v4373_v54, 4  ;;  %v1899_v55 = vrot.slane %v1897_v8, 4  ;;  %v4402_v39 = vrot.slane %v4400_v17, 5  ;;  %v5917_v16 = vrot.slane %v1785_v2, 9 }
 0x14a   : > { %6818 = vmatmul.mubr.bf16.gmra.mrb[12].mxu0 %v7311_v36  ;;  %v5916_v36 = vrot.slane %v1784_v60, 9  ;;  %v4388_v29 = vrot.slane %v4387_v41, 4  ;;  %v1907_v21 = vrot.slane %v7391_v63, 5  ;;  %v4355_v60 = vsel %vm7621_vm7, %v8353_v38, %v8333_v52 }
 0x14b   : > { %6821 = vmatprep.mubr.bf16.mxu0 %v7313_v20  ;;  %v1906_v20 = vrot.slane %v1904_v13, 4  ;;  %v4411_v61 = vor.u32 %v4410_v34, %v4407_v11  ;;  %v4421_v44 = vor.u32 %v4420_v18, %v8369_v48  ;;  %v4424_v58 = vshll.u32 %v4295_v59, 16  ;;  %v8421_v34 = vld [vmem:[#allocation2 + $0x90] sm:$0xe]  ;;  %v4299_v18 = vld [vmem:[#allocation2 + $0x54] sm:$0xf] }
 0x14c   : > { %6850 = vmatpush3.bf16.msra.mxu0 %v7324_v10  ;;  %v7317_v10 = vld [vmem:[#allocation2 + $0x90] sm:$0xff]   ;;  %v4429_v54 = vshrl.u32 %v4296_v42, 16  ;;  %v4432_v17 = vshll.u32 %v4296_v42, 16  ;;  %v4438_v2 = vshll.u32 %v8371_v49, 16  ;;  %v4442_v41 = vshrl.u32 %v8371_v49, 16 }
 0x14d   : > { %6590 = vmatmul.mubr.bf16.gmra.mrb[24].mxu1 %v9204_v45  ;;  %6851 = vmatprep.subr.bf16.mxu0 %v7328_v50  ;;  %v4398_v45 = vrot.slane %v4397_v53, 4  ;;  %v4369_v53 = vsel %vm7621_vm7, %v8376_v57, %v8349_v0  ;;  %v4379_v52 = vsel %vm7621_vm7, %v4374_v35, %v8378_v27  ;;  %v8401_v38 = vsel %vm7780_vm13, %v5916_v36, %v1897_v8  ;;  %v8429_v27 = vld [vmem:[#allocation2 + $0x94] sm:$0xf] }
 0x14e   : > { %6593 = vmatprep.mubr.bf16.mxu1 %v9205_v7  ;;  %v8405_v59 = vsel %vm7780_vm13, %v1899_v55, %v1900_v31  ;;  %v8415_v11 = vsel %vm7780_vm13, %v5917_v16, %v1904_v13  ;;  %v8419_v8 = vsel %vm7780_vm13, %v1906_v20, %v1907_v21  ;;  %v8423_v42 = vrot.slane %v4411_v61, 4  ;;  %v8432_v13 = vld [vmem:[#allocation2 + $0x58] sm:$0xf]  ;;  %v8437_v31 = vld [vmem:[#allocation2 + $0x50] sm:$0x1]  ;;  %v7319_v61 = vld [vmem:[#allocation2 + $0x9c] sm:$0xff]  }
 0x14f   : > { %v4403_v0 = vsel %vm7621_vm7, %v4398_v45, %v4402_v39  ;;  %9206 = vst [vmem:[#allocation15_spill] sm:$0xff] %v8415_v11  ;;  %9207 = vst [vmem:[#allocation16_spill] sm:$0xff] %v8419_v8  ;;  %v8425_v57 = vrot.slane %v4421_v44, 4  ;;  %v9164_v39 = vrot.slane %v8429_v27, 5  ;;  %v9208_v36 = vcombine.low %v8112_v43, %v8120_v28  ;;  %v9233_v11 = vld [vmem:[#allocation14_spill] sm:$0xff] }
 0x150   : > { %6852 = vmatpush3.bf16.msra.mxu0 %v7328_v50  ;;  %v4393_v50 = vsel %vm7621_vm7, %v4388_v29, %v8351_v14  ;;  %v8427_v14 = vrot.slane %v4424_v58, 5  ;;  %v4434_v7 = vrot.slane %v4432_v17, 5  ;;  %v8439_v35 = vrot.slane %v4438_v2, 5  ;;  %v7393_v2 = vld [vmem:[#allocation2 + $0x98] sm:$0x1] }
 0x151   : > { %6885 = vmatprep.subr.bf16.mxu0 %v8380_v1  ;;  %v4444_v55 = vrot.slane %v4442_v41, 4  ;;  %v9209_v16 = vcombine.low %v8225_v56, %v8229_v37  ;;  %v4453_v43 = vshrl.u32 %v4299_v18, 16  ;;  %v4456_v28 = vshll.u32 %v4299_v18, 16  ;;  %v7395_v29 = vld [vmem:[#allocation2 + $0xa4] sm:$0x1] }
 0x152   : > { %6822 = vmatmul.mubr.bf16.gmra.mrb[16].mxu0 %v7315_v23  ;;  %v4431_v23 = vrot.slane %v4429_v54, 4  ;;  %v9210_v20 = vsel %vm7621_vm7, %v8338_v5, %v8325_v47  ;;  %v4462_v56 = vshll.u32 %v8432_v13, 16  ;;  %v4466_v37 = vshrl.u32 %v8432_v13, 16  ;;  %v1787_v47 = vld [vmem:[#allocation2 + $0x9c] sm:$0xe] }
 0x153   : > { %6825 = vmatprep.mubr.bf16.mxu0 %v7317_v10  ;;  %v8453_v63 = vcombine.low %v9210_v20, %v4355_v60  ;;  %v8459_v44 = vcombine.low %v4369_v53, %v4379_v52  ;;  %v8461_v58 = vcombine.low %v4393_v50, %v4403_v0  ;;  %v5918_v54 = vrot.slane %v8421_v34, 9  ;;  %v4302_v5 = vld [vmem:[#allocation2 + $0x60] sm:$0xf]  ;;  %v7321_v60 = vld [vmem:[#allocation2 + $0xa8] sm:$0xff]   ;;  %v8468_v53 = vld [vmem:[#allocation2 + $0x64] sm:$0xf] }
 0x154   : > { %v1913_v17 = vrot.slane %v9164_v39, 4  ;;  %v1914_v41 = vrot.slane %v7393_v2, 5  ;;  %v4435_v18 = vor.u32 %v4434_v7, %v4431_v23  ;;  %9211 = vst [vmem:[#allocation17_spill] sm:$0xff] %v8468_v53  ;;  %v7318_v52 = vld [vmem:[#allocation3 + $0xc8] sm:$0xff]   ;;  %v4445_v50 = vor.u32 %v4444_v55, %v8439_v35  ;;  %v8480_v7 = vld [vmem:[#allocation2 + $0x5c] sm:$0x1] }
 0x155   : > { %6594 = vmatmul.mubr.bf16.gmra.mrb[28].mxu1 %v9208_v36  ;;  %v7394_v36 = vld [vmem:[#allocation2 + $0xa0] sm:$0xf]  ;;  %v4448_v0 = vshll.u32 %v8437_v31, 16  ;;  %v4455_v20 = vrot.slane %v4453_v43, 4  ;;  %v4458_v34 = vrot.slane %v4456_v28, 5  ;;  %v4417_v10 = vsel %vm7621_vm7, %v8423_v42, %v8369_v48  ;;  %v7322_v42 = vld [vmem:[#allocation3 + $0xd0] sm:$0xff]  }
 0x156   : > { %6613 = vmatprep.mubr.bf16.mxu1 %v9209_v16  ;;  %v1918_v16 = vrot.slane %v7394_v36, 5  ;;  %v4427_v23 = vsel %vm7621_vm7, %v8425_v57, %v8427_v14  ;;  %v8482_v2 = vrot.slane %v4462_v56, 5  ;;  %v4468_v36 = vrot.slane %v4466_v37, 4  ;;  %v1788_v39 = vld [vmem:[#allocation2 + $0xa8] sm:$0xe] }
 0x157   : > { %v4477_v55 = vshrl.u32 %v4302_v5, 16  ;;  %v4480_v21 = vshll.u32 %v4302_v5, 16  ;;  %v4486_v43 = vshll.u32 %v8468_v53, 16  ;;  %v4490_v28 = vshrl.u32 %v8468_v53, 16 }
 0x158   : > { %v9212_v48 = vcombine.low %v8244_v4, %v8256_v33  ;;  %v4436_v45 = vrot.slane %v4435_v18, 4  ;;  %v5919_v57 = vrot.slane %v1787_v47, 9  ;;  %v1920_v14 = vrot.slane %v1918_v16, 4  ;;  %v7325_v33 = vld [vmem:[#allocation2 + $0xc0] sm:$0xff]   ;;  %v8503_v18 = vld [vmem:[#allocation2 + $0x68] sm:$0x1] }
 0x159   : > { %v1921_v56 = vrot.slane %v7395_v29, 5  ;;  %v9213_v37 = vcombine.low %v8250_v24, %v8260_v12  ;;  %v4446_v5 = vrot.slane %v4445_v50, 4  ;;  %v4450_v53 = vrot.slane %v4448_v0, 5  ;;  %v7396_v24 = vld [vmem:[#allocation2 + $0xac] sm:$0xf]  ;;  %9216 = vst [vmem:[#allocation19_spill] sm:$0xff] %v8503_v18 }
 0x15a   : > { %6826 = vmatmul.mubr.bf16.gmra.mrb[20].mxu0 %v7319_v61  ;;  %v7323_v61 = vld [vmem:[#allocation2 + $0xb4] sm:$0xff]   ;;  %v4459_v8 = vor.u32 %v4458_v34, %v4455_v20  ;;  %v4472_v4 = vshll.u32 %v8480_v7, 16  ;;  %v9214_v47 = vrot.slane %v8429_v27, 5  ;;  %v1925_v12 = vrot.slane %v7396_v24, 5 }
 0x15b   : > { %6829 = vmatprep.mubr.bf16.mxu0 %v7321_v60  ;;  %v8494_v60 = vcombine.low %v4417_v10, %v4427_v23  ;;  %v4479_v50 = vrot.slane %v4477_v55, 4  ;;  %v4482_v0 = vrot.slane %v4480_v21, 5  ;;  %v8505_v20 = vrot.slane %v4486_v43, 5  ;;  %v4305_v21 = vld [vmem:[#allocation2 + $0x6c] sm:$0xf]  ;;  %v7326_v55 = vld [vmem:[#allocation3 + $0xd8] sm:$0xff]  }
 0x15c   : > { %v8500_v29 = vsel %vm7780_vm13, %v5918_v54, %v9214_v47  ;;  %v4492_v34 = vrot.slane %v4490_v28, 4  ;;  %v8509_v10 = vsel %vm7780_vm13, %v1913_v17, %v1914_v41  ;;  %v4441_v27 = vsel %vm7621_vm7, %v4436_v45, %v8439_v35  ;;  %v1789_v45 = vld [vmem:[#allocation2 + $0xb4] sm:$0xe] }
 0x15d   : > { %6614 = vmatmul.mubr.bf16.vlgmr.msra.gmra.mrb[0].mxu1 %v9212_v48  ;;  %9215 = vst [vmem:[#allocation18_spill] sm:$0xff] %v8500_v29  ;;  %9217 = vst [vmem:[#allocation20_spill] sm:$0xff] %v8509_v10  ;;  %v8516_v54 = vsel %vm7780_vm13, %v5919_v57, %v1918_v16  ;;  %v8520_v23 = vsel %vm7780_vm13, %v1920_v14, %v1921_v56  ;;  %v4451_v17 = vsel %vm7621_vm7, %v4446_v5, %v4450_v53  ;;  %v7397_v48 = vld [vmem:[#allocation2 + $0xb0] sm:$0x1]  ;;  %v7398_v53 = vld [vmem:[#allocation2 + $0xb8] sm:$0xf] }
 0x15e   : > { %6646 = vmatpush3.bf16.msra.mxu1 %v8246_v32  ;;  %6617 = vmatprep.mubr.bf16.mxu1 %v9213_v37  ;;  %v4469_v32 = vor.u32 %v4468_v36, %v8482_v2  ;;  %9218 = vst [vmem:[#allocation21_spill] sm:$0xff] %v8516_v54  ;;  %9219 = vst [vmem:[#allocation22_spill] sm:$0xff] %v8520_v23  ;;  %v8522_v36 = vld [vmem:[#allocation2 + $0x70] sm:$0xf]  ;;  %v8526_v41 = vrot.slane %v4459_v8, 4  ;;  %v4474_v43 = vrot.slane %v4472_v4, 5 }
 0x15f   : > { %6647 = vmatprep.subr.bf16.mxu1 %v7318_v52  ;;  %9220 = vst [vmem:[#allocation23_spill] sm:$0xff] %v8522_v36  ;;  %v5920_v35 = vrot.slane %v1788_v39, 9  ;;  %v1927_v28 = vrot.slane %v1925_v12, 4  ;;  %v1928_v57 = vrot.slane %v7397_v48, 5  ;;  %v4496_v14 = vshll.u32 %v8503_v18, 16  ;;  %v7329_v4 = vld [vmem:[#allocation3 + $0xe0] sm:$0xff]  }
 0x160   : > { %v4470_v16 = vrot.slane %v4469_v32, 4  ;;  %v4483_v56 = vor.u32 %v4482_v0, %v4479_v50  ;;  %v4493_v37 = vor.u32 %v4492_v34, %v8505_v20  ;;  %v1932_v8 = vrot.slane %v7398_v53, 5  ;;  %v4308_v5 = vld [vmem:[#allocation2 + $0x78] sm:$0xf]  ;;  %v8539_v48 = vld [vmem:[#allocation2 + $0x7c] sm:$0xf] }
 0x161   : > { %v9221_v39 = vcombine.low %v8264_v26, %v8273_v3  ;;  %v8535_v47 = vcombine.low %v4441_v27, %v4451_v17  ;;  %v4501_v32 = vshrl.u32 %v4305_v21, 16  ;;  %v4504_v24 = vshll.u32 %v4305_v21, 16  ;;  %9222 = vst [vmem:[#allocation24_spill] sm:$0xff] %v8539_v48  ;;  %v7327_v0 = vld [vmem:[#allocation2 + $0xcc] sm:$0xff]   ;;  %v4311_v27 = vld [vmem:[#allocation2 + $0x84] sm:$0xf] }
 0x162   : > { %6648 = vmatpush3.bf16.msra.mxu1 %v7318_v52  ;;  %6830 = vmatmul.mubr.bf16.gmra.mrb[24].mxu0 %v7323_v61  ;;  %v9223_v50 = vcombine.low %v8268_v19, %v8277_v40  ;;  %v4465_v26 = vsel %vm7621_vm7, %v8526_v41, %v8482_v2  ;;  %v8550_v3 = vsel %vm7780_vm13, %v5920_v35, %v1925_v12  ;;  %v4514_v34 = vshrl.u32 %v8522_v36, 16  ;;  %v8554_v21 = vld [vmem:[#allocation2 + $0x88] sm:$0xf]  ;;  %v4314_v12 = vld [vmem:[#allocation2 + $0x90] sm:$0xf]  ;;  %v7331_v61 = vld [vmem:[#allocation3 + $0xe8] sm:$0xff]  }
 0x163   : > { %6649 = vmatprep.subr.bf16.mxu1 %v7322_v42  ;;  %6833 = vmatprep.mubr.bf16.mxu0 %v7325_v33  ;;  %v4510_v33 = vshll.u32 %v8522_v36, 16  ;;  %9224 = vst [vmem:[#allocation25_spill] sm:$0xff] %v8554_v21  ;;  %v4475_v19 = vsel %vm7621_vm7, %v4470_v16, %v4474_v43  ;;  %v8560_v40 = vsel %vm7780_vm13, %v1927_v28, %v1928_v57  ;;  %v8562_v2 = vrot.slane %v4496_v14, 5  ;;  %v8570_v53 = vld [vmem:[#allocation2 + $0xbc] sm:$0x1] }
 0x164   : > { %v8564_v17 = vrot.slane %v4483_v56, 4  ;;  %v8566_v41 = vrot.slane %v4493_v37, 4  ;;  %v8568_v35 = vrot.slane %v1932_v8, 4  ;;  %v8575_v43 = vrot.slane %v4501_v32, 4  ;;  %v8599_v54 = vld [vmem:[#allocation2 + $0x80] sm:$0x1] }
 0x165   : > { %6618 = vmatmul.mubr.bf16.gmra.mrb[4].mxu1 %v9221_v39  ;;  %v8577_v16 = vrot.slane %v4504_v24, 5  ;;  %v4525_v28 = vshrl.u32 %v4308_v5, 16  ;;  %v4528_v57 = vshll.u32 %v4308_v5, 16  ;;  %v8581_v14 = vrot.slane %v4514_v34, 4  ;;  %v8593_v5 = vld [vmem:[#allocation2 + $0x74] sm:$0x1] }
 0x166   : > { %6621 = vmatprep.mubr.bf16.mxu1 %v9223_v50  ;;  %6650 = vmatpush3.bf16.msra.mxu1 %v7322_v42  ;;  %v5921_v42 = vrot.slane %v1789_v45, 9  ;;  %v8573_v50 = vld [vmem:[#allocation2 + $0x94] sm:$0xf]  ;;  %v8579_v45 = vrot.slane %v4510_v33, 5  ;;  %v4534_v56 = vshll.u32 %v8539_v48, 16  ;;  %v4538_v37 = vshrl.u32 %v8539_v48, 16 }
 0x167   : > { %6651 = vmatprep.subr.bf16.mxu1 %v7326_v55  ;;  %9225 = vst [vmem:[#allocation26_spill] sm:$0xff] %v8573_v50  ;;  %v4549_v52 = vshrl.u32 %v4311_v27, 16  ;;  %v4552_v39 = vshll.u32 %v4311_v27, 16  ;;  %v4558_v32 = vshll.u32 %v8554_v21, 16  ;;  %v4562_v24 = vshrl.u32 %v8554_v21, 16  ;;  %9227 = vst [vmem:[#allocation28_spill] sm:$0xff] %v8593_v5 }
 0x168   : > { %v8587_v23 = vcombine.low %v4465_v26, %v4475_v19  ;;  %v4573_v33 = vshrl.u32 %v4314_v12, 16  ;;  %v4576_v34 = vshll.u32 %v4314_v12, 16  ;;  %v9228_v48 = vcombine.low %v8281_v9, %v8286_v15  ;;  %v7333_v27 = vld [vmem:[#allocation3 + $0xf0] sm:$0xff]   ;;  %9229 = vst [vmem:[#allocation29_spill] sm:$0xff] %v8599_v54  ;;  %v9230_v21 = vld [vmem:[#allocation12_spill] sm:$0xff]  ;;  %v9232_v29 = vld [vmem:[#allocation13_spill] sm:$0xff] }
 0x169   : > { %v4530_v26 = vrot.slane %v4528_v57, 5  ;;  %v4582_v19 = vshll.u32 %v8573_v50, 16  ;;  %v9231_v36 = vcombine.low %v8290_v51, %v9230_v21  ;;  %v4551_v12 = vrot.slane %v4549_v52, 4 }
 0x16a   : > { %6652 = vmatpush3.bf16.msra.mxu1 %v7326_v55  ;;  %6834 = vmatmul.mubr.bf16.gmra.mrb[28].mxu0 %v7327_v0  ;;  %9226 = vst [vmem:[#allocation27_spill] sm:$0xff] %v8587_v23  ;;  %v8591_v55 = vsel %vm7780_vm13, %v5921_v42, %v1932_v8  ;;  %v4527_v0 = vrot.slane %v4525_v28, 4  ;;  %v4586_v8 = vshrl.u32 %v8573_v50, 16  ;;  %v4317_v42 = vld [vmem:[#allocation2 + $0x9c] sm:$0xf]  ;;  %v4554_v28 = vrot.slane %v4552_v39, 5 }
 0x16b   : > { %6653 = vmatprep.subr.bf16.mxu1 %v7329_v4  ;;  %6853 = vmatprep.mubr.bf16.mxu0 %v8453_v63  ;;  %v8614_v63 = vrot.slane %v4534_v56, 5  ;;  %v8616_v57 = vrot.slane %v4558_v32, 5  ;;  %v4564_v51 = vrot.slane %v4562_v24, 4  ;;  %v4575_v21 = vrot.slane %v4573_v33, 4  ;;  %v8630_v24 = vld [vmem:[#allocation2 + $0x98] sm:$0x1] }
 0x16c   : > { %v4578_v9 = vrot.slane %v4576_v34, 5  ;;  %v4597_v50 = vshrl.u32 %v4317_v42, 16  ;;  %v4600_v18 = vshll.u32 %v4317_v42, 16  ;;  %v4507_v15 = vor.u32 %v8577_v16, %v8575_v43  ;;  %v7332_v42 = vld [vmem:[#allocation3 + $0x208] sm:$0xff]  }
 0x16d   : > { %6622 = vmatmul.mubr.bf16.gmra.mrb[8].mxu1 %v9228_v48  ;;  %v4540_v48 = vrot.slane %v4538_v37, 4  ;;  %v4520_v56 = vshll.u32 %v8593_v5, 16  ;;  %v8625_v37 = vrot.slane %v4582_v19, 5  ;;  %v4588_v52 = vrot.slane %v4586_v8, 4 }
 0x16e   : > { %6625 = vmatprep.mubr.bf16.mxu1 %v9231_v36  ;;  %6654 = vmatpush3.bf16.msra.mxu1 %v7329_v4  ;;  %v8618_v36 = vld [vmem:[#allocation2 + $0xa0] sm:$0xf]  ;;  %v8620_v4 = vld [vmem:[#allocation2 + $0x8c] sm:$0x1]  ;;  %v4517_v39 = vor.u32 %v8581_v14, %v8579_v45  ;;  %v4544_v32 = vshll.u32 %v8599_v54, 16  ;;  %v4531_v43 = vor.u32 %v4530_v26, %v4527_v0  ;;  %v4555_v19 = vor.u32 %v4554_v28, %v4551_v12 }
 0x16f   : > { %6655 = vmatprep.subr.bf16.mxu1 %v7331_v61  ;;  %v4606_v33 = vshll.u32 %v8618_v36, 16  ;;  %v4610_v34 = vshrl.u32 %v8618_v36, 16  ;;  %v4541_v16 = vor.u32 %v4540_v48, %v8614_v63  ;;  %v4568_v8 = vshll.u32 %v8620_v4, 16  ;;  %v7334_v0 = vld [vmem:[#allocation3 + $0x210] sm:$0xff]  }
 0x170   : > { %v4565_v14 = vor.u32 %v4564_v51, %v8616_v57  ;;  %v4579_v54 = vor.u32 %v4578_v9, %v4575_v21  ;;  %v4599_v5 = vrot.slane %v4597_v50, 4  ;;  %v4602_v10 = vrot.slane %v4600_v18, 5  ;;  %v4320_v50 = vld [vmem:[#allocation2 + $0xa8] sm:$0xf]  ;;  %v8659_v21 = vld [vmem:[#allocation2 + $0xa4] sm:$0x1] }
 0x171   : > { %v9234_v23 = vcombine.low %v9232_v29, %v9233_v11  ;;  %v9235_v26 = vrot.slane %v8570_v53, 5  ;;  %v4589_v9 = vor.u32 %v4588_v52, %v8625_v37  ;;  %v4592_v18 = vshll.u32 %v8630_v24, 16 }
 0x172   : > { %6656 = vmatpush3.bf16.msra.mxu1 %v7331_v61  ;;  %6854 = vmatmul.mubr.bf16.vlgmr.msra.gmra.mrb[0].mxu0 %v8459_v44  ;;  %v7335_v61 = vld [vmem:[#allocation3 + $0xf8] sm:$0xff]   ;;  %v8649_v44 = vrot.slane %v4520_v56, 5  ;;  %v9236_v11 = vcombine.low %v8323_v30, %v8347_v62  ;;  %v4518_v29 = vrot.slane %v4517_v39, 4  ;;  %v4612_v53 = vrot.slane %v4610_v34, 4 }
 0x173   : > { %6657 = vmatprep.subr.bf16.mxu1 %v7333_v27  ;;  %6886 = vmatpush3.bf16.msra.mxu0 %v8380_v1  ;;  %v8647_v48 = vsel %vm7780_vm13, %v8568_v35, %v9235_v26  ;;  %v4508_v1 = vrot.slane %v4507_v15, 4  ;;  %v4532_v35 = vrot.slane %v4531_v43, 4  ;;  %v4542_v12 = vrot.slane %v4541_v16, 4 }
 0x174   : > { %6857 = vmatprep.mubr.bf16.mxu0 %v8461_v58  ;;  %6887 = vmatprep.subr.bf16.mxu0 %v7332_v42  ;;  %v4546_v28 = vrot.slane %v4544_v32, 5  ;;  %v4570_v51 = vrot.slane %v4568_v8, 5  ;;  %v4556_v56 = vrot.slane %v4555_v19, 4  ;;  %v4566_v30 = vrot.slane %v4565_v14, 4  ;;  %v8661_v58 = vld [vmem:[#allocation2 + $0xac] sm:$0xf] }
 0x175   : > { %6626 = vmatmul.mubr.bf16.gmra.mrb[12].mxu1 %v9234_v23  ;;  %v8657_v23 = vrot.slane %v4606_v33, 5  ;;  %v4580_v62 = vrot.slane %v4579_v54, 4  ;;  %v4603_v52 = vor.u32 %v4602_v10, %v4599_v5  ;;  %v4590_v15 = vrot.slane %v4589_v9, 4  ;;  %v8671_v54 = vld [vmem:[#allocation2 + $0xb0] sm:$0x1]  ;;  %v8681_v8 = vld [vmem:[#allocation3 + $0x100] sm:$0xff]  }
 0x176   : > { %6629 = vmatprep.mubr.bf16.mxu1 %v9236_v11  ;;  %6658 = vmatpush3.bf16.msra.mxu1 %v7333_v27  ;;  %v4594_v39 = vrot.slane %v4592_v18, 5  ;;  %v4621_v33 = vshrl.u32 %v4320_v50, 16  ;;  %v4624_v34 = vshll.u32 %v4320_v50, 16  ;;  %v4513_v27 = vsel %vm7621_vm7, %v4508_v1, %v8579_v45  ;;  %v7336_v5 = vld [vmem:[#allocation3 + $0x218] sm:$0xff]   ;;  %v5042_v11 = vld [vmem:[#allocation2 + $0x48] sm:$0xe] }
 0x177   : > { %6659 = vmatprep.subr.bf16.mxu1 %v7335_v61  ;;  %6888 = vmatpush3.bf16.msra.mxu0 %v7332_v42  ;;  %v4523_v32 = vsel %vm7621_vm7, %v4518_v29, %v8649_v44  ;;  %v4613_v43 = vor.u32 %v4612_v53, %v8657_v23  ;;  %v4616_v10 = vshll.u32 %v8659_v21, 16  ;;  %v4537_v42 = vsel %vm7621_vm7, %v4532_v35, %v8614_v63  ;;  %v8718_v50 = vld [vmem:[#allocation2 + $0xb4] sm:$0xf] }
 0x178   : > { %6889 = vmatprep.subr.bf16.mxu0 %v7334_v0  ;;  %v4547_v16 = vsel %vm7621_vm7, %v4542_v12, %v4546_v28  ;;  %v4630_v45 = vshll.u32 %v8661_v58, 16  ;;  %v4634_v19 = vshrl.u32 %v8661_v58, 16  ;;  %v4571_v63 = vsel %vm7621_vm7, %v4566_v30, %v4570_v51  ;;  %v5043_v28 = vld [vmem:[#allocation2 + $0x54] sm:$0xe] }
 0x179   : > { %v4585_v14 = vsel %vm7621_vm7, %v4580_v62, %v8625_v37  ;;  %v4604_v26 = vrot.slane %v4603_v52, 4  ;;  %v9237_v44 = vcombine.low %v8357_v6, %v8361_v46  ;;  %v8698_v9 = vrot.slane %v4621_v33, 4  ;;  %v8739_v62 = vld [vmem:[#allocation2 + $0xb8] sm:$0xf] }
 0x17a   : > { %6660 = vmatpush3.bf16.msra.mxu1 %v7335_v61  ;;  %6858 = vmatmul.mubr.bf16.gmra.mrb[4].mxu0 %v8494_v60  ;;  %v4561_v61 = vsel %vm7621_vm7, %v4556_v56, %v8616_v57  ;;  %v4595_v60 = vsel %vm7621_vm7, %v4590_v15, %v4594_v39  ;;  %v8700_v57 = vrot.slane %v4624_v34, 5  ;;  %v4640_v18 = vshll.u32 %v8671_v54, 16 }
 0x17b   : > { %6933 = vmatprep.subr.bf16.mxu1 %v8681_v8  ;;  %6861 = vmatprep.mubr.bf16.mxu0 %v8535_v47  ;;  %v9238_v37 = vcombine.low %v8401_v38, %v8405_v59  ;;  %v5936_v6 = vcombine.low %v8550_v3, %v8560_v40  ;;  %v9239_v46 = vsel %vm7621_vm7, %v8566_v41, %v8562_v2  ;;  %v4614_v29 = vrot.slane %v4613_v43, 4 }
 0x17c   : > { %6890 = vmatpush3.bf16.msra.mxu0 %v7334_v0  ;;  %v9240_v47 = vsel %vm7621_vm7, %v8564_v17, %v8505_v20  ;;  %v4618_v53 = vrot.slane %v4616_v10, 5  ;;  %v5937_v38 = vcombine.low %v8591_v55, %v8647_v48  ;;  %v8722_v59 = vcombine.low %v4513_v27, %v4523_v32  ;;  %v7339_v0 = vld [vmem:[#allocation3 + $0x220] sm:$0xff]   ;;  %v7342_v27 = vld [vmem:[#allocation3 + $0x228] sm:$0xff]  }
 0x17d   : > { %6630 = vmatmul.mubr.bf16.gmra.mrb[16].mxu1 %v9237_v44  ;;  %v6064_v1 = vcombine.low %v9240_v47, %v9239_v46  ;;  %6891 = vmatprep.subr.bf16.mxu0 %v7336_v5  ;;  %v8724_v35 = vrot.slane %v4630_v45, 5  ;;  %v4636_v2 = vrot.slane %v4634_v19, 4  ;;  %v8726_v41 = vcombine.low %v4537_v42, %v4547_v16  ;;  %v9241_v16 = vld [vmem:[#allocation27_spill] sm:$0xff] }
 0x17e   : > { %6633 = vmatprep.mubr.bf16.mxu1 %v9238_v37  ;;  %v8728_v12 = vcombine.low %v4561_v61, %v4571_v63  ;;  %v8730_v20 = vcombine.low %v4585_v14, %v4595_v60  ;;  %v6086_v17 = vrot.slane %v5042_v11, 9  ;;  %v4609_v51 = vsel %vm7621_vm7, %v4604_v26, %v8657_v23  ;;  %v5044_v23 = vld [vmem:[#allocation2 + $0x60] sm:$0xe]  ;;  %v9242_v61 = vld [vmem:[#allocation15_spill] sm:$0xff]  ;;  %v9243_v63 = vld [vmem:[#allocation16_spill] sm:$0xff] }
 0x17f   : > { %v4627_v56 = vor.u32 %v8700_v57, %v8698_v9  ;;  %v8737_v30 = vrot.slane %v4640_v18, 5  ;;  %v4645_v52 = vshrl.u32 %v8718_v50, 16  ;;  %v4619_v15 = vsel %vm7621_vm7, %v4614_v29, %v4618_v53  ;;  %v9245_v60 = vld [vmem:[#allocation18_spill] sm:$0xff]  ;;  %v9246_v9 = vld [vmem:[#allocation20_spill] sm:$0xff]  ;;  %v9248_v37 = vld [vmem:[#allocation17_spill] sm:$0xff] }
 0x180   : > { %6892 = vmatpush3.bf16.msra.mxu0 %v7336_v5  ;;  %v4648_v39 = vshll.u32 %v8718_v50, 16  ;;  %v5132_v33 = vrot.slane %v8371_v49, 5  ;;  %v5135_v34 = vrot.slane %v8437_v31, 5  ;;  %v4637_v32 = vor.u32 %v4636_v2, %v8724_v35  ;;  %v5045_v5 = vld [vmem:[#allocation2 + $0x6c] sm:$0xe] }
 0x181   : > { %6893 = vmatprep.subr.bf16.mxu0 %v7339_v0  ;;  %v6087_v43 = vrot.slane %v5043_v28, 9  ;;  %v5139_v10 = vrot.slane %v8432_v13, 5  ;;  %v5142_v42 = vrot.slane %v8480_v7, 5  ;;  %v4654_v45 = vshll.u32 %v8739_v62, 16  ;;  %v4326_v18 = vld [vmem:[#allocation2 + $0xc0] sm:$0xf] }
 0x182   : > { %6862 = vmatmul.mubr.bf16.gmra.mrb[8].mxu0 %v9241_v16  ;;  %v4658_v19 = vshrl.u32 %v8739_v62, 16  ;;  %v8755_v49 = vsel %vm7780_vm13, %v6086_v17, %v5132_v33  ;;  %v5134_v31 = vrot.slane %v5132_v33, 4  ;;  %v9244_v14 = vcombine.low %v9242_v61, %v9243_v63  ;;  %v9249_v47 = vld [vmem:[#allocation19_spill] sm:$0xff]  ;;  %v9251_v28 = vld [vmem:[#allocation28_spill] sm:$0xff]  ;;  %v8785_v33 = vld [vmem:[#allocation2 + $0xbc] sm:$0x1] }
 0x183   : > { %6865 = vmatprep.mubr.bf16.mxu0 %v6064_v1  ;;  %v8760_v13 = vcombine.low %v4609_v51, %v4619_v15  ;;  %v8764_v7 = vsel %vm7780_vm13, %v6087_v43, %v5139_v10  ;;  %v5141_v26 = vrot.slane %v5139_v10, 4  ;;  %v6088_v44 = vrot.slane %v5044_v23, 9  ;;  %v7345_v53 = vld [vmem:[#allocation3 + $0x230] sm:$0xff]  }
 0x184   : > { %v9247_v57 = vcombine.low %v9245_v60, %v9246_v9  ;;  %6894 = vmatpush3.bf16.msra.mxu0 %v7339_v0  ;;  %v8771_v11 = vsel %vm7780_vm13, %v5134_v31, %v5135_v34  ;;  %v5146_v46 = vrot.slane %v9248_v37, 5  ;;  %v5149_v1 = vrot.slane %v9249_v47, 5  ;;  %v9250_v0 = vld [vmem:[#allocation23_spill] sm:$0xff]  ;;  %v8787_v34 = vld [vmem:[#allocation2 + $0xc4] sm:$0xf]  ;;  %v9252_v37 = vld [vmem:[#allocation21_spill] sm:$0xff] }
 0x185   : > { %6634 = vmatmul.mubr.bf16.gmra.mrb[20].mxu1 %v9244_v14  ;;  %v6089_v29 = vrot.slane %v5045_v5, 9  ;;  %6895 = vmatprep.subr.bf16.mxu0 %v7342_v27  ;;  %v6102_v50 = vcombine.low %v8755_v49, %v8771_v11  ;;  %v8779_v2 = vsel %vm7780_vm13, %v5141_v26, %v5142_v42  ;;  %v5153_v17 = vrot.slane %v9250_v0, 5  ;;  %v5046_v31 = vld [vmem:[#allocation2 + $0x78] sm:$0xe]  ;;  %v7348_v9 = vld [vmem:[#allocation3 + $0x238] sm:$0xff]  }
 0x186   : > { %6637 = vmatprep.mubr.bf16.mxu1 %v9247_v57  ;;  %v5156_v51 = vrot.slane %v9251_v28, 5  ;;  %v8783_v15 = vrot.slane %v4627_v56, 4  ;;  %v6103_v23 = vcombine.low %v8764_v7, %v8779_v2  ;;  %v8793_v43 = vsel %vm7780_vm13, %v6088_v44, %v5146_v46  ;;  %v2672_v44 = vld [vmem:[#allocation2 + $0x78] sm:$0xf]  ;;  %v7417_v11 = vld [vmem:[#allocation2 + $0x74] sm:$0x1] }
 0x187   : > { %v5148_v10 = vrot.slane %v5146_v46, 4  ;;  %v8795_v42 = vrot.slane %v4645_v52, 4  ;;  %v4669_v5 = vshrl.u32 %v4326_v18, 16  ;;  %v8799_v16 = vsel %vm7780_vm13, %v6089_v29, %v5153_v17  ;;  %v9253_v46 = vld [vmem:[#allocation22_spill] sm:$0xff]  ;;  %v9255_v29 = vld [vmem:[#allocation24_spill] sm:$0xff] }
 0x188   : > { %v5155_v56 = vrot.slane %v5153_v17, 4  ;;  %6896 = vmatpush3.bf16.msra.mxu0 %v7342_v27  ;;  %v8801_v61 = vrot.slane %v4637_v32, 4  ;;  %v8803_v63 = vrot.slane %v4648_v39, 5  ;;  %v4672_v14 = vshll.u32 %v4326_v18, 16  ;;  %v5047_v18 = vld [vmem:[#allocation2 + $0x84] sm:$0xe] }
 0x189   : > { %v8807_v26 = vsel %vm7780_vm13, %v5148_v10, %v5149_v1  ;;  %v8809_v52 = vrot.slane %v4654_v45, 5  ;;  %v8811_v60 = vrot.slane %v4658_v19, 4  ;;  %6897 = vmatprep.subr.bf16.mxu0 %v7345_v53  ;;  %v4664_v39 = vshll.u32 %v8785_v33, 16  ;;  %v9256_v17 = vld [vmem:[#allocation29_spill] sm:$0xff] }
 0x18a   : > { %v6104_v57 = vcombine.low %v8793_v43, %v8807_v26  ;;  %v8817_v27 = vsel %vm7780_vm13, %v5155_v56, %v5156_v51  ;;  %6866 = vmatmul.mubr.bf16.gmra.mrb[12].mxu0 %v8722_v59  ;;  %v4678_v32 = vshll.u32 %v8787_v34, 16  ;;  %v6090_v19 = vrot.slane %v5046_v31, 9  ;;  %v9257_v31 = vld [vmem:[#allocation11_spill] sm:$0xff] }
 0x18b   : > { %v6105_v45 = vcombine.low %v8799_v16, %v8817_v27  ;;  %v9254_v47 = vcombine.low %v9252_v37, %v9253_v46  ;;  %6869 = vmatprep.mubr.bf16.mxu0 %v8726_v41  ;;  %v4671_v1 = vrot.slane %v4669_v5, 4  ;;  %v5160_v0 = vrot.slane %v9255_v29, 5  ;;  %v9258_v37 = vld [vmem:[#allocation10_spill] sm:$0xff]  ;;  %v7421_v27 = vld [vmem:[#allocation2 + $0x8c] sm:$0x1] }
 0x18c   : > { %v5163_v59 = vrot.slane %v9256_v17, 5  ;;  %v2910_v28 = vshrl.u32 %v2672_v44, 16  ;;  %6898 = vmatpush3.bf16.msra.mxu0 %v7345_v53  ;;  %v4674_v51 = vrot.slane %v4672_v14, 5  ;;  %v4682_v10 = vshrl.u32 %v8787_v34, 16  ;;  %v9259_v53 = vld [vmem:[#allocation25_spill] sm:$0xff] }
 0x18d   : > { %6638 = vmatmul.mubr.bf16.gmra.mrb[24].mxu1 %v9254_v47  ;;  %v2913_v56 = vshll.u32 %v2672_v44, 16  ;;  %v2932_v41 = vsel %vm7621_vm7, %v9258_v37, %v9257_v31  ;;  %6899 = vmatprep.subr.bf16.mxu0 %v7348_v9  ;;  %v8840_v5 = vsel %vm7780_vm13, %v6090_v19, %v5160_v0  ;;  %v5162_v46 = vrot.slane %v5160_v0, 4  ;;  %v8855_v0 = vld [vmem:[#allocation2 + $0xd0] sm:$0xf] }
 0x18e   : > { %6641 = vmatprep.mubr.bf16.mxu1 %v5936_v6  ;;  %v2912_v47 = vrot.slane %v2910_v28, 4  ;;  %v6091_v29 = vrot.slane %v5047_v18, 9  ;;  %v4633_v3 = vsel %vm7621_vm7, %v8783_v15, %v8724_v35  ;;  %v4651_v40 = vor.u32 %v8803_v63, %v8795_v42  ;;  %v4329_v18 = vld [vmem:[#allocation2 + $0xcc] sm:$0xf]  ;;  %v5048_v28 = vld [vmem:[#allocation2 + $0x90] sm:$0xe] }
 0x18f   : > { %v2915_v6 = vrot.slane %v2913_v56, 5  ;;  %v5167_v14 = vrot.slane %v9259_v53, 5  ;;  %v4643_v44 = vsel %vm7621_vm7, %v8801_v61, %v8737_v30  ;;  %v4661_v19 = vor.u32 %v8811_v60, %v8809_v52  ;;  %v7337_v42 = vld [vmem:[#allocation2 + $0xc] sm:$0xff]   ;;  %v8868_v56 = vld [vmem:[#allocation2 + $0xc8] sm:$0x1] }
 0x190   : > { %v8859_v35 = vsel %vm7780_vm13, %v5162_v46, %v5163_v59  ;;  %v5170_v15 = vrot.slane %v8620_v4, 5  ;;  %v8862_v63 = vrot.slane %v4678_v32, 5  ;;  %v4684_v17 = vrot.slane %v4682_v10, 4  ;;  %6900 = vmatpush3.bf16.msra.mxu0 %v7348_v9  ;;  %v9260_v46 = vld [vmem:[#allocation26_spill] sm:$0xff] }
 0x191   : > { %v6106_v30 = vcombine.low %v8840_v5, %v8859_v35  ;;  %v2916_v61 = vor.u32 %v2915_v6, %v2912_v47  ;;  %v8866_v60 = vrot.slane %v4664_v39, 5  ;;  %v4675_v31 = vor.u32 %v4674_v51, %v4671_v1  ;;  %v9261_v6 = vld [vmem:[#allocation9_spill] sm:$0xff] }
 0x192   : > { %v8872_v59 = vsel %vm7780_vm13, %v6091_v29, %v5167_v14  ;;  %v5169_v4 = vrot.slane %v5167_v14, 4  ;;  %6870 = vmatmul.mubr.bf16.gmra.mrb[16].mxu0 %v8728_v12  ;;  %v4693_v32 = vshrl.u32 %v4329_v18, 16  ;;  %v4696_v10 = vshll.u32 %v4329_v18, 16  ;;  %v7338_v18 = vld [vmem:[#allocation2 + $0x18] sm:$0xff]  }
 0x193   : > { %v4702_v9 = vshll.u32 %v8855_v0, 16  ;;  %v2917_v37 = vrot.slane %v2916_v61, 4  ;;  %6873 = vmatprep.mubr.bf16.mxu0 %v8730_v20  ;;  %v4706_v39 = vshrl.u32 %v8855_v0, 16  ;;  %v6092_v51 = vrot.slane %v5048_v28, 9  ;;  %v8895_v61 = vld [vmem:[#allocation2 + $0xd4] sm:$0x1] }
 0x194   : > { %v8883_v1 = vsel %vm7780_vm13, %v5169_v4, %v5170_v15  ;;  %v5174_v12 = vrot.slane %v9260_v46, 5  ;;  %v4685_v47 = vor.u32 %v4684_v17, %v8862_v63  ;;  %v4688_v29 = vshll.u32 %v8868_v56, 16 }
 0x195   : > { %6642 = vmatmul.mubr.bf16.gmra.mrb[28].mxu1 %v5937_v38  ;;  %v2922_v55 = vsel %vm7621_vm7, %v2917_v37, %v9261_v6  ;;  %v6107_v48 = vcombine.low %v8872_v59, %v8883_v1  ;;  %v6070_v38 = vcombine.low %v4633_v3, %v4643_v44  ;;  %v4652_v20 = vrot.slane %v4651_v40, 4  ;;  %v5049_v40 = vld [vmem:[#allocation2 + $0x9c] sm:$0xe]  ;;  %v7340_v44 = vld [vmem:[#allocation2 + $0x24] sm:$0xff]  }
 0x196   : > { %6661 = vmatprep.mubr.bf16.mxu1 %v7337_v42  ;;  %v4662_v53 = vrot.slane %v4661_v19, 4  ;;  %v8893_v14 = vcombine.low %v2922_v55, %v2932_v41  ;;  %v4676_v15 = vrot.slane %v4675_v31, 4  ;;  %v8899_v42 = vsel %vm7780_vm13, %v6092_v51, %v5174_v12 }
 0x197   : > { %v5176_v17 = vrot.slane %v5174_v12, 4  ;;  %v5177_v28 = vrot.slane %v8630_v24, 5  ;;  %v4695_v4 = vrot.slane %v4693_v32, 4  ;;  %v4698_v37 = vrot.slane %v4696_v10, 5 }
 0x198   : > { %v8902_v46 = vrot.slane %v4702_v9, 5  ;;  %v4708_v3 = vrot.slane %v4706_v39, 4  ;;  %v4686_v41 = vrot.slane %v4685_v47, 4  ;;  %v4690_v19 = vrot.slane %v4688_v29, 5  ;;  %v7401_v29 = vld [vmem:[#allocation2 + $0x1c] sm:$0xf] }
 0x199   : > { %v8906_v31 = vsel %vm7780_vm13, %v5176_v17, %v5177_v28  ;;  %v4657_v51 = vsel %vm7621_vm7, %v4652_v20, %v8809_v52  ;;  %v4667_v32 = vsel %vm7621_vm7, %v4662_v53, %v8866_v60  ;;  %v4712_v10 = vshll.u32 %v8895_v61, 16 }
 0x19a   : > { %v6108_v24 = vcombine.low %v8899_v42, %v8906_v31  ;;  %6874 = vmatmul.mubr.bf16.gmra.mrb[20].mxu0 %v8760_v13  ;;  %v6093_v9 = vrot.slane %v5049_v40, 9  ;;  %v5181_v39 = vrot.slane %v8618_v36, 5  ;;  %v4681_v52 = vsel %vm7621_vm7, %v4676_v15, %v8862_v63  ;;  %v5038_v63 = vld [vmem:[#allocation2 + $0x18] sm:$0xe] }
 0x19b   : > { %6877 = vmatprep.mubr.bf16.mxu0 %v6070_v38  ;;  %v4699_v12 = vor.u32 %v4698_v37, %v4695_v4  ;;  %v4709_v47 = vor.u32 %v4708_v3, %v8902_v46  ;;  %v5184_v13 = vrot.slane %v8659_v21, 5  ;;  %v4691_v60 = vsel %vm7621_vm7, %v4686_v41, %v4690_v19  ;;  %v7402_v38 = vld [vmem:[#allocation3 + $0x108] sm:$0xff]   ;;  %v7404_v19 = vld [vmem:[#allocation3 + $0x110] sm:$0xff]   ;;  %v7425_v42 = vld [vmem:[#allocation2 + $0xb8] sm:$0xf] }
 0x19c   : > { %v5104_v6 = vrot.slane %v7401_v29, 5  ;;  %v8929_v36 = vsel %vm7780_vm13, %v6093_v9, %v5181_v39  ;;  %v5183_v55 = vrot.slane %v5181_v39, 4  ;;  %v6071_v20 = vcombine.low %v4657_v51, %v4667_v32  ;;  %v7343_v37 = vld [vmem:[#allocation2 + $0x3c] sm:$0xff]   ;;  %v5039_v9 = vld [vmem:[#allocation2 + $0x24] sm:$0xe] }
 0x19d   : > { %6662 = vmatmul.mubr.bf16.vlgmr.msra.gmra.mrb[0].mxu1 %v7338_v18  ;;  %v4714_v53 = vrot.slane %v4712_v10, 5  ;;  %v7341_v18 = vld [vmem:[#allocation2 + $0x30] sm:$0xff]   ;;  %v6072_v15 = vcombine.low %v4681_v52, %v4691_v60  ;;  %v4700_v17 = vrot.slane %v4699_v12, 4  ;;  %v4710_v28 = vrot.slane %v4709_v47, 4  ;;  %v7405_v39 = vld [vmem:[#allocation2 + $0x28] sm:$0xf] }
 0x19e   : > { %6941 = vmatpush3.bf16.msra.mxu1 %v8681_v8  ;;  %6665 = vmatprep.mubr.bf16.mxu1 %v7340_v44  ;;  %v8933_v21 = vsel %vm7780_vm13, %v5183_v55, %v5184_v13  ;;  %v5050_v8 = vld [vmem:[#allocation2 + $0xa8] sm:$0xe]  ;;  %v6082_v3 = vrot.slane %v5038_v63, 9  ;;  %v5106_v40 = vrot.slane %v5104_v6, 4  ;;  %v7403_v44 = vld [vmem:[#allocation2 + $0x20] sm:$0x1] }
 0x19f   : > { %6934 = vmatprep.subr.bf16.mxu1 %v7402_v38  ;;  %v6109_v4 = vcombine.low %v8929_v36, %v8933_v21  ;;  %v5107_v41 = vrot.slane %v7403_v44, 5  ;;  %v6094_v51 = vrot.slane %v5050_v8, 9  ;;  %v5188_v32 = vrot.slane %v8661_v58, 5  ;;  %v5051_v12 = vld [vmem:[#allocation2 + $0xb4] sm:$0xe] }
 0x1a0   : > { %v5191_v10 = vrot.slane %v8671_v54, 5  ;;  %v5111_v52 = vrot.slane %v7405_v39, 5  ;;  %v4705_v47 = vsel %vm7621_vm7, %v4700_v17, %v8902_v46  ;;  %v4715_v13 = vsel %vm7621_vm7, %v4710_v28, %v4714_v53  ;;  %v5040_v55 = vld [vmem:[#allocation2 + $0x30] sm:$0xe] }
 0x1a1   : > { %v8946_v60 = vsel %vm7780_vm13, %v6094_v51, %v5188_v32  ;;  %v5190_v58 = vrot.slane %v5188_v32, 4  ;;  %v5105_v54 = vsel %vm7780_vm13, %v6082_v3, %v5104_v6  ;;  %v5108_v29 = vsel %vm7780_vm13, %v5106_v40, %v5107_v41  ;;  %v7407_v46 = vld [vmem:[#allocation3 + $0x118] sm:$0xff]   ;;  %v7409_v32 = vld [vmem:[#allocation2 + $0x38] sm:$0x1] }
 0x1a2   : > { %6942 = vmatpush3.bf16.msra.mxu1 %v7402_v38  ;;  %6878 = vmatmul.mubr.bf16.gmra.mrb[24].mxu0 %v6071_v20  ;;  %v7406_v38 = vld [vmem:[#allocation2 + $0x34] sm:$0xf]  ;;  %v6083_v20 = vrot.slane %v5039_v9, 9  ;;  %v6095_v8 = vrot.slane %v5051_v12, 9  ;;  %v5195_v28 = vrot.slane %v8739_v62, 5  ;;  %v6098_v3 = vcombine.low %v5105_v54, %v5108_v29  ;;  %v7410_v12 = vld [vmem:[#allocation3 + $0x120] sm:$0xff]  }
 0x1a3   : > { %6935 = vmatprep.subr.bf16.mxu1 %v7404_v19  ;;  %6881 = vmatprep.mubr.bf16.mxu0 %v6072_v15  ;;  %v5118_v63 = vrot.slane %v7406_v38, 5  ;;  %v8954_v53 = vsel %vm7780_vm13, %v5190_v58, %v5191_v10  ;;  %v7408_v15 = vld [vmem:[#allocation2 + $0x2c] sm:$0x1]  ;;  %v5113_v40 = vrot.slane %v5111_v52, 4  ;;  %v6084_v44 = vrot.slane %v5040_v55, 9 }
 0x1a4   : > { %v5114_v17 = vrot.slane %v7408_v15, 5  ;;  %v6110_v6 = vcombine.low %v8946_v60, %v8954_v53  ;;  %v5198_v41 = vrot.slane %v8785_v33, 5  ;;  %v5121_v10 = vrot.slane %v7409_v32, 5  ;;  %v5041_v58 = vld [vmem:[#allocation2 + $0x3c] sm:$0xe]  ;;  %v7414_v32 = vld [vmem:[#allocation3 + $0x130] sm:$0xff]  }
 0x1a5   : > { %6666 = vmatmul.mubr.bf16.gmra.mrb[4].mxu1 %v7341_v18  ;;  %v6073_v18 = vcombine.low %v4705_v47, %v4715_v13  ;;  %v5120_v51 = vrot.slane %v5118_v63, 4  ;;  %v8962_v9 = vsel %vm7780_vm13, %v6095_v8, %v5195_v28  ;;  %v5197_v39 = vrot.slane %v5195_v28, 4  ;;  %v5052_v47 = vld [vmem:[#allocation2 + $0xc0] sm:$0xe]  ;;  %v7413_v28 = vld [vmem:[#allocation2 + $0x44] sm:$0x1] }
 0x1a6   : > { %6669 = vmatprep.mubr.bf16.mxu1 %v7343_v37  ;;  %6943 = vmatpush3.bf16.msra.mxu1 %v7404_v19  ;;  %v7344_v37 = vld [vmem:[#allocation2 + $0x48] sm:$0xff]   ;;  %v7346_v19 = vld [vmem:[#allocation2 + $0x54] sm:$0xff]   ;;  %v5112_v33 = vsel %vm7780_vm13, %v6083_v20, %v5111_v52  ;;  %v5115_v13 = vsel %vm7780_vm13, %v5113_v40, %v5114_v17  ;;  %v7411_v54 = vld [vmem:[#allocation2 + $0x40] sm:$0xf]  ;;  %v5119_v38 = vsel %vm7780_vm13, %v6084_v44, %v5118_v63  ;;  %v6096_v8 = vrot.slane %v5052_v47, 9 }
 0x1a7   : > { %6936 = vmatprep.subr.bf16.mxu1 %v7407_v46  ;;  %v8966_v62 = vsel %vm7780_vm13, %v5197_v39, %v5198_v41  ;;  %v5125_v29 = vrot.slane %v7411_v54, 5  ;;  %v5202_v52 = vrot.slane %v8787_v34, 5  ;;  %v5205_v20 = vrot.slane %v8868_v56, 5  ;;  %v7347_v40 = vld [vmem:[#allocation2 + $0x60] sm:$0xff]  }
 0x1a8   : > { %v6111_v55 = vcombine.low %v8962_v9, %v8966_v62  ;;  %v6099_v15 = vcombine.low %v5112_v33, %v5115_v13  ;;  %v6085_v17 = vrot.slane %v5041_v58, 9  ;;  %v5209_v47 = vrot.slane %v8855_v0, 5  ;;  %v7415_v13 = vld [vmem:[#allocation3 + $0x138] sm:$0xff]  }
 0x1a9   : > { %v8982_v63 = vsel %vm7780_vm13, %v6096_v8, %v5202_v52  ;;  %v5204_v44 = vrot.slane %v5202_v52, 4  ;;  %v5212_v33 = vrot.slane %v8895_v61, 5  ;;  %v7350_v8 = vld [vmem:[#allocation2 + $0x78] sm:$0xff]   ;;  %v3039_v31 = vshll.u32 %v7425_v42, 16 }
 0x1aa   : > { %6944 = vmatpush3.bf16.msra.mxu1 %v7407_v46  ;;  %6882 = vmatmul.mubr.bf16.gmra.mrb[28].mxu0 %v6073_v18  ;;  %v5122_v46 = vsel %vm7780_vm13, %v5120_v51, %v5121_v10  ;;  %v7412_v18 = vld [vmem:[#allocation3 + $0x128] sm:$0xff]   ;;  %v7349_v51 = vld [vmem:[#allocation2 + $0x6c] sm:$0xff]   ;;  %v5126_v39 = vsel %vm7780_vm13, %v6085_v17, %v5125_v29  ;;  %v5211_v54 = vrot.slane %v5209_v47, 4 }
 0x1ab   : > { %6937 = vmatprep.subr.bf16.mxu1 %v7410_v12  ;;  %6901 = vmatprep.mubr.bf16.mxu0 %v6098_v3  ;;  %v5053_v3 = vld [vmem:[#allocation2 + $0xcc] sm:$0xe]  ;;  %v6100_v41 = vcombine.low %v5119_v38, %v5122_v46  ;;  %v8986_v34 = vsel %vm7780_vm13, %v5204_v44, %v5205_v20  ;;  %v7416_v20 = vld [vmem:[#allocation2 + $0x70] sm:$0xf] }
 0x1ac   : > { %v6097_v56 = vrot.slane %v5053_v3, 9  ;;  %v6112_v10 = vcombine.low %v8982_v63, %v8986_v34  ;;  %v2669_v46 = vld [vmem:[#allocation2 + $0x6c] sm:$0xf]  ;;  %v2899_v17 = vshrl.u32 %v7416_v20, 16 }
 0x1ad   : > { %6670 = vmatmul.mubr.bf16.gmra.mrb[8].mxu1 %v7344_v37  ;;  %v5128_v37 = vrot.slane %v7413_v28, 5  ;;  %v2886_v61 = vshrl.u32 %v2669_v46, 16  ;;  %v2889_v52 = vshll.u32 %v2669_v46, 16  ;;  %v7355_v46 = vld [vmem:[#allocation2 + $0xb4] sm:$0xff]  }
 0x1ae   : > { %6673 = vmatprep.mubr.bf16.mxu1 %v7346_v19  ;;  %6945 = vmatpush3.bf16.msra.mxu1 %v7410_v12  ;;  %v5127_v19 = vrot.slane %v5125_v29, 4  ;;  %v8998_v58 = vsel %vm7780_vm13, %v6097_v56, %v5209_v47  ;;  %v9002_v29 = vsel %vm7780_vm13, %v5211_v54, %v5212_v33  ;;  %v7418_v56 = vld [vmem:[#allocation2 + $0x88] sm:$0xf]  ;;  %v2678_v33 = vld [vmem:[#allocation2 + $0x90] sm:$0xf] }
 0x1af   : > { %6938 = vmatprep.subr.bf16.mxu1 %v7412_v18  ;;  %v6113_v0 = vcombine.low %v8998_v58, %v9002_v29  ;;  %v2888_v22 = vrot.slane %v2886_v61, 4  ;;  %v2891_v28 = vrot.slane %v2889_v52, 5  ;;  %v7419_v61 = vld [vmem:[#allocation2 + $0x94] sm:$0xf] }
 0x1b0   : > { %v5129_v12 = vsel %vm7780_vm13, %v5127_v19, %v5128_v37  ;;  %v7352_v37 = vld [vmem:[#allocation2 + $0x90] sm:$0xff]   ;;  %v2675_v19 = vld [vmem:[#allocation2 + $0x84] sm:$0xf]  ;;  %v2967_v52 = vshll.u32 %v7419_v61, 16 }
 0x1b1   : > { %v6101_v38 = vcombine.low %v5126_v39, %v5129_v12  ;;  %v2892_v44 = vor.u32 %v2891_v28, %v2888_v22  ;;  %v2943_v39 = vshll.u32 %v7418_v56, 16  ;;  %v2947_v12 = vshrl.u32 %v7418_v56, 16  ;;  %v2684_v56 = vld [vmem:[#allocation2 + $0xa8] sm:$0xf] }
 0x1b2   : > { %6946 = vmatpush3.bf16.msra.mxu1 %v7412_v18  ;;  %6902 = vmatmul.mubr.bf16.vlgmr.msra.gmra.mrb[0].mxu0 %v6099_v15  ;;  %v7351_v18 = vld [vmem:[#allocation2 + $0x84] sm:$0xff]   ;;  %v2895_v15 = vshll.u32 %v7416_v20, 16  ;;  %v2971_v20 = vshrl.u32 %v7419_v61, 16 }
 0x1b3   : > { %6939 = vmatprep.subr.bf16.mxu1 %v7414_v32  ;;  %6905 = vmatprep.mubr.bf16.mxu0 %v6100_v41  ;;  %v7353_v41 = vld [vmem:[#allocation2 + $0x9c] sm:$0xff]   ;;  %v2893_v47 = vrot.slane %v2892_v44, 4  ;;  %v9015_v43 = vrot.slane %v2943_v39, 5  ;;  %v2949_v26 = vrot.slane %v2947_v12, 4  ;;  %v9028_v44 = vrot.slane %v2967_v52, 5 }
 0x1b4   : > { %v2897_v3 = vrot.slane %v2895_v15, 5 }
 0x1b5   : > { %6674 = vmatmul.mubr.bf16.gmra.mrb[12].mxu1 %v7347_v40  ;;  %v2901_v40 = vrot.slane %v2899_v17, 4  ;;  %v2950_v16 = vor.u32 %v2949_v26, %v9015_v43 }
 0x1b6   : > { %6677 = vmatprep.mubr.bf16.mxu1 %v7349_v51  ;;  %6947 = vmatpush3.bf16.msra.mxu1 %v7414_v32  ;;  %v2934_v51 = vshrl.u32 %v2675_v19, 16  ;;  %v2937_v32 = vshll.u32 %v2675_v19, 16 }
 0x1b7   : > { %6940 = vmatprep.subr.bf16.mxu1 %v7415_v13  ;;  %v2902_v49 = vor.u32 %v2901_v40, %v2897_v3  ;;  %v2951_v39 = vrot.slane %v2950_v16, 4 }
 0x1b8   : > { %v2936_v2 = vrot.slane %v2934_v51, 4  ;;  %v7356_v51 = vld [vmem:[#allocation2 + $0xc0] sm:$0xff]  }
 0x1b9   : > { %v2903_v54 = vrot.slane %v2902_v49, 4  ;;  %v2973_v49 = vrot.slane %v2971_v20, 4 }
 0x1ba   : > { %6948 = vmatpush3.bf16.msra.mxu1 %v7415_v13  ;;  %6906 = vmatmul.mubr.bf16.gmra.mrb[4].mxu0 %v6101_v38  ;;  %v7354_v13 = vld [vmem:[#allocation2 + $0xa8] sm:$0xff]   ;;  %v2681_v38 = vld [vmem:[#allocation2 + $0x9c] sm:$0xf] }
 0x1bb   : > { %6909 = vmatprep.mubr.bf16.mxu0 %v6102_v50  ;;  %v2905_v50 = vshll.u32 %v7417_v11, 16  ;;  %v2982_v15 = vshrl.u32 %v2681_v38, 16  ;;  %v2985_v17 = vshll.u32 %v2681_v38, 16  ;;  %v3006_v38 = vshrl.u32 %v2684_v56, 16 }
 0x1bd   : > { %6678 = vmatmul.mubr.bf16.gmra.mrb[16].mxu1 %v7350_v8  ;;  %v2907_v7 = vrot.slane %v2905_v50, 5  ;;  %v2961_v8 = vshll.u32 %v2678_v33, 16  ;;  %v2984_v11 = vrot.slane %v2982_v15, 4  ;;  %v2987_v50 = vrot.slane %v2985_v17, 5 }
 0x1be   : > { %6681 = vmatprep.mubr.bf16.mxu1 %v7351_v18  ;;  %v2898_v18 = vsel %vm7621_vm7, %v2893_v47, %v2897_v3 }
 0x1bf   : > { %v2908_v22 = vsel %vm7621_vm7, %v2903_v54, %v2907_v7  ;;  %v2963_v19 = vrot.slane %v2961_v8, 5  ;;  %v2974_v54 = vor.u32 %v2973_v49, %v9028_v44  ;;  %v2988_v7 = vor.u32 %v2987_v50, %v2984_v11  ;;  %v7424_v8 = vld [vmem:[#allocation2 + $0xac] sm:$0xf]  ;;  %v2690_v11 = vld [vmem:[#allocation2 + $0xc0] sm:$0xf] }
 0x1c0   : > { %v3019_v61 = vshrl.u32 %v7424_v8, 16  ;;  %v3054_v36 = vshrl.u32 %v2690_v11, 16  ;;  %v3057_v21 = vshll.u32 %v2690_v11, 16 }
 0x1c1   : > { %v2975_v17 = vrot.slane %v2974_v54, 4 }
 0x1c2   : > { %6910 = vmatmul.mubr.bf16.gmra.mrb[8].mxu0 %v6103_v23  ;;  %v2939_v23 = vrot.slane %v2937_v32, 5  ;;  %v5978_v32 = vcombine.low %v2898_v18, %v2908_v22  ;;  %v3015_v18 = vshll.u32 %v7424_v8, 16  ;;  %v2989_v22 = vrot.slane %v2988_v7, 4 }
 0x1c3   : > { %6913 = vmatprep.mubr.bf16.mxu0 %v6104_v57  ;;  %v2958_v57 = vshrl.u32 %v2678_v33, 16  ;;  %v7422_v33 = vld [vmem:[#allocation2 + $0x98] sm:$0x1]  ;;  %v3056_v53 = vrot.slane %v3054_v36, 4 }
 0x1c4   : > { %v2940_v28 = vor.u32 %v2939_v23, %v2936_v2  ;;  %v7423_v2 = vld [vmem:[#allocation2 + $0xa4] sm:$0x1]  ;;  %v3017_v16 = vrot.slane %v3015_v18, 5 }
 0x1c5   : > { %6682 = vmatmul.mubr.bf16.gmra.mrb[20].mxu1 %v7352_v37  ;;  %v7420_v37 = vld [vmem:[#allocation2 + $0xa0] sm:$0xf]  ;;  %v3001_v23 = vshll.u32 %v7423_v2, 16 }
 0x1c6   : > { %6685 = vmatprep.mubr.bf16.mxu1 %v7353_v41  ;;  %v2991_v3 = vshll.u32 %v7420_v37, 16  ;;  %v2995_v40 = vshrl.u32 %v7420_v37, 16  ;;  %v2960_v41 = vrot.slane %v2958_v57, 4  ;;  %v2941_v5 = vrot.slane %v2940_v28, 4 }
 0x1c7   : > { %v3009_v57 = vshll.u32 %v2684_v56, 16  ;;  %v3003_v28 = vrot.slane %v3001_v23, 5  ;;  %v3008_v37 = vrot.slane %v3006_v38, 4  ;;  %v7426_v56 = vld [vmem:[#allocation2 + $0xb0] sm:$0x1] }
 0x1c8   : > { %v9030_v35 = vrot.slane %v2991_v3, 5  ;;  %v2964_v47 = vor.u32 %v2963_v19, %v2960_v41  ;;  %v2946_v59 = vsel %vm7621_vm7, %v2941_v5, %v9015_v43  ;;  %v3041_v19 = vrot.slane %v3039_v31, 5 }
 0x1ca   : > { %6914 = vmatmul.mubr.bf16.gmra.mrb[12].mxu0 %v6105_v45  ;;  %v2953_v45 = vshll.u32 %v7421_v27, 16  ;;  %v3021_v27 = vrot.slane %v3019_v61, 4 }
 0x1cb   : > { %6917 = vmatprep.mubr.bf16.mxu0 %v6106_v30  ;;  %v2997_v30 = vrot.slane %v2995_v40, 4  ;;  %v3011_v40 = vrot.slane %v3009_v57, 5 }
 0x1cc   : > { %v2955_v12 = vrot.slane %v2953_v45, 5 }
 0x1cd   : > { %6686 = vmatmul.mubr.bf16.gmra.mrb[24].mxu1 %v7354_v13  ;;  %v2977_v13 = vshll.u32 %v7422_v33, 16  ;;  %v2998_v26 = vor.u32 %v2997_v30, %v9030_v35  ;;  %v3022_v30 = vor.u32 %v3021_v27, %v3017_v16 }
 0x1ce   : > { %6689 = vmatprep.mubr.bf16.mxu1 %v7355_v46  ;;  %v2687_v46 = vld [vmem:[#allocation2 + $0xb4] sm:$0xf]  ;;  %v2956_v1 = vsel %vm7621_vm7, %v2951_v39, %v2955_v12  ;;  %v3025_v39 = vshll.u32 %v7426_v56, 16 }
 0x1cf   : > { %v2979_v52 = vrot.slane %v2977_v13, 5  ;;  %v3030_v20 = vshrl.u32 %v2687_v46, 16  ;;  %v3033_v15 = vshll.u32 %v2687_v46, 16  ;;  %v2999_v3 = vrot.slane %v2998_v26, 4 }
 0x1d0   : > { %v5980_v45 = vcombine.low %v2946_v59, %v2956_v1  ;;  %v3023_v23 = vrot.slane %v3022_v30, 4  ;;  %v3027_v60 = vrot.slane %v3025_v39, 5 }
 0x1d1   : > { %v3032_v43 = vrot.slane %v3030_v20, 4  ;;  %v3035_v41 = vrot.slane %v3033_v15, 5  ;;  %v3004_v5 = vsel %vm7621_vm7, %v2999_v3, %v3003_v28 }
 0x1d2   : > { %6918 = vmatmul.mubr.bf16.gmra.mrb[16].mxu0 %v6107_v48  ;;  %v2965_v48 = vrot.slane %v2964_v47, 4  ;;  %v3028_v61 = vsel %vm7621_vm7, %v3023_v23, %v3027_v60 }
 0x1d3   : > { %6921 = vmatprep.mubr.bf16.mxu0 %v6108_v24  ;;  %v3043_v24 = vshrl.u32 %v7425_v42, 16 }
 0x1d4   : > { %v2970_v50 = vsel %vm7621_vm7, %v2965_v48, %v9028_v44  ;;  %v3012_v44 = vor.u32 %v3011_v40, %v3008_v37  ;;  %v7429_v48 = vld [vmem:[#allocation2 + $0xc8] sm:$0x1] }
 0x1d5   : > { %6690 = vmatmul.mubr.bf16.gmra.mrb[28].mxu1 %v7356_v51  ;;  %v3045_v49 = vrot.slane %v3043_v24, 4  ;;  %v2980_v51 = vsel %vm7621_vm7, %v2975_v17, %v2979_v52  ;;  %v3073_v52 = vshll.u32 %v7429_v48, 16 }
 0x1d6   : > { %6725 = vmatprep.mubr.bf16.mxu1 %v5978_v32  ;;  %v2994_v32 = vsel %vm7621_vm7, %v2989_v22, %v9030_v35  ;;  %v3036_v35 = vor.u32 %v3035_v41, %v3032_v43  ;;  %v5981_v54 = vcombine.low %v2970_v50, %v2980_v51  ;;  %v3013_v2 = vrot.slane %v3012_v44, 4  ;;  %v9084_v43 = vld [vmem:[#allocation5] ss:$0 sm:$0xff] }
 0x1d7   : > { %v3046_v33 = vor.u32 %v3045_v49, %v3041_v19  ;;  %v5982_v7 = vcombine.low %v2994_v32, %v3004_v5  ;;  %v3075_v63 = vrot.slane %v3073_v52, 5 }
 0x1d8   : > { %v3037_v26 = vrot.slane %v3036_v35, 4  ;;  %v3018_v18 = vsel %vm7621_vm7, %v3013_v2, %v3017_v16 }
 0x1d9   : > { %v3047_v57 = vrot.slane %v3046_v33, 4 }
 0x1da   : > { %6922 = vmatmul.mubr.bf16.gmra.mrb[20].mxu0 %v6109_v4  ;;  %v7427_v4 = vld [vmem:[#allocation2 + $0xc4] sm:$0xf]  ;;  %v3042_v9 = vsel %vm7621_vm7, %v3037_v26, %v3041_v19 }
 0x1db   : > { %6925 = vmatprep.mubr.bf16.mxu0 %v6110_v6  ;;  %v3063_v12 = vshll.u32 %v7427_v4, 16  ;;  %v3067_v47 = vshrl.u32 %v7427_v4, 16  ;;  %v3059_v6 = vrot.slane %v3057_v21, 5 }
 0x1dd   : > { %6726 = vmatmul.mubr.bf16.vlgmr.msra.gmra.mrb[16].mxu1 %v8893_v14  ;;  %v7428_v14 = vld [vmem:[#allocation2 + $0xbc] sm:$0x1]  ;;  %v3065_v38 = vrot.slane %v3063_v12, 5  ;;  %v3069_v46 = vrot.slane %v3067_v47, 4  ;;  %v3060_v59 = vor.u32 %v3059_v6, %v3056_v53 }
 0x1de   : > { %6729 = vmatprep.mubr.bf16.mxu1 %v5980_v45  ;;  %v3049_v13 = vshll.u32 %v7428_v14, 16 }
 0x1df   : > { %v3070_v1 = vor.u32 %v3069_v46, %v3065_v38  ;;  %v3061_v15 = vrot.slane %v3060_v59, 4 }
 0x1e0   : > { %v3051_v8 = vrot.slane %v3049_v13, 5 }
 0x1e1   : > { %v3071_v42 = vrot.slane %v3070_v1, 4  ;;  %v3066_v34 = vsel %vm7621_vm7, %v3061_v15, %v3065_v38 }
 0x1e2   : > { %6926 = vmatmul.mubr.bf16.gmra.mrb[24].mxu0 %v6111_v55  ;;  %v3052_v62 = vsel %vm7621_vm7, %v3047_v57, %v3051_v8  ;;  %v5983_v55 = vcombine.low %v3018_v18, %v3028_v61 }
 0x1e3   : > { %6929 = vmatprep.mubr.bf16.mxu0 %v6112_v10  ;;  %v5984_v20 = vcombine.low %v3042_v9, %v3052_v62  ;;  %v3076_v10 = vsel %vm7621_vm7, %v3071_v42, %v3075_v63 }
 0x1e4   : > { %v5985_v31 = vcombine.low %v3066_v34, %v3076_v10 }
 0x1e5   : > { %6730 = vmatmul.mubr.bf16.gmra.mrb[20].mxu1 %v5981_v54 }
 0x1e6   : > { %6733 = vmatprep.mubr.bf16.mxu1 %v5982_v7 }
 0x1ea   : > { %6930 = vmatmul.mubr.bf16.gmra.mrb[28].mxu0 %v6113_v0 }
 0x1ed   : > { %6734 = vmatmul.mubr.bf16.gmra.mrb[24].mxu1 %v5983_v55 }
 0x1ee   : > { %6737 = vmatprep.mubr.bf16.mxu1 %v5984_v20 }
 0x1f5   : > { %6738 = vmatmul.mubr.bf16.gmra.mrb[28].mxu1 %v5985_v31 }
 0x270   : > { %v6663_v24 = vpop.f32.mrb[0].mxu1 }
 0x271   : > { %v2486_v17 = vpop.f32.mrb[1].mxu1 }
 0x272   : > { %v6664_v22 = vpop.f32.mrb[2].mxu1 }
 0x273   : > { %v2489_v28 = vpop.f32.mrb[3].mxu1 }
 0x278   : > { %v6667_v37 = vpop.f32.mrb[4].mxu1 }
 0x279   : > { %v2502_v3 = vpop.f32.mrb[5].mxu1 }
 0x27a   : > { %v6668_v40 = vpop.f32.mrb[6].mxu1 }
 0x27b   : > { %v2505_v58 = vpop.f32.mrb[7].mxu1 }
 0x280   : > { %v6671_v29 = vpop.f32.mrb[8].mxu1 }
 0x281   : > { %v2518_v0 = vpop.f32.mrb[9].mxu1 }
 0x282   : > { %v6672_v16 = vpop.f32.mrb[10].mxu1 }
 0x283   : > { %v2521_v27 = vpop.f32.mrb[11].mxu1 }
 0x285   : > { %v6903_v45 = vpop.f32.mrb[0].mxu0 }
 0x286   : > { %v6949_v41 = vadd.f32 %v6903_v45, %v6663_v24  ;;  %v5377_v19 = vpop.f32.mrb[1].mxu0 }
 0x287   : > { %v6950_v11 = vadd.f32 %v5377_v19, %v2486_v17  ;;  %v6904_v50 = vpop.f32.mrb[2].mxu0 }
 0x288   : > { %v9086_v25 = vpop.f32.mrb[12].mxu1  ;;  %v5545_v32 = vadd.f32 %v6949_v41, %v9084_v43  ;;  %v6951_v5 = vadd.f32 %v6904_v50, %v6664_v22  ;;  %v5380_v44 = vpop.f32.mrb[3].mxu0 }
 0x289   : > { %v9088_v49 = vpop.f32.mrb[13].mxu1  ;;  %v5543_v56 = vadd.f32 %v6950_v11, %v9084_v43  ;;  %v6952_v39 = vadd.f32 %v5380_v44, %v2489_v28 }
 0x28a   : > { %v9090_v51 = vpop.f32.mrb[14].mxu1  ;;  %v5546_v36 = vadd.f32 %v6951_v5, %v9084_v43  ;;  %v5577_v4 = vmax.f32 %v5545_v32, 0.0 }
 0x28b   : > { %v9093_v30 = vpop.f32.mrb[15].mxu1  ;;  %v5544_v21 = vadd.f32 %v6952_v39, %v9084_v43  ;;  %v5575_v47 = vmax.f32 %v5543_v56, 0.0 }
 0x28c   : > { %v5578_v12 = vmax.f32 %v5546_v36, 0.0 }
 0x28d   : > { %v5576_v35 = vmax.f32 %v5544_v21, 0.0  ;;  %v6907_v33 = vpop.f32.mrb[4].mxu0 }
 0x28e   : > { %v6198_v14 = vpack.c.bf16 %v5578_v12, %v5577_v4  ;;  %v6953_v13 = vadd.f32 %v6907_v33, %v6667_v37  ;;  %v5393_v54 = vpop.f32.mrb[5].mxu0 }
 0x28f   : > { %v6193_v7 = vpack.c.bf16 %v5576_v35, %v5575_v47  ;;  %v6954_v2 = vadd.f32 %v5393_v54, %v2502_v3  ;;  %v6908_v23 = vpop.f32.mrb[6].mxu0 }
 0x290   : > { %6270 = vst [vmem:[%s9101_s26 + $0x8] sm:$0xff] %v6198_v14   ;;  %v5549_v60 = vadd.f32 %v6953_v13, %v9084_v43  ;;  %v6955_v53 = vadd.f32 %v6908_v23, %v6668_v40  ;;  %v5396_v6 = vpop.f32.mrb[7].mxu0 }
 0x291   : > { %6194 = vst [vmem:[%s9101_s26] sm:$0xff] %v6193_v7   ;;  %v5547_v38 = vadd.f32 %v6954_v2, %v9084_v43  ;;  %v6956_v46 = vadd.f32 %v5396_v6, %v2505_v58 }
 0x292   : > { %v5550_v26 = vadd.f32 %v6955_v53, %v9084_v43  ;;  %v5581_v8 = vmax.f32 %v5549_v60, 0.0 }
 0x293   : > { %v5548_v57 = vadd.f32 %v6956_v46, %v9084_v43  ;;  %v5579_v61 = vmax.f32 %v5547_v38, 0.0 }
 0x294   : > { %v5582_v18 = vmax.f32 %v5550_v26, 0.0 }
 0x295   : > { %v5580_v59 = vmax.f32 %v5548_v57, 0.0  ;;  %v6911_v1 = vpop.f32.mrb[8].mxu0 }
 0x296   : > { %v6208_v48 = vpack.c.bf16 %v5582_v18, %v5581_v8  ;;  %v6957_v52 = vadd.f32 %v6911_v1, %v6671_v29  ;;  %v5409_v9 = vpop.f32.mrb[9].mxu0 }
 0x297   : > { %v6203_v62 = vpack.c.bf16 %v5580_v59, %v5579_v61  ;;  %v6958_v55 = vadd.f32 %v5409_v9, %v2518_v0  ;;  %v6912_v20 = vpop.f32.mrb[10].mxu0 }
 0x298   : > { %6272 = vst [vmem:[%s9101_s26 + $0x18] sm:$0xff] %v6208_v48   ;;  %v5553_v15 = vadd.f32 %v6957_v52, %v9084_v43  ;;  %v6959_v42 = vadd.f32 %v6912_v20, %v6672_v16  ;;  %v5412_v63 = vpop.f32.mrb[11].mxu0 }
 0x299   : > { %6271 = vst [vmem:[%s9101_s26 + $0x10] sm:$0xff] %v6203_v62   ;;  %v5551_v34 = vadd.f32 %v6958_v55, %v9084_v43  ;;  %v6960_v10 = vadd.f32 %v5412_v63, %v2521_v27 }
 0x29a   : > { %v5554_v31 = vadd.f32 %v6959_v42, %v9084_v43  ;;  %v5585_v17 = vmax.f32 %v5553_v15, 0.0 }
 0x29b   : > { %v5552_v24 = vadd.f32 %v6960_v10, %v9084_v43  ;;  %v5583_v28 = vmax.f32 %v5551_v34, 0.0 }
 0x29c   : > { %v5586_v22 = vmax.f32 %v5554_v31, 0.0 }
 0x29d   : > { %v5584_v37 = vmax.f32 %v5552_v24, 0.0  ;;  %v6915_v3 = vpop.f32.mrb[12].mxu0 }
 0x29e   : > { %v6218_v40 = vpack.c.bf16 %v5586_v22, %v5585_v17  ;;  %v6961_v58 = vadd.f32 %v6915_v3, %v9086_v25  ;;  %v5425_v29 = vpop.f32.mrb[13].mxu0 }
 0x29f   : > { %v6213_v0 = vpack.c.bf16 %v5584_v37, %v5583_v28  ;;  %v6962_v16 = vadd.f32 %v5425_v29, %v9088_v49  ;;  %v6916_v45 = vpop.f32.mrb[14].mxu0 }
 0x2a0   : > { %6274 = vst [vmem:[%s9101_s26 + $0x28] sm:$0xff] %v6218_v40   ;;  %v5557_v27 = vadd.f32 %v6961_v58, %v9084_v43  ;;  %v6963_v41 = vadd.f32 %v6916_v45, %v9090_v51  ;;  %v5428_v19 = vpop.f32.mrb[15].mxu0 }
 0x2a1   : > { %6273 = vst [vmem:[%s9101_s26 + $0x20] sm:$0xff] %v6213_v0   ;;  %v5555_v11 = vadd.f32 %v6962_v16, %v9084_v43  ;;  %v6964_v50 = vadd.f32 %v5428_v19, %v9093_v30 }
 0x2a2   : > { %v5558_v25 = vadd.f32 %v6963_v41, %v9084_v43  ;;  %v5589_v5 = vmax.f32 %v5557_v27, 0.0 }
 0x2a3   : > { %v5556_v32 = vadd.f32 %v6964_v50, %v9084_v43  ;;  %v5587_v44 = vmax.f32 %v5555_v11, 0.0 }
 0x2a4   : > { %v5590_v49 = vmax.f32 %v5558_v25, 0.0 }
 0x2a5   : > { %v5588_v56 = vmax.f32 %v5556_v32, 0.0  ;;  %v6919_v39 = vpop.f32.mrb[16].mxu0 }
 0x2a6   : > { %v6228_v36 = vpack.c.bf16 %v5590_v49, %v5589_v5  ;;  %v5441_v21 = vpop.f32.mrb[17].mxu0 }
 0x2a7   : > { %v6223_v51 = vpack.c.bf16 %v5588_v56, %v5587_v44  ;;  %v6920_v4 = vpop.f32.mrb[18].mxu0 }
 0x2a8   : > { %6276 = vst [vmem:[%s9101_s26 + $0x38] sm:$0xff] %v6228_v36   ;;  %v5444_v12 = vpop.f32.mrb[19].mxu0 }
 0x2a9   : > { %6275 = vst [vmem:[%s9101_s26 + $0x30] sm:$0xff] %v6223_v51  }
 0x2ad   : > { %v6923_v47 = vpop.f32.mrb[20].mxu0 }
 0x2ae   : > { %v5457_v33 = vpop.f32.mrb[21].mxu0 }
 0x2af   : > { %v6924_v13 = vpop.f32.mrb[22].mxu0 }
 0x2b0   : > { %v6727_v35 = vpop.f32.mrb[16].mxu1  ;;  %v5460_v2 = vpop.f32.mrb[23].mxu0 }
 0x2b1   : > { %v6965_v30 = vadd.f32 %v6919_v39, %v6727_v35  ;;  %v3304_v14 = vpop.f32.mrb[17].mxu1 }
 0x2b2   : > { %v6966_v54 = vadd.f32 %v5441_v21, %v3304_v14  ;;  %v6728_v7 = vpop.f32.mrb[18].mxu1 }
 0x2b3   : > { %v5561_v23 = vadd.f32 %v6965_v30, %v9084_v43  ;;  %v6967_v60 = vadd.f32 %v6920_v4, %v6728_v7  ;;  %v3307_v53 = vpop.f32.mrb[19].mxu1 }
 0x2b4   : > { %v5559_v6 = vadd.f32 %v6966_v54, %v9084_v43  ;;  %v6968_v38 = vadd.f32 %v5444_v12, %v3307_v53 }
 0x2b5   : > { %v5562_v46 = vadd.f32 %v6967_v60, %v9084_v43  ;;  %v5593_v57 = vmax.f32 %v5561_v23, 0.0  ;;  %v6927_v18 = vpop.f32.mrb[24].mxu0 }
 0x2b6   : > { %v5560_v26 = vadd.f32 %v6968_v38, %v9084_v43  ;;  %v5591_v61 = vmax.f32 %v5559_v6, 0.0  ;;  %v5473_v48 = vpop.f32.mrb[25].mxu0 }
 0x2b7   : > { %v5594_v8 = vmax.f32 %v5562_v46, 0.0  ;;  %v6928_v55 = vpop.f32.mrb[26].mxu0 }
 0x2b8   : > { %v5592_v59 = vmax.f32 %v5560_v26, 0.0  ;;  %v6731_v1 = vpop.f32.mrb[20].mxu1  ;;  %v5476_v63 = vpop.f32.mrb[27].mxu0 }
 0x2b9   : > { %v6238_v52 = vpack.c.bf16 %v5594_v8, %v5593_v57  ;;  %v6969_v9 = vadd.f32 %v6923_v47, %v6731_v1  ;;  %v3320_v62 = vpop.f32.mrb[21].mxu1 }
 0x2ba   : > { %v6233_v20 = vpack.c.bf16 %v5592_v59, %v5591_v61  ;;  %v6970_v15 = vadd.f32 %v5457_v33, %v3320_v62  ;;  %v6732_v42 = vpop.f32.mrb[22].mxu1 }
 0x2bb   : > { %6278 = vst [vmem:[%s9101_s26 + $0x48] sm:$0xff] %v6238_v52   ;;  %v5565_v34 = vadd.f32 %v6969_v9, %v9084_v43  ;;  %v6971_v10 = vadd.f32 %v6924_v13, %v6732_v42  ;;  %v3323_v31 = vpop.f32.mrb[23].mxu1 }
 0x2bc   : > { %6277 = vst [vmem:[%s9101_s26 + $0x40] sm:$0xff] %v6233_v20   ;;  %v5563_v24 = vadd.f32 %v6970_v15, %v9084_v43  ;;  %v6972_v17 = vadd.f32 %v5460_v2, %v3323_v31 }
 0x2bd   : > { %v5566_v22 = vadd.f32 %v6971_v10, %v9084_v43  ;;  %v5597_v37 = vmax.f32 %v5565_v34, 0.0  ;;  %v6931_v40 = vpop.f32.mrb[28].mxu0 }
 0x2be   : > { %v5564_v28 = vadd.f32 %v6972_v17, %v9084_v43  ;;  %v5595_v58 = vmax.f32 %v5563_v24, 0.0  ;;  %v5489_v16 = vpop.f32.mrb[29].mxu0 }
 0x2bf   : > { %v5598_v3 = vmax.f32 %v5566_v22, 0.0  ;;  %v6932_v19 = vpop.f32.mrb[30].mxu0 }
 0x2c0   : > { %v5596_v29 = vmax.f32 %v5564_v28, 0.0  ;;  %v6735_v0 = vpop.f32.mrb[24].mxu1  ;;  %v5492_v32 = vpop.f32.mrb[31].mxu0 }
 0x2c1   : > { %v6248_v45 = vpack.c.bf16 %v5598_v3, %v5597_v37  ;;  %v6973_v27 = vadd.f32 %v6927_v18, %v6735_v0  ;;  %v3336_v41 = vpop.f32.mrb[25].mxu1 }
 0x2c2   : > { %v6243_v11 = vpack.c.bf16 %v5596_v29, %v5595_v58  ;;  %v6974_v50 = vadd.f32 %v5473_v48, %v3336_v41  ;;  %v6736_v25 = vpop.f32.mrb[26].mxu1 }
 0x2c3   : > { %6280 = vst [vmem:[%s9101_s26 + $0x58] sm:$0xff] %v6248_v45   ;;  %v5569_v5 = vadd.f32 %v6973_v27, %v9084_v43  ;;  %v6975_v49 = vadd.f32 %v6928_v55, %v6736_v25  ;;  %v3339_v44 = vpop.f32.mrb[27].mxu1 }
 0x2c4   : > { %6279 = vst [vmem:[%s9101_s26 + $0x50] sm:$0xff] %v6243_v11   ;;  %v5567_v56 = vadd.f32 %v6974_v50, %v9084_v43  ;;  %v6976_v39 = vadd.f32 %v5476_v63, %v3339_v44 }
 0x2c5   : > { %v5570_v36 = vadd.f32 %v6975_v49, %v9084_v43  ;;  %v5601_v51 = vmax.f32 %v5569_v5, 0.0 }
 0x2c6   : > { %v5568_v21 = vadd.f32 %v6976_v39, %v9084_v43  ;;  %v5599_v12 = vmax.f32 %v5567_v56, 0.0 }
 0x2c7   : > { %v5602_v4 = vmax.f32 %v5570_v36, 0.0 }
 0x2c8   : > { %v5600_v47 = vmax.f32 %v5568_v21, 0.0  ;;  %v6739_v35 = vpop.f32.mrb[28].mxu1 }
 0x2c9   : > { %v6258_v33 = vpack.c.bf16 %v5602_v4, %v5601_v51  ;;  %v6977_v30 = vadd.f32 %v6931_v40, %v6739_v35  ;;  %v3352_v14 = vpop.f32.mrb[29].mxu1 }
 0x2ca   : > { %v6253_v13 = vpack.c.bf16 %v5600_v47, %v5599_v12  ;;  %v6978_v54 = vadd.f32 %v5489_v16, %v3352_v14  ;;  %v6740_v7 = vpop.f32.mrb[30].mxu1 }
 0x2cb   : > { %6282 = vst [vmem:[%s9101_s26 + $0x68] sm:$0xff] %v6258_v33   ;;  %v5573_v2 = vadd.f32 %v6977_v30, %v9084_v43  ;;  %v6979_v23 = vadd.f32 %v6932_v19, %v6740_v7  ;;  %v3355_v60 = vpop.f32.mrb[31].mxu1 }
 0x2cc   : > { %6281 = vst [vmem:[%s9101_s26 + $0x60] sm:$0xff] %v6253_v13   ;;  %v5571_v53 = vadd.f32 %v6978_v54, %v9084_v43  ;;  %v6980_v6 = vadd.f32 %v5492_v32, %v3355_v60 }
 0x2cd   : > { %v5574_v38 = vadd.f32 %v6979_v23, %v9084_v43  ;;  %v5605_v26 = vmax.f32 %v5573_v2, 0.0 }
 0x2ce   : > { %v5572_v46 = vadd.f32 %v6980_v6, %v9084_v43  ;;  %v5603_v8 = vmax.f32 %v5571_v53, 0.0 }
 0x2cf   : > { %v5606_v57 = vmax.f32 %v5574_v38, 0.0 }
 0x2d0   : > { %v5604_v18 = vmax.f32 %v5572_v46, 0.0 }
 0x2d1   : > { %v6268_v61 = vpack.c.bf16 %v5606_v57, %v5605_v26 }
 0x2d2   : > { %v6263_v59 = vpack.c.bf16 %v5604_v18, %v5603_v8 }
 0x2d3   : > { %6284 = vst [vmem:[%s9101_s26 + $0x78] sm:$0xff] %v6268_v61  }
 0x2d4   : > { %6283 = vst [vmem:[%s9101_s26 + $0x70] sm:$0xff] %v6263_v59  }
 0x2d5 PF: > { %s15_s12 = sadd.s32 1, %s7500_s12  }
 0x2d6   : > { %p12_p10 = scmp.ge.s32.totalorder %s15_s12, 4  }
 0x2d8   :  { %14 = sbr.rel (!%p12_p10) target bundleno = 2 (0x2), region = 81 }
 0x2df   :  { %5789 = vsyncpa [#allocation4], 1 }
 0x2e0   :  { %5791 = vsyncpa [#allocation4 + $0x1], 1 }
 0x2e1   :  { %5792 = vsyncpa [#allocation6], 1 }

</bundles_post_ra>
